<compile_context>
chip_gen: v5e
topology: v5e:2x2
jax: 0.10.0
libtpu: 0.0.40
codegen_flags: <defaults>
</compile_context>

<pallas_src>
import functools

import jax
import jax.numpy as jnp
from jax.experimental import pallas as pl
from jax.experimental.pallas import tpu as pltpu


def _activation(y, act):
    if act == "silu":
        return y * (1.0 / (1.0 + jnp.exp(-y)))      # x * sigmoid(x)
    if act == "relu":
        return jnp.maximum(y, 0.0)
    if act == "lrelu":
        return jnp.where(y >= 0, y, 0.1 * y)
    raise ValueError(f"unsupported act: {act}")


def _dwconv_kernel(p_ref, wdw_ref, bdw_ref, wpw_ref, bpw_ref, o_ref, *,
                   act, num_taps):
    """One M-tile per grid step.

    p_ref:   (num_taps, tile_m, Cin)  shifted-window views, channel on lanes
    wdw_ref: (num_taps, 1, Cin)       depthwise weight, BN scale folded (f32)
    bdw_ref: (1, Cin)                 folded depthwise BN bias (f32)
    wpw_ref: (Cin, Coutp)             pointwise weight, BN scale folded, padded
    bpw_ref: (1, Coutp)               folded pointwise BN bias (padded, f32)
    o_ref:   (tile_m, Coutp)          lane-dense output tile
    """
    # Depthwise conv: num_taps VPU multiply-adds accumulated in f32.
    # Each p_ref[k] is a leading-axis view -> no relayout; wdw_ref[k] is a
    # (1, Cin) row broadcast across the tile_m sublanes.
    h = p_ref[0].astype(jnp.float32) * wdw_ref[0]
    for k in range(1, num_taps):
        h = h + p_ref[k].astype(jnp.float32) * wdw_ref[k]
    h = _activation(h + bdw_ref[...], act)           # folded BN (eval) + act

    # Pointwise 1x1 conv: single MXU matmul, lane-dense Coutp output.
    y = jnp.dot(h.astype(wpw_ref.dtype), wpw_ref[...],
                preferred_element_type=jnp.float32)
    y = _activation(y + bpw_ref[...], act)
    o_ref[...] = y.astype(o_ref.dtype)


def _round_up(x, m):
    return (x + m - 1) // m * m


def _fold_bn(gamma, beta, mean, var, eps):
    scale = gamma / jnp.sqrt(var + eps)
    bias = beta - mean * scale
    return scale, bias


def dwconv_forward(x_nchw,
                   dw_weight, dw_gamma, dw_beta, dw_mean, dw_var,
                   pw_weight, pw_gamma, pw_beta, pw_mean, pw_var,
                   *, stride=1, eps=1e-5, act="silu",
                   compute_dtype=jnp.float32, tile_m=256):
    """DWConv forward (eval-mode BN). x: NCHW; returns NCHW."""
    N, Cin, H, W = x_nchw.shape
    Cdw, one, KH, KW = dw_weight.shape            # depthwise: (Cin, 1, KH, KW)
    assert Cdw == Cin and one == 1, "depthwise weight must be (Cin, 1, KH, KW)"
    Cout, Cin_pw, okh, okw = pw_weight.shape      # pointwise: (Cout, Cin, 1, 1)
    assert Cin_pw == Cin and okh == 1 and okw == 1

    pad = (KH - 1) // 2
    Ho = (H + 2 * pad - KH) // stride + 1
    Wo = (W + 2 * pad - KW) // stride + 1
    K9 = KH * KW

    # ---- wrapper-side shifted views (NCHW -> NHWC, spatial pad, K*K views).
    x = jnp.transpose(x_nchw, (0, 2, 3, 1))
    x = jnp.pad(x, ((0, 0), (pad, pad), (pad, pad), (0, 0)))
    views = []
    for kh in range(KH):
        for kw in range(KW):
            views.append(x[:, kh:kh + (Ho - 1) * stride + 1:stride,
                              kw:kw + (Wo - 1) * stride + 1:stride, :])
    # (K9, N, Ho, Wo, Cin) -> (K9, M, Cin): each tap is a contiguous slab.
    patches = jnp.stack(views, axis=0)
    M = N * Ho * Wo
    patches = patches.reshape(K9, M, Cin)

    # Pad rows to a multiple of tile_m (rows are the sublane axis: mult of 8).
    tile_m = min(tile_m, _round_up(M, 8))         # tile_m stays a multiple of 8
    Mp = _round_up(M, tile_m)
    patches = jnp.pad(patches, ((0, 0), (0, Mp - M), (0, 0))).astype(compute_dtype)

    # ---- depthwise weight (K9, 1, Cin) with BN scale folded in (kept f32).
    dw_scale, dw_bias = _fold_bn(dw_gamma, dw_beta, dw_mean, dw_var, eps)
    wd = jnp.transpose(dw_weight[:, 0, :, :], (1, 2, 0)).reshape(K9, Cin)
    w_dw = (wd * dw_scale[None, :]).reshape(K9, 1, Cin).astype(jnp.float32)
    b_dw = dw_bias.reshape(1, Cin).astype(jnp.float32)

    # ---- pointwise weight (Cin, Coutp), BN scale folded, Cout padded to 128
    #      so the kernel's output store is fully lane-dense.
    pw_scale, pw_bias = _fold_bn(pw_gamma, pw_beta, pw_mean, pw_var, eps)
    w_pw = jnp.transpose(pw_weight[:, :, 0, 0], (1, 0)) * pw_scale[None, :]
    Coutp = _round_up(Cout, 128)
    w_pw = jnp.pad(w_pw, ((0, 0), (0, Coutp - Cout))).astype(compute_dtype)
    b_pw = jnp.pad(pw_bias.reshape(1, Cout),
                   ((0, 0), (0, Coutp - Cout))).astype(jnp.float32)

    kernel = functools.partial(_dwconv_kernel, act=act, num_taps=K9)
    out = pl.pallas_call(
        kernel,
        out_shape=jax.ShapeDtypeStruct((Mp, Coutp), x_nchw.dtype),
        grid=(Mp // tile_m,),
        in_specs=[
            pl.BlockSpec((K9, tile_m, Cin), lambda i: (0, i, 0)),
            pl.BlockSpec((K9, 1, Cin), lambda i: (0, 0, 0)),
            pl.BlockSpec((1, Cin), lambda i: (0, 0)),
            pl.BlockSpec((Cin, Coutp), lambda i: (0, 0)),
            pl.BlockSpec((1, Coutp), lambda i: (0, 0)),
        ],
        out_specs=pl.BlockSpec((tile_m, Coutp), lambda i: (i, 0)),
        compiler_params=pltpu.CompilerParams(
            dimension_semantics=("parallel",)),
    )(patches, w_dw, b_dw, w_pw, b_pw)

    # Un-pad / un-flatten in the wrapper (keeps the kernel store lane-dense).
    out = out[:M, :Cout].reshape(N, Ho, Wo, Cout)
    return jnp.transpose(out, (0, 3, 1, 2))       # back to NCHW


if __name__ == "__main__":
    # DWConv(in_channels=4, out_channels=8, ksize=3, stride=1, act='silu')
    N, Cin, H, W = 2, 4, 16, 16
    Cout, ksize = 8, 3
    eps = 1e-5

    ks = jax.random.split(jax.random.PRNGKey(0), 11)
    x = jax.random.normal(ks[0], (N, Cin, H, W), dtype=jnp.float32)
    dw_w = jax.random.normal(ks[1], (Cin, 1, ksize, ksize), jnp.float32) * 0.1
    dw_gamma = 1.0 + 0.1 * jax.random.normal(ks[2], (Cin,), jnp.float32)
    dw_beta = 0.1 * jax.random.normal(ks[3], (Cin,), jnp.float32)
    dw_mean = 0.1 * jax.random.normal(ks[4], (Cin,), jnp.float32)
    dw_var = 1.0 + 0.1 * jax.random.uniform(ks[5], (Cin,), jnp.float32)
    pw_w = jax.random.normal(ks[6], (Cout, Cin, 1, 1), jnp.float32) * 0.1
    pw_gamma = 1.0 + 0.1 * jax.random.normal(ks[7], (Cout,), jnp.float32)
    pw_beta = 0.1 * jax.random.normal(ks[8], (Cout,), jnp.float32)
    pw_mean = 0.1 * jax.random.normal(ks[9], (Cout,), jnp.float32)
    pw_var = 1.0 + 0.1 * jax.random.uniform(ks[10], (Cout,), jnp.float32)

    # --- pure-XLA reference: depthwise conv+BN+SiLU, then 1x1 conv+BN+SiLU ---
    def ref_baseconv(xin, w, gamma, beta, mean, var, s, p, groups):
        y = jax.lax.conv_general_dilated(
            xin, w, window_strides=(s, s), padding=((p, p), (p, p)),
            dimension_numbers=("NCHW", "OIHW", "NCHW"),
            feature_group_count=groups)
        sc = gamma / jnp.sqrt(var + eps)
        b = beta - mean * sc
        y = y * sc[None, :, None, None] + b[None, :, None, None]
        return y * jax.nn.sigmoid(y)     # SiLU

    def ref_dwconv(xin, s):
        r = ref_baseconv(xin, dw_w, dw_gamma, dw_beta, dw_mean, dw_var,
                         s, (ksize - 1) // 2, Cin)
        return ref_baseconv(r, pw_w, pw_gamma, pw_beta, pw_mean, pw_var, 1, 0, 1)

    # f32 path, stride=1 (two grid steps with tile_m=256).
    out = dwconv_forward(x, dw_w, dw_gamma, dw_beta, dw_mean, dw_var,
                         pw_w, pw_gamma, pw_beta, pw_mean, pw_var,
                         stride=1, eps=eps, act="silu",
                         compute_dtype=jnp.float32, tile_m=256)
    out = jax.block_until_ready(out)
    ref = ref_dwconv(x, 1)
    assert out.shape == ref.shape, (out.shape, ref.shape)
    assert jnp.allclose(out, ref, atol=1e-4, rtol=1e-4), \
        float(jnp.max(jnp.abs(out - ref)))

    # f32 path, stride=2 (exercises strided im2col).
    out_s2 = dwconv_forward(x, dw_w, dw_gamma, dw_beta, dw_mean, dw_var,
                            pw_w, pw_gamma, pw_beta, pw_mean, pw_var,
                            stride=2, eps=eps, act="silu",
                            compute_dtype=jnp.float32)
    out_s2 = jax.block_until_ready(out_s2)
    ref_s2 = ref_dwconv(x, 2)
    assert out_s2.shape == ref_s2.shape, (out_s2.shape, ref_s2.shape)
    assert jnp.allclose(out_s2, ref_s2, atol=1e-4, rtol=1e-4), \
        float(jnp.max(jnp.abs(out_s2 - ref_s2)))

    # bf16 MXU / load path (v6e/v7x fast path), f32 accumulation — looser check.
    out_bf16 = dwconv_forward(x, dw_w, dw_gamma, dw_beta, dw_mean, dw_var,
                              pw_w, pw_gamma, pw_beta, pw_mean, pw_var,
                              stride=1, eps=eps, act="silu",
                              compute_dtype=jnp.bfloat16, tile_m=256)
    out_bf16 = jax.block_until_ready(out_bf16)
    assert jnp.allclose(out_bf16, ref, atol=5e-2, rtol=5e-2), \
        float(jnp.max(jnp.abs(out_bf16 - ref)))

    print("KERNEL_OK")
</pallas_src>

<mosaic_0001>
module attributes {stable_mosaic.version = 11 : i64} {
  func.func @_dwconv_kernel(%arg0: i32, %arg1: memref<9x256x4xf32, #tpu.memory_space<vmem>>, %arg2: memref<9x1x4xf32, #tpu.memory_space<vmem>>, %arg3: memref<1x4xf32, #tpu.memory_space<vmem>>, %arg4: memref<4x128xf32, #tpu.memory_space<vmem>>, %arg5: memref<1x128xf32, #tpu.memory_space<vmem>>, %arg6: memref<256x128xf32, #tpu.memory_space<vmem>>) attributes {dimension_semantics = [#tpu.dimension_semantics<parallel>], iteration_bounds = array<i64: 2>, scalar_prefetch = 0 : i64, scratch_operands = 0 : i64, tpu.core_type = #tpu.core_type<tc>, window_params = [{transform_indices = @transform_0, window_bounds = array<i64: 9, 256, 4>}, {pipeline_mode = #tpu.pipeline_mode<synchronous>, transform_indices = @transform_1, window_bounds = array<i64: 9, 1, 4>}, {pipeline_mode = #tpu.pipeline_mode<synchronous>, transform_indices = @transform_2, window_bounds = array<i64: 1, 4>}, {pipeline_mode = #tpu.pipeline_mode<synchronous>, transform_indices = @transform_3, window_bounds = array<i64: 4, 128>}, {pipeline_mode = #tpu.pipeline_mode<synchronous>, transform_indices = @transform_4, window_bounds = array<i64: 1, 128>}, {transform_indices = @transform_5, window_bounds = array<i64: 256, 128>}]} {
    %c0 = arith.constant 0 : index
    %c0_0 = arith.constant 0 : index
    %c0_1 = arith.constant 0 : index
    %0 = vector.load %arg1[%c0, %c0_0, %c0_1] : memref<9x256x4xf32, #tpu.memory_space<vmem>>, vector<1x256x4xf32>
    %1 = vector.shape_cast %0 : vector<1x256x4xf32> to vector<256x4xf32>
    %c0_2 = arith.constant 0 : index
    %c0_3 = arith.constant 0 : index
    %c0_4 = arith.constant 0 : index
    %2 = vector.load %arg2[%c0_2, %c0_3, %c0_4] : memref<9x1x4xf32, #tpu.memory_space<vmem>>, vector<1x1x4xf32>
    %3 = vector.shape_cast %2 : vector<1x1x4xf32> to vector<1x4xf32>
    %4 = vector.broadcast %3 : vector<1x4xf32> to vector<256x4xf32>
    %5 = arith.mulf %1, %4 : vector<256x4xf32>
    %c1 = arith.constant 1 : index
    %c0_5 = arith.constant 0 : index
    %c0_6 = arith.constant 0 : index
    %6 = vector.load %arg1[%c1, %c0_5, %c0_6] : memref<9x256x4xf32, #tpu.memory_space<vmem>>, vector<1x256x4xf32>
    %7 = vector.shape_cast %6 : vector<1x256x4xf32> to vector<256x4xf32>
    %c1_7 = arith.constant 1 : index
    %c0_8 = arith.constant 0 : index
    %c0_9 = arith.constant 0 : index
    %8 = vector.load %arg2[%c1_7, %c0_8, %c0_9] : memref<9x1x4xf32, #tpu.memory_space<vmem>>, vector<1x1x4xf32>
    %9 = vector.shape_cast %8 : vector<1x1x4xf32> to vector<1x4xf32>
    %10 = vector.broadcast %9 : vector<1x4xf32> to vector<256x4xf32>
    %11 = arith.mulf %7, %10 : vector<256x4xf32>
    %12 = arith.addf %5, %11 : vector<256x4xf32>
    %c2 = arith.constant 2 : index
    %c0_10 = arith.constant 0 : index
    %c0_11 = arith.constant 0 : index
    %13 = vector.load %arg1[%c2, %c0_10, %c0_11] : memref<9x256x4xf32, #tpu.memory_space<vmem>>, vector<1x256x4xf32>
    %14 = vector.shape_cast %13 : vector<1x256x4xf32> to vector<256x4xf32>
    %c2_12 = arith.constant 2 : index
    %c0_13 = arith.constant 0 : index
    %c0_14 = arith.constant 0 : index
    %15 = vector.load %arg2[%c2_12, %c0_13, %c0_14] : memref<9x1x4xf32, #tpu.memory_space<vmem>>, vector<1x1x4xf32>
    %16 = vector.shape_cast %15 : vector<1x1x4xf32> to vector<1x4xf32>
    %17 = vector.broadcast %16 : vector<1x4xf32> to vector<256x4xf32>
    %18 = arith.mulf %14, %17 : vector<256x4xf32>
    %19 = arith.addf %12, %18 : vector<256x4xf32>
    %c3 = arith.constant 3 : index
    %c0_15 = arith.constant 0 : index
    %c0_16 = arith.constant 0 : index
    %20 = vector.load %arg1[%c3, %c0_15, %c0_16] : memref<9x256x4xf32, #tpu.memory_space<vmem>>, vector<1x256x4xf32>
    %21 = vector.shape_cast %20 : vector<1x256x4xf32> to vector<256x4xf32>
    %c3_17 = arith.constant 3 : index
    %c0_18 = arith.constant 0 : index
    %c0_19 = arith.constant 0 : index
    %22 = vector.load %arg2[%c3_17, %c0_18, %c0_19] : memref<9x1x4xf32, #tpu.memory_space<vmem>>, vector<1x1x4xf32>
    %23 = vector.shape_cast %22 : vector<1x1x4xf32> to vector<1x4xf32>
    %24 = vector.broadcast %23 : vector<1x4xf32> to vector<256x4xf32>
    %25 = arith.mulf %21, %24 : vector<256x4xf32>
    %26 = arith.addf %19, %25 : vector<256x4xf32>
    %c4 = arith.constant 4 : index
    %c0_20 = arith.constant 0 : index
    %c0_21 = arith.constant 0 : index
    %27 = vector.load %arg1[%c4, %c0_20, %c0_21] : memref<9x256x4xf32, #tpu.memory_space<vmem>>, vector<1x256x4xf32>
    %28 = vector.shape_cast %27 : vector<1x256x4xf32> to vector<256x4xf32>
    %c4_22 = arith.constant 4 : index
    %c0_23 = arith.constant 0 : index
    %c0_24 = arith.constant 0 : index
    %29 = vector.load %arg2[%c4_22, %c0_23, %c0_24] : memref<9x1x4xf32, #tpu.memory_space<vmem>>, vector<1x1x4xf32>
    %30 = vector.shape_cast %29 : vector<1x1x4xf32> to vector<1x4xf32>
    %31 = vector.broadcast %30 : vector<1x4xf32> to vector<256x4xf32>
    %32 = arith.mulf %28, %31 : vector<256x4xf32>
    %33 = arith.addf %26, %32 : vector<256x4xf32>
    %c5 = arith.constant 5 : index
    %c0_25 = arith.constant 0 : index
    %c0_26 = arith.constant 0 : index
    %34 = vector.load %arg1[%c5, %c0_25, %c0_26] : memref<9x256x4xf32, #tpu.memory_space<vmem>>, vector<1x256x4xf32>
    %35 = vector.shape_cast %34 : vector<1x256x4xf32> to vector<256x4xf32>
    %c5_27 = arith.constant 5 : index
    %c0_28 = arith.constant 0 : index
    %c0_29 = arith.constant 0 : index
    %36 = vector.load %arg2[%c5_27, %c0_28, %c0_29] : memref<9x1x4xf32, #tpu.memory_space<vmem>>, vector<1x1x4xf32>
    %37 = vector.shape_cast %36 : vector<1x1x4xf32> to vector<1x4xf32>
    %38 = vector.broadcast %37 : vector<1x4xf32> to vector<256x4xf32>
    %39 = arith.mulf %35, %38 : vector<256x4xf32>
    %40 = arith.addf %33, %39 : vector<256x4xf32>
    %c6 = arith.constant 6 : index
    %c0_30 = arith.constant 0 : index
    %c0_31 = arith.constant 0 : index
    %41 = vector.load %arg1[%c6, %c0_30, %c0_31] : memref<9x256x4xf32, #tpu.memory_space<vmem>>, vector<1x256x4xf32>
    %42 = vector.shape_cast %41 : vector<1x256x4xf32> to vector<256x4xf32>
    %c6_32 = arith.constant 6 : index
    %c0_33 = arith.constant 0 : index
    %c0_34 = arith.constant 0 : index
    %43 = vector.load %arg2[%c6_32, %c0_33, %c0_34] : memref<9x1x4xf32, #tpu.memory_space<vmem>>, vector<1x1x4xf32>
    %44 = vector.shape_cast %43 : vector<1x1x4xf32> to vector<1x4xf32>
    %45 = vector.broadcast %44 : vector<1x4xf32> to vector<256x4xf32>
    %46 = arith.mulf %42, %45 : vector<256x4xf32>
    %47 = arith.addf %40, %46 : vector<256x4xf32>
    %c7 = arith.constant 7 : index
    %c0_35 = arith.constant 0 : index
    %c0_36 = arith.constant 0 : index
    %48 = vector.load %arg1[%c7, %c0_35, %c0_36] : memref<9x256x4xf32, #tpu.memory_space<vmem>>, vector<1x256x4xf32>
    %49 = vector.shape_cast %48 : vector<1x256x4xf32> to vector<256x4xf32>
    %c7_37 = arith.constant 7 : index
    %c0_38 = arith.constant 0 : index
    %c0_39 = arith.constant 0 : index
    %50 = vector.load %arg2[%c7_37, %c0_38, %c0_39] : memref<9x1x4xf32, #tpu.memory_space<vmem>>, vector<1x1x4xf32>
    %51 = vector.shape_cast %50 : vector<1x1x4xf32> to vector<1x4xf32>
    %52 = vector.broadcast %51 : vector<1x4xf32> to vector<256x4xf32>
    %53 = arith.mulf %49, %52 : vector<256x4xf32>
    %54 = arith.addf %47, %53 : vector<256x4xf32>
    %c8 = arith.constant 8 : index
    %c0_40 = arith.constant 0 : index
    %c0_41 = arith.constant 0 : index
    %55 = vector.load %arg1[%c8, %c0_40, %c0_41] : memref<9x256x4xf32, #tpu.memory_space<vmem>>, vector<1x256x4xf32>
    %56 = vector.shape_cast %55 : vector<1x256x4xf32> to vector<256x4xf32>
    %c8_42 = arith.constant 8 : index
    %c0_43 = arith.constant 0 : index
    %c0_44 = arith.constant 0 : index
    %57 = vector.load %arg2[%c8_42, %c0_43, %c0_44] : memref<9x1x4xf32, #tpu.memory_space<vmem>>, vector<1x1x4xf32>
    %58 = vector.shape_cast %57 : vector<1x1x4xf32> to vector<1x4xf32>
    %59 = vector.broadcast %58 : vector<1x4xf32> to vector<256x4xf32>
    %60 = arith.mulf %56, %59 : vector<256x4xf32>
    %61 = arith.addf %54, %60 : vector<256x4xf32>
    %c0_45 = arith.constant 0 : index
    %c0_46 = arith.constant 0 : index
    %62 = vector.load %arg3[%c0_45, %c0_46] : memref<1x4xf32, #tpu.memory_space<vmem>>, vector<1x4xf32>
    %63 = vector.broadcast %62 : vector<1x4xf32> to vector<256x4xf32>
    %64 = arith.addf %61, %63 : vector<256x4xf32>
    %cst = arith.constant 0.000000e+00 : f32
    %65 = vector.broadcast %cst : f32 to vector<256x4xf32>
    %66 = arith.subf %65, %64 : vector<256x4xf32>
    %67 = math.exp %66 : vector<256x4xf32>
    %cst_47 = arith.constant 1.000000e+00 : f32
    %68 = vector.broadcast %cst_47 : f32 to vector<256x4xf32>
    %69 = arith.addf %68, %67 : vector<256x4xf32>
    %cst_48 = arith.constant 1.000000e+00 : f32
    %70 = vector.broadcast %cst_48 : f32 to vector<256x4xf32>
    %71 = arith.divf %70, %69 : vector<256x4xf32>
    %72 = arith.mulf %64, %71 : vector<256x4xf32>
    %c0_49 = arith.constant 0 : index
    %c0_50 = arith.constant 0 : index
    %73 = vector.load %arg4[%c0_49, %c0_50] : memref<4x128xf32, #tpu.memory_space<vmem>>, vector<4x128xf32>
    %cst_51 = arith.constant dense<0.000000e+00> : vector<256x128xf32>
    %74 = tpu.matmul %72, %73, %cst_51 {dimension_numbers = #tpu.dot_dimension_numbers<[1], [0], [0], [1], [0, 0, 1, 1], [], []>} : vector<256x4xf32>, vector<4x128xf32>, vector<256x128xf32> -> vector<256x128xf32>
    %c0_52 = arith.constant 0 : index
    %c0_53 = arith.constant 0 : index
    %75 = vector.load %arg5[%c0_52, %c0_53] : memref<1x128xf32, #tpu.memory_space<vmem>>, vector<1x128xf32>
    %76 = vector.broadcast %75 : vector<1x128xf32> to vector<256x128xf32>
    %77 = arith.addf %74, %76 : vector<256x128xf32>
    %cst_54 = arith.constant 0.000000e+00 : f32
    %78 = vector.broadcast %cst_54 : f32 to vector<256x128xf32>
    %79 = arith.subf %78, %77 : vector<256x128xf32>
    %80 = math.exp %79 : vector<256x128xf32>
    %cst_55 = arith.constant 1.000000e+00 : f32
    %81 = vector.broadcast %cst_55 : f32 to vector<256x128xf32>
    %82 = arith.addf %81, %80 : vector<256x128xf32>
    %cst_56 = arith.constant 1.000000e+00 : f32
    %83 = vector.broadcast %cst_56 : f32 to vector<256x128xf32>
    %84 = arith.divf %83, %82 : vector<256x128xf32>
    %85 = arith.mulf %77, %84 : vector<256x128xf32>
    %c0_57 = arith.constant 0 : index
    %c0_58 = arith.constant 0 : index
    %86 = vector.load %arg6[%c0_57, %c0_58] : memref<256x128xf32, #tpu.memory_space<vmem>>, vector<256x128xf32>
    tpu.vector_store %arg6[%c0_57, %c0_58], %85 {strides = array<i32>} : memref<256x128xf32, #tpu.memory_space<vmem>>, vector<256x128xf32>,
    return
  }
  func.func @transform_0(%arg0: i32) -> (i32, i32, i32) {
    %c0_i32 = arith.constant 0 : i32
    %c0_i32_0 = arith.constant 0 : i32
    %c0_i32_1 = arith.constant 0 : i32
    return %c0_i32, %arg0, %c0_i32_0 : i32, i32, i32
  }
  func.func @transform_1(%arg0: i32) -> (i32, i32, i32) {
    %c0_i32 = arith.constant 0 : i32
    %c0_i32_0 = arith.constant 0 : i32
    %c0_i32_1 = arith.constant 0 : i32
    %c0_i32_2 = arith.constant 0 : i32
    return %c0_i32, %c0_i32_0, %c0_i32_1 : i32, i32, i32
  }
  func.func @transform_2(%arg0: i32) -> (i32, i32) {
    %c0_i32 = arith.constant 0 : i32
    %c0_i32_0 = arith.constant 0 : i32
    %c0_i32_1 = arith.constant 0 : i32
    return %c0_i32, %c0_i32_0 : i32, i32
  }
  func.func @transform_3(%arg0: i32) -> (i32, i32) {
    %c0_i32 = arith.constant 0 : i32
    %c0_i32_0 = arith.constant 0 : i32
    %c0_i32_1 = arith.constant 0 : i32
    return %c0_i32, %c0_i32_0 : i32, i32
  }
  func.func @transform_4(%arg0: i32) -> (i32, i32) {
    %c0_i32 = arith.constant 0 : i32
    %c0_i32_0 = arith.constant 0 : i32
    %c0_i32_1 = arith.constant 0 : i32
    return %c0_i32, %c0_i32_0 : i32, i32
  }
  func.func @transform_5(%arg0: i32) -> (i32, i32) {
    %c0_i32 = arith.constant 0 : i32
    %c0_i32_0 = arith.constant 0 : i32
    return %arg0, %c0_i32 : i32, i32
  }
}

</mosaic_0001>

<bundles_post_ra>
// kernel: tpu_custom_call.1
= control target key start
LH: loop header
LB: loop body
LE: loop exit
PB: predicated region body
PF: predicated region fallthrough
CT: control target
= control target key end

     0   :  { %10 = vsyncpa [#allocation4], 0  ;;  %s8636_s0 = inlined_call_operand.vmem [shape: f32[9,512,4], index: 0, kind: input, shape index: {}]   ;;  %s8637_s1 = inlined_call_operand.vmem [shape: f32[9,1,4], index: 1, kind: input, shape index: {}]   ;;  %s8638_s2 = inlined_call_operand.vmem [shape: f32[1,4], index: 2, kind: input, shape index: {}]   ;;  %s8639_s3 = inlined_call_operand.vmem [shape: f32[4,128], index: 3, kind: input, shape index: {}]   ;;  %s8640_s4 = inlined_call_operand.vmem [shape: f32[1,128], index: 4, kind: input, shape index: {}]   ;;  %s8641_s5 = inlined_call_operand.hbm [shape: f32[512,128], index: 5, kind: output, shape index: {}]  }
   0x1   :  { %12 = vsyncpa [#allocation4 + $0x1], 0  ;;  %s5882_s18 = smov 0   ;;  %s5884_s19 = smov 0  }
   0x2   :  { %s5886_s20 = smov 0   ;;  %s5888_s21 = smov 0  }
   0x3 LB: > { %s5140_s22 = sadd.s32 4294967295, %s5848_s21   ;;  %s5141_s23 = sadd.s32 4294967294, %s5848_s21   ;;  %s5848_s21 = sphi %s5888_s21, %s8785_s21   ;;  %s5844_s20 = sphi %s5886_s20, %s8784_s20   ;;  %s5840_s19 = sphi %s5884_s19, %s8783_s19   ;;  %s5836_s18 = sphi %s5882_s18, %s8782_s18  }
   0x4   : > { %s5905_s24 = sadd.s32 1, %s5848_s21   ;;  %s25_s25 = sadd.s32 1, %s5844_s20 }
   0x5   : > { %s22_s26 = ssub.s32 %s5848_s21, %s5905_s24  ;;  %p32_p0 = scmp.ne.s32.totalorder %s5844_s20, %s5840_s19 }
   0x6   : > { %p23_p1 = scmp.eq.s32.totalorder %s22_s26, 0  ;;  %p33_p2 = scmp.eq.s32.totalorder %s5848_s21, 0 }
   0x7   : > { %p146_p3 = scmp.eq.s32.totalorder %s5140_s22, 1  ;;  %p151_p4 = scmp.ne.s32.totalorder %s5840_s19, %s5836_s18 }
   0x8   : > { %s5918_s27 = scalar_select %p23_p1, %s5844_s20, %s25_s25  }
   0x9   : > { %p34_p5 = por %p33_p2, %p32_p0  ;;  %p5920_p6 = por %p146_p3, %p32_p0 }
   0xa   : > { %p152_p7 = scmp.eq.s32.totalorder %s5141_s23, 1  ;;  %p5143_p9 = scmp.ge.s32.totalorder %s5848_s21, 2 }
   0xc   : > { %p5924_p8 = por %p152_p7, %p151_p4  ;;  %180 = sbr.rel (%p5143_p9) target bundleno = 309 (0x135), region = 32 }
  0x11   : > { %183 = sbr.rel (!%p34_p5) target bundleno = 309 (0x135), region = 36  ;;  %s185_s30 = sand.u32 (%p34_p5), 1, %s5844_s20  }
  0x12   : > { %s5450_s6 = sshll.u32 (%p34_p5), %s5848_s21, 8  ;;  %s5455_s7 = smul.u32 (%p34_p5), 2304, %s185_s30 }
  0x13   : > { %s5936_s10 = scalar_lea.vmem (%p34_p5), %s8636_s0, %s5450_s6 }
  0x14   : > { %v794_v0 = vld [vmem:[%s5936_s10] sm:$0xff] (%p34_p5)  ;;  %v796_v1 = vld [vmem:[%s5936_s10 + $0x8] sm:$0xff] (%p34_p5)  ;;  %v798_v2 = vld [vmem:[%s5936_s10 + $0x10] sm:$0xff] (%p34_p5)  ;;  %s5941_s11 = scalar_lea.vmem (%p34_p5), [#allocation2], %s5455_s7 }
  0x15   : > { %795 = vst [vmem:[%s5941_s11] sm:$0xff] (%p34_p5), %v794_v0  ;;  %v800_v3 = vld [vmem:[%s5936_s10 + $0x18] sm:$0xff] (%p34_p5)  ;;  %v802_v4 = vld [vmem:[%s5936_s10 + $0x20] sm:$0xff] (%p34_p5)  ;;  %v804_v5 = vld [vmem:[%s5936_s10 + $0x28] sm:$0xff] (%p34_p5) }
  0x16   : > { %797 = vst [vmem:[%s5941_s11 + $0x8] sm:$0xff] %v796_v1  ;;  %v806_v6 = vld [vmem:[%s5936_s10 + $0x30] sm:$0xff]  ;;  %v808_v7 = vld [vmem:[%s5936_s10 + $0x38] sm:$0xff]  ;;  %v810_v8 = vld [vmem:[%s5936_s10 + $0x40] sm:$0xff] }
  0x17   : > { %799 = vst [vmem:[%s5941_s11 + $0x10] sm:$0xff] %v798_v2  ;;  %v812_v9 = vld [vmem:[%s5936_s10 + $0x48] sm:$0xff]  ;;  %v814_v10 = vld [vmem:[%s5936_s10 + $0x50] sm:$0xff]  ;;  %v816_v11 = vld [vmem:[%s5936_s10 + $0x58] sm:$0xff] }
  0x18   : > { %801 = vst [vmem:[%s5941_s11 + $0x18] sm:$0xff] %v800_v3  ;;  %v818_v12 = vld [vmem:[%s5936_s10 + $0x60] sm:$0xff]  ;;  %v820_v13 = vld [vmem:[%s5936_s10 + $0x68] sm:$0xff]  ;;  %v822_v14 = vld [vmem:[%s5936_s10 + $0x70] sm:$0xff] }
  0x19   : > { %803 = vst [vmem:[%s5941_s11 + $0x20] sm:$0xff] %v802_v4  ;;  %v824_v15 = vld [vmem:[%s5936_s10 + $0x78] sm:$0xff]  ;;  %v826_v16 = vld [vmem:[%s5936_s10 + $0x80] sm:$0xff]  ;;  %v828_v17 = vld [vmem:[%s5936_s10 + $0x88] sm:$0xff] }
  0x1a   : > { %805 = vst [vmem:[%s5941_s11 + $0x28] sm:$0xff] %v804_v5  ;;  %v830_v18 = vld [vmem:[%s5936_s10 + $0x90] sm:$0xff]  ;;  %v832_v19 = vld [vmem:[%s5936_s10 + $0x98] sm:$0xff]  ;;  %v834_v20 = vld [vmem:[%s5936_s10 + $0xa0] sm:$0xff] }
  0x1b   : > { %807 = vst [vmem:[%s5941_s11 + $0x30] sm:$0xff] %v806_v6  ;;  %v836_v21 = vld [vmem:[%s5936_s10 + $0xa8] sm:$0xff]  ;;  %v838_v22 = vld [vmem:[%s5936_s10 + $0xb0] sm:$0xff]  ;;  %v840_v23 = vld [vmem:[%s5936_s10 + $0xb8] sm:$0xff] }
  0x1c   : > { %809 = vst [vmem:[%s5941_s11 + $0x38] sm:$0xff] %v808_v7  ;;  %v842_v24 = vld [vmem:[%s5936_s10 + $0xc0] sm:$0xff]  ;;  %v844_v25 = vld [vmem:[%s5936_s10 + $0xc8] sm:$0xff]  ;;  %v846_v26 = vld [vmem:[%s5936_s10 + $0xd0] sm:$0xff] }
  0x1d   : > { %811 = vst [vmem:[%s5941_s11 + $0x40] sm:$0xff] %v810_v8  ;;  %v848_v27 = vld [vmem:[%s5936_s10 + $0xd8] sm:$0xff]  ;;  %v850_v28 = vld [vmem:[%s5936_s10 + $0xe0] sm:$0xff]  ;;  %v852_v29 = vld [vmem:[%s5936_s10 + $0xe8] sm:$0xff] }
  0x1e   : > { %813 = vst [vmem:[%s5941_s11 + $0x48] sm:$0xff] %v812_v9  ;;  %v854_v30 = vld [vmem:[%s5936_s10 + $0xf0] sm:$0xff]  ;;  %v856_v31 = vld [vmem:[%s5936_s10 + $0xf8] sm:$0xff]  ;;  %v858_v32 = vld [vmem:[%s5936_s10 + $0x200] sm:$0xff] }
  0x1f   : > { %815 = vst [vmem:[%s5941_s11 + $0x50] sm:$0xff] %v814_v10  ;;  %v860_v33 = vld [vmem:[%s5936_s10 + $0x208] sm:$0xff]  ;;  %v862_v34 = vld [vmem:[%s5936_s10 + $0x210] sm:$0xff]  ;;  %v864_v35 = vld [vmem:[%s5936_s10 + $0x218] sm:$0xff] }
  0x20   : > { %817 = vst [vmem:[%s5941_s11 + $0x58] sm:$0xff] %v816_v11  ;;  %v866_v36 = vld [vmem:[%s5936_s10 + $0x220] sm:$0xff]  ;;  %v868_v37 = vld [vmem:[%s5936_s10 + $0x228] sm:$0xff]  ;;  %v870_v38 = vld [vmem:[%s5936_s10 + $0x230] sm:$0xff] }
  0x21   : > { %819 = vst [vmem:[%s5941_s11 + $0x60] sm:$0xff] %v818_v12  ;;  %v872_v39 = vld [vmem:[%s5936_s10 + $0x238] sm:$0xff]  ;;  %v874_v40 = vld [vmem:[%s5936_s10 + $0x240] sm:$0xff]  ;;  %v876_v41 = vld [vmem:[%s5936_s10 + $0x248] sm:$0xff] }
  0x22   : > { %821 = vst [vmem:[%s5941_s11 + $0x68] sm:$0xff] %v820_v13  ;;  %v878_v42 = vld [vmem:[%s5936_s10 + $0x250] sm:$0xff]  ;;  %v880_v43 = vld [vmem:[%s5936_s10 + $0x258] sm:$0xff]  ;;  %v882_v44 = vld [vmem:[%s5936_s10 + $0x260] sm:$0xff] }
  0x23   : > { %823 = vst [vmem:[%s5941_s11 + $0x70] sm:$0xff] %v822_v14  ;;  %v884_v45 = vld [vmem:[%s5936_s10 + $0x268] sm:$0xff]  ;;  %v886_v46 = vld [vmem:[%s5936_s10 + $0x270] sm:$0xff]  ;;  %v888_v47 = vld [vmem:[%s5936_s10 + $0x278] sm:$0xff] }
  0x24   : > { %825 = vst [vmem:[%s5941_s11 + $0x78] sm:$0xff] %v824_v15  ;;  %v890_v48 = vld [vmem:[%s5936_s10 + $0x280] sm:$0xff]  ;;  %v892_v49 = vld [vmem:[%s5936_s10 + $0x288] sm:$0xff]  ;;  %v894_v50 = vld [vmem:[%s5936_s10 + $0x290] sm:$0xff] }
  0x25   : > { %827 = vst [vmem:[%s5941_s11 + $0x80] sm:$0xff] %v826_v16  ;;  %v896_v51 = vld [vmem:[%s5936_s10 + $0x298] sm:$0xff]  ;;  %v898_v52 = vld [vmem:[%s5936_s10 + $0x2a0] sm:$0xff]  ;;  %v900_v53 = vld [vmem:[%s5936_s10 + $0x2a8] sm:$0xff] }
  0x26   : > { %829 = vst [vmem:[%s5941_s11 + $0x88] sm:$0xff] %v828_v17  ;;  %v902_v54 = vld [vmem:[%s5936_s10 + $0x2b0] sm:$0xff]  ;;  %v904_v55 = vld [vmem:[%s5936_s10 + $0x2b8] sm:$0xff]  ;;  %v906_v56 = vld [vmem:[%s5936_s10 + $0x2c0] sm:$0xff] }
  0x27   : > { %831 = vst [vmem:[%s5941_s11 + $0x90] sm:$0xff] %v830_v18  ;;  %v908_v57 = vld [vmem:[%s5936_s10 + $0x2c8] sm:$0xff]  ;;  %v910_v58 = vld [vmem:[%s5936_s10 + $0x2d0] sm:$0xff]  ;;  %v912_v59 = vld [vmem:[%s5936_s10 + $0x2d8] sm:$0xff] }
  0x28   : > { %833 = vst [vmem:[%s5941_s11 + $0x98] sm:$0xff] %v832_v19  ;;  %v914_v60 = vld [vmem:[%s5936_s10 + $0x2e0] sm:$0xff]  ;;  %v916_v61 = vld [vmem:[%s5936_s10 + $0x2e8] sm:$0xff]  ;;  %v918_v62 = vld [vmem:[%s5936_s10 + $0x2f0] sm:$0xff] }
  0x29   : > { %835 = vst [vmem:[%s5941_s11 + $0xa0] sm:$0xff] %v834_v20  ;;  %v920_v63 = vld [vmem:[%s5936_s10 + $0x2f8] sm:$0xff]  ;;  %v922_v0 = vld [vmem:[%s5936_s10 + $0x400] sm:$0xff]  ;;  %v924_v1 = vld [vmem:[%s5936_s10 + $0x408] sm:$0xff] }
  0x2a   : > { %837 = vst [vmem:[%s5941_s11 + $0xa8] sm:$0xff] %v836_v21  ;;  %v926_v2 = vld [vmem:[%s5936_s10 + $0x410] sm:$0xff]  ;;  %v928_v3 = vld [vmem:[%s5936_s10 + $0x418] sm:$0xff]  ;;  %v930_v4 = vld [vmem:[%s5936_s10 + $0x420] sm:$0xff] }
  0x2b   : > { %839 = vst [vmem:[%s5941_s11 + $0xb0] sm:$0xff] %v838_v22  ;;  %v932_v5 = vld [vmem:[%s5936_s10 + $0x428] sm:$0xff]  ;;  %v934_v6 = vld [vmem:[%s5936_s10 + $0x430] sm:$0xff]  ;;  %v936_v7 = vld [vmem:[%s5936_s10 + $0x438] sm:$0xff] }
  0x2c   : > { %841 = vst [vmem:[%s5941_s11 + $0xb8] sm:$0xff] %v840_v23  ;;  %v938_v8 = vld [vmem:[%s5936_s10 + $0x440] sm:$0xff]  ;;  %v940_v9 = vld [vmem:[%s5936_s10 + $0x448] sm:$0xff]  ;;  %v942_v10 = vld [vmem:[%s5936_s10 + $0x450] sm:$0xff] }
  0x2d   : > { %843 = vst [vmem:[%s5941_s11 + $0xc0] sm:$0xff] %v842_v24  ;;  %v944_v11 = vld [vmem:[%s5936_s10 + $0x458] sm:$0xff]  ;;  %v946_v12 = vld [vmem:[%s5936_s10 + $0x460] sm:$0xff]  ;;  %v948_v13 = vld [vmem:[%s5936_s10 + $0x468] sm:$0xff] }
  0x2e   : > { %845 = vst [vmem:[%s5941_s11 + $0xc8] sm:$0xff] %v844_v25  ;;  %v950_v14 = vld [vmem:[%s5936_s10 + $0x470] sm:$0xff]  ;;  %v952_v15 = vld [vmem:[%s5936_s10 + $0x478] sm:$0xff]  ;;  %v954_v16 = vld [vmem:[%s5936_s10 + $0x480] sm:$0xff] }
  0x2f   : > { %847 = vst [vmem:[%s5941_s11 + $0xd0] sm:$0xff] %v846_v26  ;;  %v956_v17 = vld [vmem:[%s5936_s10 + $0x488] sm:$0xff]  ;;  %v958_v18 = vld [vmem:[%s5936_s10 + $0x490] sm:$0xff]  ;;  %v960_v19 = vld [vmem:[%s5936_s10 + $0x498] sm:$0xff] }
  0x30   : > { %849 = vst [vmem:[%s5941_s11 + $0xd8] sm:$0xff] %v848_v27  ;;  %v962_v20 = vld [vmem:[%s5936_s10 + $0x4a0] sm:$0xff]  ;;  %v964_v21 = vld [vmem:[%s5936_s10 + $0x4a8] sm:$0xff]  ;;  %v966_v22 = vld [vmem:[%s5936_s10 + $0x4b0] sm:$0xff] }
  0x31   : > { %851 = vst [vmem:[%s5941_s11 + $0xe0] sm:$0xff] %v850_v28  ;;  %v968_v23 = vld [vmem:[%s5936_s10 + $0x4b8] sm:$0xff]  ;;  %v970_v24 = vld [vmem:[%s5936_s10 + $0x4c0] sm:$0xff]  ;;  %v972_v25 = vld [vmem:[%s5936_s10 + $0x4c8] sm:$0xff] }
  0x32   : > { %853 = vst [vmem:[%s5941_s11 + $0xe8] sm:$0xff] %v852_v29  ;;  %v974_v26 = vld [vmem:[%s5936_s10 + $0x4d0] sm:$0xff]  ;;  %v976_v27 = vld [vmem:[%s5936_s10 + $0x4d8] sm:$0xff]  ;;  %v978_v28 = vld [vmem:[%s5936_s10 + $0x4e0] sm:$0xff] }
  0x33   : > { %855 = vst [vmem:[%s5941_s11 + $0xf0] sm:$0xff] %v854_v30  ;;  %v980_v29 = vld [vmem:[%s5936_s10 + $0x4e8] sm:$0xff]  ;;  %v982_v30 = vld [vmem:[%s5936_s10 + $0x4f0] sm:$0xff] }
  0x34   : > { %857 = vst [vmem:[%s5941_s11 + $0xf8] sm:$0xff] %v856_v31  ;;  %v984_v31 = vld [vmem:[%s5936_s10 + $0x4f8] sm:$0xff] }
  0x35   : > { %859 = vst [vmem:[%s5941_s11 + $0x100] sm:$0xff] %v858_v32  ;;  %v986_v32 = vld [vmem:[%s5936_s10 + $0x600] sm:$0xff] }
  0x36   : > { %861 = vst [vmem:[%s5941_s11 + $0x108] sm:$0xff] %v860_v33  ;;  %v988_v33 = vld [vmem:[%s5936_s10 + $0x608] sm:$0xff] }
  0x37   : > { %863 = vst [vmem:[%s5941_s11 + $0x110] sm:$0xff] %v862_v34  ;;  %v990_v34 = vld [vmem:[%s5936_s10 + $0x610] sm:$0xff] }
  0x38   : > { %865 = vst [vmem:[%s5941_s11 + $0x118] sm:$0xff] %v864_v35  ;;  %v992_v35 = vld [vmem:[%s5936_s10 + $0x618] sm:$0xff] }
  0x39   : > { %867 = vst [vmem:[%s5941_s11 + $0x120] sm:$0xff] %v866_v36  ;;  %v994_v36 = vld [vmem:[%s5936_s10 + $0x620] sm:$0xff] }
  0x3a   : > { %869 = vst [vmem:[%s5941_s11 + $0x128] sm:$0xff] %v868_v37  ;;  %v996_v37 = vld [vmem:[%s5936_s10 + $0x628] sm:$0xff] }
  0x3b   : > { %871 = vst [vmem:[%s5941_s11 + $0x130] sm:$0xff] %v870_v38  ;;  %v998_v38 = vld [vmem:[%s5936_s10 + $0x630] sm:$0xff] }
  0x3c   : > { %873 = vst [vmem:[%s5941_s11 + $0x138] sm:$0xff] %v872_v39  ;;  %v1000_v39 = vld [vmem:[%s5936_s10 + $0x638] sm:$0xff] }
  0x3d   : > { %875 = vst [vmem:[%s5941_s11 + $0x140] sm:$0xff] %v874_v40  ;;  %v1002_v40 = vld [vmem:[%s5936_s10 + $0x640] sm:$0xff] }
  0x3e   : > { %877 = vst [vmem:[%s5941_s11 + $0x148] sm:$0xff] %v876_v41  ;;  %v1004_v41 = vld [vmem:[%s5936_s10 + $0x648] sm:$0xff] }
  0x3f   : > { %879 = vst [vmem:[%s5941_s11 + $0x150] sm:$0xff] %v878_v42  ;;  %v1006_v42 = vld [vmem:[%s5936_s10 + $0x650] sm:$0xff] }
  0x40   : > { %881 = vst [vmem:[%s5941_s11 + $0x158] sm:$0xff] %v880_v43  ;;  %v1008_v43 = vld [vmem:[%s5936_s10 + $0x658] sm:$0xff] }
  0x41   : > { %883 = vst [vmem:[%s5941_s11 + $0x160] sm:$0xff] %v882_v44  ;;  %v1010_v44 = vld [vmem:[%s5936_s10 + $0x660] sm:$0xff] }
  0x42   : > { %885 = vst [vmem:[%s5941_s11 + $0x168] sm:$0xff] %v884_v45  ;;  %v1012_v45 = vld [vmem:[%s5936_s10 + $0x668] sm:$0xff] }
  0x43   : > { %887 = vst [vmem:[%s5941_s11 + $0x170] sm:$0xff] %v886_v46  ;;  %v1014_v46 = vld [vmem:[%s5936_s10 + $0x670] sm:$0xff] }
  0x44   : > { %889 = vst [vmem:[%s5941_s11 + $0x178] sm:$0xff] %v888_v47  ;;  %v1016_v47 = vld [vmem:[%s5936_s10 + $0x678] sm:$0xff] }
  0x45   : > { %891 = vst [vmem:[%s5941_s11 + $0x180] sm:$0xff] %v890_v48  ;;  %v1018_v48 = vld [vmem:[%s5936_s10 + $0x680] sm:$0xff] }
  0x46   : > { %893 = vst [vmem:[%s5941_s11 + $0x188] sm:$0xff] %v892_v49  ;;  %v1020_v49 = vld [vmem:[%s5936_s10 + $0x688] sm:$0xff] }
  0x47   : > { %895 = vst [vmem:[%s5941_s11 + $0x190] sm:$0xff] %v894_v50  ;;  %v1022_v50 = vld [vmem:[%s5936_s10 + $0x690] sm:$0xff] }
  0x48   : > { %897 = vst [vmem:[%s5941_s11 + $0x198] sm:$0xff] %v896_v51  ;;  %v1024_v51 = vld [vmem:[%s5936_s10 + $0x698] sm:$0xff] }
  0x49   : > { %899 = vst [vmem:[%s5941_s11 + $0x1a0] sm:$0xff] %v898_v52  ;;  %v1026_v52 = vld [vmem:[%s5936_s10 + $0x6a0] sm:$0xff] }
  0x4a   : > { %901 = vst [vmem:[%s5941_s11 + $0x1a8] sm:$0xff] %v900_v53  ;;  %v1028_v53 = vld [vmem:[%s5936_s10 + $0x6a8] sm:$0xff] }
  0x4b   : > { %903 = vst [vmem:[%s5941_s11 + $0x1b0] sm:$0xff] %v902_v54  ;;  %v1030_v54 = vld [vmem:[%s5936_s10 + $0x6b0] sm:$0xff] }
  0x4c   : > { %905 = vst [vmem:[%s5941_s11 + $0x1b8] sm:$0xff] %v904_v55  ;;  %v1032_v55 = vld [vmem:[%s5936_s10 + $0x6b8] sm:$0xff] }
  0x4d   : > { %907 = vst [vmem:[%s5941_s11 + $0x1c0] sm:$0xff] %v906_v56  ;;  %v1034_v56 = vld [vmem:[%s5936_s10 + $0x6c0] sm:$0xff] }
  0x4e   : > { %909 = vst [vmem:[%s5941_s11 + $0x1c8] sm:$0xff] %v908_v57  ;;  %v1036_v57 = vld [vmem:[%s5936_s10 + $0x6c8] sm:$0xff] }
  0x4f   : > { %911 = vst [vmem:[%s5941_s11 + $0x1d0] sm:$0xff] %v910_v58  ;;  %v1038_v58 = vld [vmem:[%s5936_s10 + $0x6d0] sm:$0xff] }
  0x50   : > { %913 = vst [vmem:[%s5941_s11 + $0x1d8] sm:$0xff] %v912_v59  ;;  %v1040_v59 = vld [vmem:[%s5936_s10 + $0x6d8] sm:$0xff] }
  0x51   : > { %915 = vst [vmem:[%s5941_s11 + $0x1e0] sm:$0xff] %v914_v60  ;;  %v1042_v60 = vld [vmem:[%s5936_s10 + $0x6e0] sm:$0xff] }
  0x52   : > { %917 = vst [vmem:[%s5941_s11 + $0x1e8] sm:$0xff] %v916_v61  ;;  %v1044_v61 = vld [vmem:[%s5936_s10 + $0x6e8] sm:$0xff] }
  0x53   : > { %919 = vst [vmem:[%s5941_s11 + $0x1f0] sm:$0xff] %v918_v62  ;;  %v1046_v62 = vld [vmem:[%s5936_s10 + $0x6f0] sm:$0xff] }
  0x54   : > { %921 = vst [vmem:[%s5941_s11 + $0x1f8] sm:$0xff] %v920_v63  ;;  %v1048_v63 = vld [vmem:[%s5936_s10 + $0x6f8] sm:$0xff] }
  0x55   : > { %923 = vst [vmem:[%s5941_s11 + $0x200] sm:$0xff] %v922_v0  ;;  %v1050_v0 = vld [vmem:[%s5936_s10 + $0x800] sm:$0xff] }
  0x56   : > { %925 = vst [vmem:[%s5941_s11 + $0x208] sm:$0xff] %v924_v1  ;;  %v1052_v1 = vld [vmem:[%s5936_s10 + $0x808] sm:$0xff] }
  0x57   : > { %927 = vst [vmem:[%s5941_s11 + $0x210] sm:$0xff] %v926_v2  ;;  %v1054_v2 = vld [vmem:[%s5936_s10 + $0x810] sm:$0xff] }
  0x58   : > { %929 = vst [vmem:[%s5941_s11 + $0x218] sm:$0xff] %v928_v3  ;;  %v1056_v3 = vld [vmem:[%s5936_s10 + $0x818] sm:$0xff] }
  0x59   : > { %931 = vst [vmem:[%s5941_s11 + $0x220] sm:$0xff] %v930_v4  ;;  %v1058_v4 = vld [vmem:[%s5936_s10 + $0x820] sm:$0xff] }
  0x5a   : > { %933 = vst [vmem:[%s5941_s11 + $0x228] sm:$0xff] %v932_v5  ;;  %v1060_v5 = vld [vmem:[%s5936_s10 + $0x828] sm:$0xff] }
  0x5b   : > { %935 = vst [vmem:[%s5941_s11 + $0x230] sm:$0xff] %v934_v6  ;;  %v1062_v6 = vld [vmem:[%s5936_s10 + $0x830] sm:$0xff] }
  0x5c   : > { %937 = vst [vmem:[%s5941_s11 + $0x238] sm:$0xff] %v936_v7  ;;  %v1064_v7 = vld [vmem:[%s5936_s10 + $0x838] sm:$0xff] }
  0x5d   : > { %939 = vst [vmem:[%s5941_s11 + $0x240] sm:$0xff] %v938_v8  ;;  %v1066_v8 = vld [vmem:[%s5936_s10 + $0x840] sm:$0xff] }
  0x5e   : > { %941 = vst [vmem:[%s5941_s11 + $0x248] sm:$0xff] %v940_v9  ;;  %v1068_v9 = vld [vmem:[%s5936_s10 + $0x848] sm:$0xff] }
  0x5f   : > { %943 = vst [vmem:[%s5941_s11 + $0x250] sm:$0xff] %v942_v10  ;;  %v1070_v10 = vld [vmem:[%s5936_s10 + $0x850] sm:$0xff] }
  0x60   : > { %945 = vst [vmem:[%s5941_s11 + $0x258] sm:$0xff] %v944_v11  ;;  %v1072_v11 = vld [vmem:[%s5936_s10 + $0x858] sm:$0xff] }
  0x61   : > { %947 = vst [vmem:[%s5941_s11 + $0x260] sm:$0xff] %v946_v12  ;;  %v1074_v12 = vld [vmem:[%s5936_s10 + $0x860] sm:$0xff] }
  0x62   : > { %949 = vst [vmem:[%s5941_s11 + $0x268] sm:$0xff] %v948_v13  ;;  %v1076_v13 = vld [vmem:[%s5936_s10 + $0x868] sm:$0xff] }
  0x63   : > { %951 = vst [vmem:[%s5941_s11 + $0x270] sm:$0xff] %v950_v14  ;;  %v1078_v14 = vld [vmem:[%s5936_s10 + $0x870] sm:$0xff] }
  0x64   : > { %953 = vst [vmem:[%s5941_s11 + $0x278] sm:$0xff] %v952_v15  ;;  %v1080_v15 = vld [vmem:[%s5936_s10 + $0x878] sm:$0xff] }
  0x65   : > { %955 = vst [vmem:[%s5941_s11 + $0x280] sm:$0xff] %v954_v16  ;;  %v1082_v16 = vld [vmem:[%s5936_s10 + $0x880] sm:$0xff] }
  0x66   : > { %957 = vst [vmem:[%s5941_s11 + $0x288] sm:$0xff] %v956_v17  ;;  %v1084_v17 = vld [vmem:[%s5936_s10 + $0x888] sm:$0xff] }
  0x67   : > { %959 = vst [vmem:[%s5941_s11 + $0x290] sm:$0xff] %v958_v18  ;;  %v1086_v18 = vld [vmem:[%s5936_s10 + $0x890] sm:$0xff] }
  0x68   : > { %961 = vst [vmem:[%s5941_s11 + $0x298] sm:$0xff] %v960_v19  ;;  %v1088_v19 = vld [vmem:[%s5936_s10 + $0x898] sm:$0xff] }
  0x69   : > { %963 = vst [vmem:[%s5941_s11 + $0x2a0] sm:$0xff] %v962_v20  ;;  %v1090_v20 = vld [vmem:[%s5936_s10 + $0x8a0] sm:$0xff] }
  0x6a   : > { %965 = vst [vmem:[%s5941_s11 + $0x2a8] sm:$0xff] %v964_v21  ;;  %v1092_v21 = vld [vmem:[%s5936_s10 + $0x8a8] sm:$0xff] }
  0x6b   : > { %967 = vst [vmem:[%s5941_s11 + $0x2b0] sm:$0xff] %v966_v22  ;;  %v1094_v22 = vld [vmem:[%s5936_s10 + $0x8b0] sm:$0xff] }
  0x6c   : > { %969 = vst [vmem:[%s5941_s11 + $0x2b8] sm:$0xff] %v968_v23  ;;  %v1096_v23 = vld [vmem:[%s5936_s10 + $0x8b8] sm:$0xff] }
  0x6d   : > { %971 = vst [vmem:[%s5941_s11 + $0x2c0] sm:$0xff] %v970_v24  ;;  %v1098_v24 = vld [vmem:[%s5936_s10 + $0x8c0] sm:$0xff] }
  0x6e   : > { %973 = vst [vmem:[%s5941_s11 + $0x2c8] sm:$0xff] %v972_v25  ;;  %v1100_v25 = vld [vmem:[%s5936_s10 + $0x8c8] sm:$0xff] }
  0x6f   : > { %975 = vst [vmem:[%s5941_s11 + $0x2d0] sm:$0xff] %v974_v26  ;;  %v1102_v26 = vld [vmem:[%s5936_s10 + $0x8d0] sm:$0xff] }
  0x70   : > { %977 = vst [vmem:[%s5941_s11 + $0x2d8] sm:$0xff] %v976_v27  ;;  %v1104_v27 = vld [vmem:[%s5936_s10 + $0x8d8] sm:$0xff] }
  0x71   : > { %979 = vst [vmem:[%s5941_s11 + $0x2e0] sm:$0xff] %v978_v28  ;;  %v1106_v28 = vld [vmem:[%s5936_s10 + $0x8e0] sm:$0xff] }
  0x72   : > { %981 = vst [vmem:[%s5941_s11 + $0x2e8] sm:$0xff] %v980_v29  ;;  %v1108_v29 = vld [vmem:[%s5936_s10 + $0x8e8] sm:$0xff] }
  0x73   : > { %983 = vst [vmem:[%s5941_s11 + $0x2f0] sm:$0xff] %v982_v30  ;;  %v1110_v30 = vld [vmem:[%s5936_s10 + $0x8f0] sm:$0xff] }
  0x74   : > { %985 = vst [vmem:[%s5941_s11 + $0x2f8] sm:$0xff] %v984_v31  ;;  %v1112_v31 = vld [vmem:[%s5936_s10 + $0x8f8] sm:$0xff] }
  0x75   : > { %987 = vst [vmem:[%s5941_s11 + $0x300] sm:$0xff] %v986_v32  ;;  %v1114_v32 = vld [vmem:[%s5936_s10 + $0xa00] sm:$0xff] }
  0x76   : > { %989 = vst [vmem:[%s5941_s11 + $0x308] sm:$0xff] %v988_v33  ;;  %v1116_v33 = vld [vmem:[%s5936_s10 + $0xa08] sm:$0xff] }
  0x77   : > { %991 = vst [vmem:[%s5941_s11 + $0x310] sm:$0xff] %v990_v34  ;;  %v1118_v34 = vld [vmem:[%s5936_s10 + $0xa10] sm:$0xff] }
  0x78   : > { %993 = vst [vmem:[%s5941_s11 + $0x318] sm:$0xff] %v992_v35  ;;  %v1120_v35 = vld [vmem:[%s5936_s10 + $0xa18] sm:$0xff] }
  0x79   : > { %995 = vst [vmem:[%s5941_s11 + $0x320] sm:$0xff] %v994_v36  ;;  %v1122_v36 = vld [vmem:[%s5936_s10 + $0xa20] sm:$0xff] }
  0x7a   : > { %997 = vst [vmem:[%s5941_s11 + $0x328] sm:$0xff] %v996_v37  ;;  %v1124_v37 = vld [vmem:[%s5936_s10 + $0xa28] sm:$0xff] }
  0x7b   : > { %999 = vst [vmem:[%s5941_s11 + $0x330] sm:$0xff] %v998_v38  ;;  %v1126_v38 = vld [vmem:[%s5936_s10 + $0xa30] sm:$0xff] }
  0x7c   : > { %1001 = vst [vmem:[%s5941_s11 + $0x338] sm:$0xff] %v1000_v39  ;;  %v1128_v39 = vld [vmem:[%s5936_s10 + $0xa38] sm:$0xff] }
  0x7d   : > { %1003 = vst [vmem:[%s5941_s11 + $0x340] sm:$0xff] %v1002_v40  ;;  %v1130_v40 = vld [vmem:[%s5936_s10 + $0xa40] sm:$0xff] }
  0x7e   : > { %1005 = vst [vmem:[%s5941_s11 + $0x348] sm:$0xff] %v1004_v41  ;;  %v1132_v41 = vld [vmem:[%s5936_s10 + $0xa48] sm:$0xff] }
  0x7f   : > { %1007 = vst [vmem:[%s5941_s11 + $0x350] sm:$0xff] %v1006_v42  ;;  %v1134_v42 = vld [vmem:[%s5936_s10 + $0xa50] sm:$0xff] }
  0x80   : > { %1009 = vst [vmem:[%s5941_s11 + $0x358] sm:$0xff] %v1008_v43  ;;  %v1136_v43 = vld [vmem:[%s5936_s10 + $0xa58] sm:$0xff] }
  0x81   : > { %1011 = vst [vmem:[%s5941_s11 + $0x360] sm:$0xff] %v1010_v44  ;;  %v1138_v44 = vld [vmem:[%s5936_s10 + $0xa60] sm:$0xff] }
  0x82   : > { %1013 = vst [vmem:[%s5941_s11 + $0x368] sm:$0xff] %v1012_v45  ;;  %v1140_v45 = vld [vmem:[%s5936_s10 + $0xa68] sm:$0xff] }
  0x83   : > { %1015 = vst [vmem:[%s5941_s11 + $0x370] sm:$0xff] %v1014_v46  ;;  %v1142_v46 = vld [vmem:[%s5936_s10 + $0xa70] sm:$0xff] }
  0x84   : > { %1017 = vst [vmem:[%s5941_s11 + $0x378] sm:$0xff] %v1016_v47  ;;  %v1144_v47 = vld [vmem:[%s5936_s10 + $0xa78] sm:$0xff] }
  0x85   : > { %1019 = vst [vmem:[%s5941_s11 + $0x380] sm:$0xff] %v1018_v48  ;;  %v1146_v48 = vld [vmem:[%s5936_s10 + $0xa80] sm:$0xff] }
  0x86   : > { %1021 = vst [vmem:[%s5941_s11 + $0x388] sm:$0xff] %v1020_v49  ;;  %v1148_v49 = vld [vmem:[%s5936_s10 + $0xa88] sm:$0xff] }
  0x87   : > { %1023 = vst [vmem:[%s5941_s11 + $0x390] sm:$0xff] %v1022_v50  ;;  %v1150_v50 = vld [vmem:[%s5936_s10 + $0xa90] sm:$0xff] }
  0x88   : > { %1025 = vst [vmem:[%s5941_s11 + $0x398] sm:$0xff] %v1024_v51  ;;  %v1152_v51 = vld [vmem:[%s5936_s10 + $0xa98] sm:$0xff] }
  0x89   : > { %1027 = vst [vmem:[%s5941_s11 + $0x3a0] sm:$0xff] %v1026_v52  ;;  %v1154_v52 = vld [vmem:[%s5936_s10 + $0xaa0] sm:$0xff] }
  0x8a   : > { %1029 = vst [vmem:[%s5941_s11 + $0x3a8] sm:$0xff] %v1028_v53  ;;  %v1156_v53 = vld [vmem:[%s5936_s10 + $0xaa8] sm:$0xff] }
  0x8b   : > { %1031 = vst [vmem:[%s5941_s11 + $0x3b0] sm:$0xff] %v1030_v54  ;;  %v1158_v54 = vld [vmem:[%s5936_s10 + $0xab0] sm:$0xff] }
  0x8c   : > { %1033 = vst [vmem:[%s5941_s11 + $0x3b8] sm:$0xff] %v1032_v55  ;;  %v1160_v55 = vld [vmem:[%s5936_s10 + $0xab8] sm:$0xff] }
  0x8d   : > { %1035 = vst [vmem:[%s5941_s11 + $0x3c0] sm:$0xff] %v1034_v56  ;;  %v1162_v56 = vld [vmem:[%s5936_s10 + $0xac0] sm:$0xff] }
  0x8e   : > { %1037 = vst [vmem:[%s5941_s11 + $0x3c8] sm:$0xff] %v1036_v57  ;;  %v1164_v57 = vld [vmem:[%s5936_s10 + $0xac8] sm:$0xff] }
  0x8f   : > { %1039 = vst [vmem:[%s5941_s11 + $0x3d0] sm:$0xff] %v1038_v58  ;;  %v1166_v58 = vld [vmem:[%s5936_s10 + $0xad0] sm:$0xff] }
  0x90   : > { %1041 = vst [vmem:[%s5941_s11 + $0x3d8] sm:$0xff] %v1040_v59  ;;  %v1168_v59 = vld [vmem:[%s5936_s10 + $0xad8] sm:$0xff] }
  0x91   : > { %1043 = vst [vmem:[%s5941_s11 + $0x3e0] sm:$0xff] %v1042_v60  ;;  %v1170_v60 = vld [vmem:[%s5936_s10 + $0xae0] sm:$0xff] }
  0x92   : > { %1045 = vst [vmem:[%s5941_s11 + $0x3e8] sm:$0xff] %v1044_v61  ;;  %v1172_v61 = vld [vmem:[%s5936_s10 + $0xae8] sm:$0xff] }
  0x93   : > { %1047 = vst [vmem:[%s5941_s11 + $0x3f0] sm:$0xff] %v1046_v62  ;;  %v1174_v62 = vld [vmem:[%s5936_s10 + $0xaf0] sm:$0xff] }
  0x94   : > { %1049 = vst [vmem:[%s5941_s11 + $0x3f8] sm:$0xff] %v1048_v63  ;;  %v1176_v63 = vld [vmem:[%s5936_s10 + $0xaf8] sm:$0xff] }
  0x95   : > { %1051 = vst [vmem:[%s5941_s11 + $0x400] sm:$0xff] %v1050_v0  ;;  %v1178_v0 = vld [vmem:[%s5936_s10 + $0xc00] sm:$0xff] }
  0x96   : > { %1053 = vst [vmem:[%s5941_s11 + $0x408] sm:$0xff] %v1052_v1  ;;  %v1180_v1 = vld [vmem:[%s5936_s10 + $0xc08] sm:$0xff] }
  0x97   : > { %1055 = vst [vmem:[%s5941_s11 + $0x410] sm:$0xff] %v1054_v2  ;;  %v1182_v2 = vld [vmem:[%s5936_s10 + $0xc10] sm:$0xff] }
  0x98   : > { %1057 = vst [vmem:[%s5941_s11 + $0x418] sm:$0xff] %v1056_v3  ;;  %v1184_v3 = vld [vmem:[%s5936_s10 + $0xc18] sm:$0xff] }
  0x99   : > { %1059 = vst [vmem:[%s5941_s11 + $0x420] sm:$0xff] %v1058_v4  ;;  %v1186_v4 = vld [vmem:[%s5936_s10 + $0xc20] sm:$0xff] }
  0x9a   : > { %1061 = vst [vmem:[%s5941_s11 + $0x428] sm:$0xff] %v1060_v5  ;;  %v1188_v5 = vld [vmem:[%s5936_s10 + $0xc28] sm:$0xff] }
  0x9b   : > { %1063 = vst [vmem:[%s5941_s11 + $0x430] sm:$0xff] %v1062_v6  ;;  %v1190_v6 = vld [vmem:[%s5936_s10 + $0xc30] sm:$0xff] }
  0x9c   : > { %1065 = vst [vmem:[%s5941_s11 + $0x438] sm:$0xff] %v1064_v7  ;;  %v1192_v7 = vld [vmem:[%s5936_s10 + $0xc38] sm:$0xff] }
  0x9d   : > { %1067 = vst [vmem:[%s5941_s11 + $0x440] sm:$0xff] %v1066_v8  ;;  %v1194_v8 = vld [vmem:[%s5936_s10 + $0xc40] sm:$0xff] }
  0x9e   : > { %1069 = vst [vmem:[%s5941_s11 + $0x448] sm:$0xff] %v1068_v9  ;;  %v1196_v9 = vld [vmem:[%s5936_s10 + $0xc48] sm:$0xff] }
  0x9f   : > { %1071 = vst [vmem:[%s5941_s11 + $0x450] sm:$0xff] %v1070_v10  ;;  %v1198_v10 = vld [vmem:[%s5936_s10 + $0xc50] sm:$0xff] }
  0xa0   : > { %1073 = vst [vmem:[%s5941_s11 + $0x458] sm:$0xff] %v1072_v11  ;;  %v1200_v11 = vld [vmem:[%s5936_s10 + $0xc58] sm:$0xff] }
  0xa1   : > { %1075 = vst [vmem:[%s5941_s11 + $0x460] sm:$0xff] %v1074_v12  ;;  %v1202_v12 = vld [vmem:[%s5936_s10 + $0xc60] sm:$0xff] }
  0xa2   : > { %1077 = vst [vmem:[%s5941_s11 + $0x468] sm:$0xff] %v1076_v13  ;;  %v1204_v13 = vld [vmem:[%s5936_s10 + $0xc68] sm:$0xff] }
  0xa3   : > { %1079 = vst [vmem:[%s5941_s11 + $0x470] sm:$0xff] %v1078_v14  ;;  %v1206_v14 = vld [vmem:[%s5936_s10 + $0xc70] sm:$0xff] }
  0xa4   : > { %1081 = vst [vmem:[%s5941_s11 + $0x478] sm:$0xff] %v1080_v15  ;;  %v1208_v15 = vld [vmem:[%s5936_s10 + $0xc78] sm:$0xff] }
  0xa5   : > { %1083 = vst [vmem:[%s5941_s11 + $0x480] sm:$0xff] %v1082_v16  ;;  %v1210_v16 = vld [vmem:[%s5936_s10 + $0xc80] sm:$0xff] }
  0xa6   : > { %1085 = vst [vmem:[%s5941_s11 + $0x488] sm:$0xff] %v1084_v17  ;;  %v1212_v17 = vld [vmem:[%s5936_s10 + $0xc88] sm:$0xff] }
  0xa7   : > { %1087 = vst [vmem:[%s5941_s11 + $0x490] sm:$0xff] %v1086_v18  ;;  %v1214_v18 = vld [vmem:[%s5936_s10 + $0xc90] sm:$0xff] }
  0xa8   : > { %1089 = vst [vmem:[%s5941_s11 + $0x498] sm:$0xff] %v1088_v19  ;;  %v1216_v19 = vld [vmem:[%s5936_s10 + $0xc98] sm:$0xff] }
  0xa9   : > { %1091 = vst [vmem:[%s5941_s11 + $0x4a0] sm:$0xff] %v1090_v20  ;;  %v1218_v20 = vld [vmem:[%s5936_s10 + $0xca0] sm:$0xff] }
  0xaa   : > { %1093 = vst [vmem:[%s5941_s11 + $0x4a8] sm:$0xff] %v1092_v21  ;;  %v1220_v21 = vld [vmem:[%s5936_s10 + $0xca8] sm:$0xff] }
  0xab   : > { %1095 = vst [vmem:[%s5941_s11 + $0x4b0] sm:$0xff] %v1094_v22  ;;  %v1222_v22 = vld [vmem:[%s5936_s10 + $0xcb0] sm:$0xff] }
  0xac   : > { %1097 = vst [vmem:[%s5941_s11 + $0x4b8] sm:$0xff] %v1096_v23  ;;  %v1224_v23 = vld [vmem:[%s5936_s10 + $0xcb8] sm:$0xff] }
  0xad   : > { %1099 = vst [vmem:[%s5941_s11 + $0x4c0] sm:$0xff] %v1098_v24  ;;  %v1226_v24 = vld [vmem:[%s5936_s10 + $0xcc0] sm:$0xff] }
  0xae   : > { %1101 = vst [vmem:[%s5941_s11 + $0x4c8] sm:$0xff] %v1100_v25  ;;  %v1228_v25 = vld [vmem:[%s5936_s10 + $0xcc8] sm:$0xff] }
  0xaf   : > { %1103 = vst [vmem:[%s5941_s11 + $0x4d0] sm:$0xff] %v1102_v26  ;;  %v1230_v26 = vld [vmem:[%s5936_s10 + $0xcd0] sm:$0xff] }
  0xb0   : > { %1105 = vst [vmem:[%s5941_s11 + $0x4d8] sm:$0xff] %v1104_v27  ;;  %v1232_v27 = vld [vmem:[%s5936_s10 + $0xcd8] sm:$0xff] }
  0xb1   : > { %1107 = vst [vmem:[%s5941_s11 + $0x4e0] sm:$0xff] %v1106_v28  ;;  %v1234_v28 = vld [vmem:[%s5936_s10 + $0xce0] sm:$0xff] }
  0xb2   : > { %1109 = vst [vmem:[%s5941_s11 + $0x4e8] sm:$0xff] %v1108_v29  ;;  %v1236_v29 = vld [vmem:[%s5936_s10 + $0xce8] sm:$0xff] }
  0xb3   : > { %1111 = vst [vmem:[%s5941_s11 + $0x4f0] sm:$0xff] %v1110_v30  ;;  %v1238_v30 = vld [vmem:[%s5936_s10 + $0xcf0] sm:$0xff] }
  0xb4   : > { %1113 = vst [vmem:[%s5941_s11 + $0x4f8] sm:$0xff] %v1112_v31  ;;  %v1240_v31 = vld [vmem:[%s5936_s10 + $0xcf8] sm:$0xff] }
  0xb5   : > { %1115 = vst [vmem:[%s5941_s11 + $0x500] sm:$0xff] %v1114_v32  ;;  %v1242_v32 = vld [vmem:[%s5936_s10 + $0xe00] sm:$0xff] }
  0xb6   : > { %1117 = vst [vmem:[%s5941_s11 + $0x508] sm:$0xff] %v1116_v33  ;;  %v1244_v33 = vld [vmem:[%s5936_s10 + $0xe08] sm:$0xff] }
  0xb7   : > { %1119 = vst [vmem:[%s5941_s11 + $0x510] sm:$0xff] %v1118_v34  ;;  %v1246_v34 = vld [vmem:[%s5936_s10 + $0xe10] sm:$0xff] }
  0xb8   : > { %1121 = vst [vmem:[%s5941_s11 + $0x518] sm:$0xff] %v1120_v35  ;;  %v1248_v35 = vld [vmem:[%s5936_s10 + $0xe18] sm:$0xff] }
  0xb9   : > { %1123 = vst [vmem:[%s5941_s11 + $0x520] sm:$0xff] %v1122_v36  ;;  %v1250_v36 = vld [vmem:[%s5936_s10 + $0xe20] sm:$0xff] }
  0xba   : > { %1125 = vst [vmem:[%s5941_s11 + $0x528] sm:$0xff] %v1124_v37  ;;  %v1252_v37 = vld [vmem:[%s5936_s10 + $0xe28] sm:$0xff] }
  0xbb   : > { %1127 = vst [vmem:[%s5941_s11 + $0x530] sm:$0xff] %v1126_v38  ;;  %v1254_v38 = vld [vmem:[%s5936_s10 + $0xe30] sm:$0xff] }
  0xbc   : > { %1129 = vst [vmem:[%s5941_s11 + $0x538] sm:$0xff] %v1128_v39  ;;  %v1256_v39 = vld [vmem:[%s5936_s10 + $0xe38] sm:$0xff] }
  0xbd   : > { %1131 = vst [vmem:[%s5941_s11 + $0x540] sm:$0xff] %v1130_v40  ;;  %v1258_v40 = vld [vmem:[%s5936_s10 + $0xe40] sm:$0xff] }
  0xbe   : > { %1133 = vst [vmem:[%s5941_s11 + $0x548] sm:$0xff] %v1132_v41  ;;  %v1260_v41 = vld [vmem:[%s5936_s10 + $0xe48] sm:$0xff] }
  0xbf   : > { %1135 = vst [vmem:[%s5941_s11 + $0x550] sm:$0xff] %v1134_v42  ;;  %v1262_v42 = vld [vmem:[%s5936_s10 + $0xe50] sm:$0xff] }
  0xc0   : > { %1137 = vst [vmem:[%s5941_s11 + $0x558] sm:$0xff] %v1136_v43  ;;  %v1264_v43 = vld [vmem:[%s5936_s10 + $0xe58] sm:$0xff] }
  0xc1   : > { %1139 = vst [vmem:[%s5941_s11 + $0x560] sm:$0xff] %v1138_v44  ;;  %v1266_v44 = vld [vmem:[%s5936_s10 + $0xe60] sm:$0xff] }
  0xc2   : > { %1141 = vst [vmem:[%s5941_s11 + $0x568] sm:$0xff] %v1140_v45  ;;  %v1268_v45 = vld [vmem:[%s5936_s10 + $0xe68] sm:$0xff] }
  0xc3   : > { %1143 = vst [vmem:[%s5941_s11 + $0x570] sm:$0xff] %v1142_v46  ;;  %v1270_v46 = vld [vmem:[%s5936_s10 + $0xe70] sm:$0xff] }
  0xc4   : > { %1145 = vst [vmem:[%s5941_s11 + $0x578] sm:$0xff] %v1144_v47  ;;  %v1272_v47 = vld [vmem:[%s5936_s10 + $0xe78] sm:$0xff] }
  0xc5   : > { %1147 = vst [vmem:[%s5941_s11 + $0x580] sm:$0xff] %v1146_v48  ;;  %v1274_v48 = vld [vmem:[%s5936_s10 + $0xe80] sm:$0xff] }
  0xc6   : > { %1149 = vst [vmem:[%s5941_s11 + $0x588] sm:$0xff] %v1148_v49  ;;  %v1276_v49 = vld [vmem:[%s5936_s10 + $0xe88] sm:$0xff] }
  0xc7   : > { %1151 = vst [vmem:[%s5941_s11 + $0x590] sm:$0xff] %v1150_v50  ;;  %v1278_v50 = vld [vmem:[%s5936_s10 + $0xe90] sm:$0xff] }
  0xc8   : > { %1153 = vst [vmem:[%s5941_s11 + $0x598] sm:$0xff] %v1152_v51  ;;  %v1280_v51 = vld [vmem:[%s5936_s10 + $0xe98] sm:$0xff] }
  0xc9   : > { %1155 = vst [vmem:[%s5941_s11 + $0x5a0] sm:$0xff] %v1154_v52  ;;  %v1282_v52 = vld [vmem:[%s5936_s10 + $0xea0] sm:$0xff] }
  0xca   : > { %1157 = vst [vmem:[%s5941_s11 + $0x5a8] sm:$0xff] %v1156_v53  ;;  %v1284_v53 = vld [vmem:[%s5936_s10 + $0xea8] sm:$0xff] }
  0xcb   : > { %1159 = vst [vmem:[%s5941_s11 + $0x5b0] sm:$0xff] %v1158_v54  ;;  %v1286_v54 = vld [vmem:[%s5936_s10 + $0xeb0] sm:$0xff] }
  0xcc   : > { %1161 = vst [vmem:[%s5941_s11 + $0x5b8] sm:$0xff] %v1160_v55  ;;  %v1288_v55 = vld [vmem:[%s5936_s10 + $0xeb8] sm:$0xff] }
  0xcd   : > { %1163 = vst [vmem:[%s5941_s11 + $0x5c0] sm:$0xff] %v1162_v56  ;;  %v1290_v56 = vld [vmem:[%s5936_s10 + $0xec0] sm:$0xff] }
  0xce   : > { %1165 = vst [vmem:[%s5941_s11 + $0x5c8] sm:$0xff] %v1164_v57  ;;  %v1292_v57 = vld [vmem:[%s5936_s10 + $0xec8] sm:$0xff] }
  0xcf   : > { %1167 = vst [vmem:[%s5941_s11 + $0x5d0] sm:$0xff] %v1166_v58  ;;  %v1294_v58 = vld [vmem:[%s5936_s10 + $0xed0] sm:$0xff] }
  0xd0   : > { %1169 = vst [vmem:[%s5941_s11 + $0x5d8] sm:$0xff] %v1168_v59  ;;  %v1296_v59 = vld [vmem:[%s5936_s10 + $0xed8] sm:$0xff] }
  0xd1   : > { %1171 = vst [vmem:[%s5941_s11 + $0x5e0] sm:$0xff] %v1170_v60  ;;  %v1298_v60 = vld [vmem:[%s5936_s10 + $0xee0] sm:$0xff] }
  0xd2   : > { %1173 = vst [vmem:[%s5941_s11 + $0x5e8] sm:$0xff] %v1172_v61  ;;  %v1300_v61 = vld [vmem:[%s5936_s10 + $0xee8] sm:$0xff] }
  0xd3   : > { %1175 = vst [vmem:[%s5941_s11 + $0x5f0] sm:$0xff] %v1174_v62  ;;  %v1302_v62 = vld [vmem:[%s5936_s10 + $0xef0] sm:$0xff] }
  0xd4   : > { %1177 = vst [vmem:[%s5941_s11 + $0x5f8] sm:$0xff] %v1176_v63  ;;  %v1304_v63 = vld [vmem:[%s5936_s10 + $0xef8] sm:$0xff] }
  0xd5   : > { %1179 = vst [vmem:[%s5941_s11 + $0x600] sm:$0xff] %v1178_v0  ;;  %v1306_v0 = vld [vmem:[%s5936_s10 + $0x1000] sm:$0xff] }
  0xd6   : > { %1181 = vst [vmem:[%s5941_s11 + $0x608] sm:$0xff] %v1180_v1  ;;  %v1308_v1 = vld [vmem:[%s5936_s10 + $0x1008] sm:$0xff] }
  0xd7   : > { %1183 = vst [vmem:[%s5941_s11 + $0x610] sm:$0xff] %v1182_v2  ;;  %v1310_v2 = vld [vmem:[%s5936_s10 + $0x1010] sm:$0xff] }
  0xd8   : > { %1185 = vst [vmem:[%s5941_s11 + $0x618] sm:$0xff] %v1184_v3  ;;  %v1312_v3 = vld [vmem:[%s5936_s10 + $0x1018] sm:$0xff] }
  0xd9   : > { %1187 = vst [vmem:[%s5941_s11 + $0x620] sm:$0xff] %v1186_v4  ;;  %v1314_v4 = vld [vmem:[%s5936_s10 + $0x1020] sm:$0xff] }
  0xda   : > { %1189 = vst [vmem:[%s5941_s11 + $0x628] sm:$0xff] %v1188_v5  ;;  %v1316_v5 = vld [vmem:[%s5936_s10 + $0x1028] sm:$0xff] }
  0xdb   : > { %1191 = vst [vmem:[%s5941_s11 + $0x630] sm:$0xff] %v1190_v6  ;;  %v1318_v6 = vld [vmem:[%s5936_s10 + $0x1030] sm:$0xff] }
  0xdc   : > { %1193 = vst [vmem:[%s5941_s11 + $0x638] sm:$0xff] %v1192_v7  ;;  %v1320_v7 = vld [vmem:[%s5936_s10 + $0x1038] sm:$0xff] }
  0xdd   : > { %1195 = vst [vmem:[%s5941_s11 + $0x640] sm:$0xff] %v1194_v8  ;;  %v1322_v8 = vld [vmem:[%s5936_s10 + $0x1040] sm:$0xff] }
  0xde   : > { %1197 = vst [vmem:[%s5941_s11 + $0x648] sm:$0xff] %v1196_v9  ;;  %v1324_v9 = vld [vmem:[%s5936_s10 + $0x1048] sm:$0xff] }
  0xdf   : > { %1199 = vst [vmem:[%s5941_s11 + $0x650] sm:$0xff] %v1198_v10  ;;  %v1326_v10 = vld [vmem:[%s5936_s10 + $0x1050] sm:$0xff] }
  0xe0   : > { %1201 = vst [vmem:[%s5941_s11 + $0x658] sm:$0xff] %v1200_v11  ;;  %v1328_v11 = vld [vmem:[%s5936_s10 + $0x1058] sm:$0xff] }
  0xe1   : > { %1203 = vst [vmem:[%s5941_s11 + $0x660] sm:$0xff] %v1202_v12  ;;  %v1330_v12 = vld [vmem:[%s5936_s10 + $0x1060] sm:$0xff] }
  0xe2   : > { %1205 = vst [vmem:[%s5941_s11 + $0x668] sm:$0xff] %v1204_v13  ;;  %v1332_v13 = vld [vmem:[%s5936_s10 + $0x1068] sm:$0xff] }
  0xe3   : > { %1207 = vst [vmem:[%s5941_s11 + $0x670] sm:$0xff] %v1206_v14  ;;  %v1334_v14 = vld [vmem:[%s5936_s10 + $0x1070] sm:$0xff] }
  0xe4   : > { %1209 = vst [vmem:[%s5941_s11 + $0x678] sm:$0xff] %v1208_v15  ;;  %v1336_v15 = vld [vmem:[%s5936_s10 + $0x1078] sm:$0xff] }
  0xe5   : > { %1211 = vst [vmem:[%s5941_s11 + $0x680] sm:$0xff] %v1210_v16  ;;  %v1338_v16 = vld [vmem:[%s5936_s10 + $0x1080] sm:$0xff] }
  0xe6   : > { %1213 = vst [vmem:[%s5941_s11 + $0x688] sm:$0xff] %v1212_v17  ;;  %v1340_v17 = vld [vmem:[%s5936_s10 + $0x1088] sm:$0xff] }
  0xe7   : > { %1215 = vst [vmem:[%s5941_s11 + $0x690] sm:$0xff] %v1214_v18  ;;  %v1342_v18 = vld [vmem:[%s5936_s10 + $0x1090] sm:$0xff] }
  0xe8   : > { %1217 = vst [vmem:[%s5941_s11 + $0x698] sm:$0xff] %v1216_v19  ;;  %v1344_v19 = vld [vmem:[%s5936_s10 + $0x1098] sm:$0xff] }
  0xe9   : > { %1219 = vst [vmem:[%s5941_s11 + $0x6a0] sm:$0xff] %v1218_v20  ;;  %v1346_v20 = vld [vmem:[%s5936_s10 + $0x10a0] sm:$0xff] }
  0xea   : > { %1221 = vst [vmem:[%s5941_s11 + $0x6a8] sm:$0xff] %v1220_v21  ;;  %v1348_v21 = vld [vmem:[%s5936_s10 + $0x10a8] sm:$0xff] }
  0xeb   : > { %1223 = vst [vmem:[%s5941_s11 + $0x6b0] sm:$0xff] %v1222_v22  ;;  %v1350_v22 = vld [vmem:[%s5936_s10 + $0x10b0] sm:$0xff] }
  0xec   : > { %1225 = vst [vmem:[%s5941_s11 + $0x6b8] sm:$0xff] %v1224_v23  ;;  %v1352_v23 = vld [vmem:[%s5936_s10 + $0x10b8] sm:$0xff] }
  0xed   : > { %1227 = vst [vmem:[%s5941_s11 + $0x6c0] sm:$0xff] %v1226_v24  ;;  %v1354_v24 = vld [vmem:[%s5936_s10 + $0x10c0] sm:$0xff] }
  0xee   : > { %1229 = vst [vmem:[%s5941_s11 + $0x6c8] sm:$0xff] %v1228_v25  ;;  %v1356_v25 = vld [vmem:[%s5936_s10 + $0x10c8] sm:$0xff] }
  0xef   : > { %1231 = vst [vmem:[%s5941_s11 + $0x6d0] sm:$0xff] %v1230_v26  ;;  %v1358_v26 = vld [vmem:[%s5936_s10 + $0x10d0] sm:$0xff] }
  0xf0   : > { %1233 = vst [vmem:[%s5941_s11 + $0x6d8] sm:$0xff] %v1232_v27  ;;  %v1360_v27 = vld [vmem:[%s5936_s10 + $0x10d8] sm:$0xff] }
  0xf1   : > { %1235 = vst [vmem:[%s5941_s11 + $0x6e0] sm:$0xff] %v1234_v28  ;;  %v1362_v28 = vld [vmem:[%s5936_s10 + $0x10e0] sm:$0xff] }
  0xf2   : > { %1237 = vst [vmem:[%s5941_s11 + $0x6e8] sm:$0xff] %v1236_v29  ;;  %v1364_v29 = vld [vmem:[%s5936_s10 + $0x10e8] sm:$0xff] }
  0xf3   : > { %1239 = vst [vmem:[%s5941_s11 + $0x6f0] sm:$0xff] %v1238_v30  ;;  %v1366_v30 = vld [vmem:[%s5936_s10 + $0x10f0] sm:$0xff] }
  0xf4   : > { %1241 = vst [vmem:[%s5941_s11 + $0x6f8] sm:$0xff] %v1240_v31  ;;  %v1368_v31 = vld [vmem:[%s5936_s10 + $0x10f8] sm:$0xff] }
  0xf5   : > { %1243 = vst [vmem:[%s5941_s11 + $0x700] sm:$0xff] %v1242_v32 }
  0xf6   : > { %1245 = vst [vmem:[%s5941_s11 + $0x708] sm:$0xff] %v1244_v33 }
  0xf7   : > { %1247 = vst [vmem:[%s5941_s11 + $0x710] sm:$0xff] %v1246_v34 }
  0xf8   : > { %1249 = vst [vmem:[%s5941_s11 + $0x718] sm:$0xff] %v1248_v35 }
  0xf9   : > { %1251 = vst [vmem:[%s5941_s11 + $0x720] sm:$0xff] %v1250_v36 }
  0xfa   : > { %1253 = vst [vmem:[%s5941_s11 + $0x728] sm:$0xff] %v1252_v37 }
  0xfb   : > { %1255 = vst [vmem:[%s5941_s11 + $0x730] sm:$0xff] %v1254_v38 }
  0xfc   : > { %1257 = vst [vmem:[%s5941_s11 + $0x738] sm:$0xff] %v1256_v39 }
  0xfd   : > { %1259 = vst [vmem:[%s5941_s11 + $0x740] sm:$0xff] %v1258_v40 }
  0xfe   : > { %1261 = vst [vmem:[%s5941_s11 + $0x748] sm:$0xff] %v1260_v41 }
  0xff   : > { %1263 = vst [vmem:[%s5941_s11 + $0x750] sm:$0xff] %v1262_v42 }
 0x100   : > { %1265 = vst [vmem:[%s5941_s11 + $0x758] sm:$0xff] %v1264_v43 }
 0x101   : > { %1267 = vst [vmem:[%s5941_s11 + $0x760] sm:$0xff] %v1266_v44 }
 0x102   : > { %1269 = vst [vmem:[%s5941_s11 + $0x768] sm:$0xff] %v1268_v45 }
 0x103   : > { %1271 = vst [vmem:[%s5941_s11 + $0x770] sm:$0xff] %v1270_v46 }
 0x104   : > { %1273 = vst [vmem:[%s5941_s11 + $0x778] sm:$0xff] %v1272_v47 }
 0x105   : > { %1275 = vst [vmem:[%s5941_s11 + $0x780] sm:$0xff] %v1274_v48 }
 0x106   : > { %1277 = vst [vmem:[%s5941_s11 + $0x788] sm:$0xff] %v1276_v49 }
 0x107   : > { %1279 = vst [vmem:[%s5941_s11 + $0x790] sm:$0xff] %v1278_v50 }
 0x108   : > { %1281 = vst [vmem:[%s5941_s11 + $0x798] sm:$0xff] %v1280_v51 }
 0x109   : > { %1283 = vst [vmem:[%s5941_s11 + $0x7a0] sm:$0xff] %v1282_v52 }
 0x10a   : > { %1285 = vst [vmem:[%s5941_s11 + $0x7a8] sm:$0xff] %v1284_v53 }
 0x10b   : > { %1287 = vst [vmem:[%s5941_s11 + $0x7b0] sm:$0xff] %v1286_v54 }
 0x10c   : > { %1289 = vst [vmem:[%s5941_s11 + $0x7b8] sm:$0xff] %v1288_v55 }
 0x10d   : > { %1291 = vst [vmem:[%s5941_s11 + $0x7c0] sm:$0xff] %v1290_v56 }
 0x10e   : > { %1293 = vst [vmem:[%s5941_s11 + $0x7c8] sm:$0xff] %v1292_v57 }
 0x10f   : > { %1295 = vst [vmem:[%s5941_s11 + $0x7d0] sm:$0xff] %v1294_v58 }
 0x110   : > { %1297 = vst [vmem:[%s5941_s11 + $0x7d8] sm:$0xff] %v1296_v59 }
 0x111   : > { %1299 = vst [vmem:[%s5941_s11 + $0x7e0] sm:$0xff] %v1298_v60 }
 0x112   : > { %1301 = vst [vmem:[%s5941_s11 + $0x7e8] sm:$0xff] %v1300_v61 }
 0x113   : > { %1303 = vst [vmem:[%s5941_s11 + $0x7f0] sm:$0xff] %v1302_v62 }
 0x114   : > { %1305 = vst [vmem:[%s5941_s11 + $0x7f8] sm:$0xff] %v1304_v63 }
 0x115   : > { %1307 = vst [vmem:[%s5941_s11 + $0x800] sm:$0xff] %v1306_v0 }
 0x116   : > { %1309 = vst [vmem:[%s5941_s11 + $0x808] sm:$0xff] %v1308_v1 }
 0x117   : > { %1311 = vst [vmem:[%s5941_s11 + $0x810] sm:$0xff] %v1310_v2 }
 0x118   : > { %1313 = vst [vmem:[%s5941_s11 + $0x818] sm:$0xff] %v1312_v3 }
 0x119   : > { %1315 = vst [vmem:[%s5941_s11 + $0x820] sm:$0xff] %v1314_v4 }
 0x11a   : > { %1317 = vst [vmem:[%s5941_s11 + $0x828] sm:$0xff] %v1316_v5 }
 0x11b   : > { %1319 = vst [vmem:[%s5941_s11 + $0x830] sm:$0xff] %v1318_v6 }
 0x11c   : > { %1321 = vst [vmem:[%s5941_s11 + $0x838] sm:$0xff] %v1320_v7 }
 0x11d   : > { %1323 = vst [vmem:[%s5941_s11 + $0x840] sm:$0xff] %v1322_v8 }
 0x11e   : > { %1325 = vst [vmem:[%s5941_s11 + $0x848] sm:$0xff] %v1324_v9 }
 0x11f   : > { %1327 = vst [vmem:[%s5941_s11 + $0x850] sm:$0xff] %v1326_v10 }
 0x120   : > { %1329 = vst [vmem:[%s5941_s11 + $0x858] sm:$0xff] %v1328_v11 }
 0x121   : > { %1331 = vst [vmem:[%s5941_s11 + $0x860] sm:$0xff] %v1330_v12 }
 0x122   : > { %1333 = vst [vmem:[%s5941_s11 + $0x868] sm:$0xff] %v1332_v13 }
 0x123   : > { %1335 = vst [vmem:[%s5941_s11 + $0x870] sm:$0xff] %v1334_v14 }
 0x124   : > { %1337 = vst [vmem:[%s5941_s11 + $0x878] sm:$0xff] %v1336_v15 }
 0x125   : > { %1339 = vst [vmem:[%s5941_s11 + $0x880] sm:$0xff] %v1338_v16 }
 0x126   : > { %1341 = vst [vmem:[%s5941_s11 + $0x888] sm:$0xff] %v1340_v17 }
 0x127   : > { %1343 = vst [vmem:[%s5941_s11 + $0x890] sm:$0xff] %v1342_v18 }
 0x128   : > { %1345 = vst [vmem:[%s5941_s11 + $0x898] sm:$0xff] %v1344_v19 }
 0x129   : > { %1347 = vst [vmem:[%s5941_s11 + $0x8a0] sm:$0xff] %v1346_v20 }
 0x12a   : > { %1349 = vst [vmem:[%s5941_s11 + $0x8a8] sm:$0xff] %v1348_v21 }
 0x12b   : > { %1351 = vst [vmem:[%s5941_s11 + $0x8b0] sm:$0xff] %v1350_v22 }
 0x12c   : > { %1353 = vst [vmem:[%s5941_s11 + $0x8b8] sm:$0xff] %v1352_v23 }
 0x12d   : > { %1355 = vst [vmem:[%s5941_s11 + $0x8c0] sm:$0xff] %v1354_v24 }
 0x12e   : > { %1357 = vst [vmem:[%s5941_s11 + $0x8c8] sm:$0xff] %v1356_v25 }
 0x12f   : > { %1359 = vst [vmem:[%s5941_s11 + $0x8d0] sm:$0xff] %v1358_v26 }
 0x130   : > { %1361 = vst [vmem:[%s5941_s11 + $0x8d8] sm:$0xff] %v1360_v27 }
 0x131   : > { %1363 = vst [vmem:[%s5941_s11 + $0x8e0] sm:$0xff] %v1362_v28 }
 0x132   : > { %1365 = vst [vmem:[%s5941_s11 + $0x8e8] sm:$0xff] %v1364_v29 }
 0x133   : > { %1367 = vst [vmem:[%s5941_s11 + $0x8f0] sm:$0xff] %v1366_v30 }
 0x134   : > { %1369 = vst [vmem:[%s5941_s11 + $0x8f8] sm:$0xff] %v1368_v31 }
 0x135 PF: > { %p5146_p10 = scmp.ge.s32.totalorder %s5848_s21, 1  ;;  %p2561_p11 = scmp.lt.s32.totalorder %s5848_s21, 3 }
 0x137   : > { %p2562_p12 = pnand %p5146_p10, %p2561_p11 }
 0x138   : > { %s6522_s14 = sand.u32 (!%p2562_p12), 1, %s5840_s19   ;;  %s5451_s10 = sshll.u32 (!%p2562_p12), %s5140_s22, 8 }
 0x139   : > { %2565 = sbr.rel (%p2562_p12) target bundleno = 819 (0x333), region = 88  ;;  %s5147_s30 = sshll.u32 (!%p2562_p12), %s6522_s14, 8 }
 0x13a   : > { %s5456_s15 = smul.u32 (!%p2562_p12), 2304, %s6522_s14  ;;  %s8137_s6 = scalar_lea.vmem (!%p2562_p12), [#allocation3], %s5147_s30 }
 0x13b   : > { %s5060_s13 = scalar_lea.hbm (!%p2562_p12), %s8641_s5, %s5451_s10  ;;  %s5061_s22 = sshll.u32 (!%p2562_p12), %s8137_s6, 4  ;;  %s5062_s22 = int_to_ptr.vmem [resolvable:$true] %s5061_s22 }
 0x13c   : > { %s6545_s8 = scalar_lea.vmem (!%p2562_p12), [#allocation2], %s5456_s15  ;;  %s8601_s15 = sshll.u32 (!%p2562_p12), %s5060_s13, 4  ;;  %s5064_s15 = int_to_ptr.hbm [resolvable:$true] %s8601_s15 }
 0x13d   : > { %s5049_s16 = scalar_lea.sflag (!%p2562_p12), [#allocation4], %s6522_s14  ;;  %s5800_s17 = sshra.s32 (!%p2562_p12), %s5064_s15, 4  ;;  %s5801_s17 = int_to_ptr.hbm [resolvable:$true] %s5800_s17 }
 0x13e   : > { %v4157_v32 = vld [vmem:[%s8639_s3] sm:$0xf]  ;;  %vm4259_vm0 = vcmask 1043456   ;;  %v6558_v45 = vld [vmem:[%s8637_s1 + $0x4] ss:$0 sm:$0xff]  ;;  %vm4162_vm4 = vcmask 31744   ;;  %p5807_p2 = scmp.lt.s32.totalorder %s5801_s17, %s8641_s5 }
 0x13f   : > { %5412 = vmatpush.msk.msra.mxu0 %vm4259_vm0, %v4157_v32  ;;  %5452 = vmatpush.msk.msra.mxu1 %vm4259_vm0, %v4157_v32  ;;  %v6528_v33 = vld [vmem:[%s8637_s1] ss:$0 sm:$0xff]  ;;  %v6533_v34 = vld [vmem:[%s8637_s1 + $0x1] ss:$0 sm:$0xff]  ;;  %v6538_v35 = vld [vmem:[%s8637_s1 + $0x2] ss:$0 sm:$0xff] }
 0x140   : > { %5453 = vmatpush.msk.msra.mxu2 %vm4259_vm0, %v4157_v32  ;;  %5454 = vmatpush.msk.msra.mxu3 %vm4259_vm0, %v4157_v32  ;;  %v6543_v36 = vld [vmem:[%s8637_s1 + $0x3] ss:$0 sm:$0xff]  ;;  %v6565_v49 = vld [vmem:[%s8637_s1 + $0x5] ss:$0 sm:$0xff]  ;;  %v6571_v51 = vld [vmem:[%s8637_s1 + $0x6] ss:$0 sm:$0xff] }
 0x141   : > { %v2597_v37 = vld [vmem:[%s6545_s8] sm:$0xff]  ;;  %v6584_v57 = vld [vmem:[%s8637_s1 + $0x8] ss:$0 sm:$0xff]  ;;  %s5802_s23 = scalar_lea.hbm %s5801_s17, 256  ;;  %s5806_s26 = scalar_lea.hbm %s8641_s5, 512 }
 0x142   : > { %v5148_v38 = vld [vmem:[%s6545_s8 + $0x100] sm:$0xff]  ;;  %v2633_v40 = vmul.f32 %v6528_v33, %v2597_v37  ;;  %p5803_p13 = scmp.ne.s32.totalorder %s5801_s17, %s5802_s23  ;;  %p5808_p3 = scmp.lt.s32.totalorder %s5806_s26, %s5802_s23 }
 0x143   : > { %v5181_v39 = vld [vmem:[%s6545_s8 + $0x200] sm:$0xff]  ;;  %v2703_v41 = vmul.f32 %v6533_v34, %v5148_v38 }
 0x144   : > { %v2805_v42 = vmul.f32 %v6538_v35, %v5181_v39  ;;  %v5214_v43 = vld [vmem:[%s6545_s8 + $0x300] sm:$0xff]  ;;  %p5804_p0 = pnand %p5803_p13, %p5920_p6  ;;  %p5809_p4 = por %p5808_p3, %p5807_p2 }
 0x145   : > { %v5247_v44 = vld [vmem:[%s6545_s8 + $0x400] sm:$0xff]  ;;  %v2735_v46 = vadd.f32 %v2703_v41, %v2633_v40  ;;  %v2907_v47 = vmul.f32 %v6543_v36, %v5214_v43 }
 0x146   : > { %v5280_v48 = vld [vmem:[%s6545_s8 + $0x500] sm:$0xff]  ;;  %v3009_v53 = vmul.f32 %v6558_v45, %v5247_v44  ;;  %p5805_p1 = pneg %p5804_p0 }
 0x147   : > { %v5313_v50 = vld [vmem:[%s6545_s8 + $0x600] sm:$0xff]  ;;  %v2837_v52 = vadd.f32 %v2805_v42, %v2735_v46  ;;  %v3111_v59 = vmul.f32 %v6565_v49, %v5280_v48 }
 0x148   : > { %v5346_v54 = vld [vmem:[%s6545_s8 + $0x700] sm:$0xff]  ;;  %v3213_v6 = vmul.f32 %v6571_v51, %v5313_v50  ;;  %p5810_p5 = pnand %p5809_p4, %p5805_p1 }
 0x149   : > { %v6578_v55 = vld [vmem:[%s8637_s1 + $0x7] ss:$0 sm:$0xff]  ;;  %v2939_v58 = vadd.f32 %v2907_v47, %v2837_v52 }
 0x14a   : > { %v5379_v56 = vld [vmem:[%s6545_s8 + $0x800] sm:$0xff]  ;;  %v3315_v7 = vmul.f32 %v6578_v55, %v5346_v54 }
 0x14b   : > { %v2605_v60 = vld [vmem:[%s6545_s8 + $0x40] sm:$0xff]  ;;  %v3041_v5 = vadd.f32 %v3009_v53, %v2939_v58  ;;  %v3417_v8 = vmul.f32 %v6584_v57, %v5379_v56 }
 0x14c   : > { %v5156_v61 = vld [vmem:[%s6545_s8 + $0x140] sm:$0xff]  ;;  %v2641_v63 = vmul.f32 %v6528_v33, %v2605_v60 }
 0x14d   : > { %v5189_v62 = vld [vmem:[%s6545_s8 + $0x240] sm:$0xff]  ;;  %v2711_v0 = vmul.f32 %v6533_v34, %v5156_v61  ;;  %v3143_v19 = vadd.f32 %v3111_v59, %v3041_v5 }
 0x14e   : > { %v2813_v1 = vmul.f32 %v6538_v35, %v5189_v62  ;;  %v5222_v2 = vld [vmem:[%s6545_s8 + $0x340] sm:$0xff] }
 0x14f   : > { %v5255_v3 = vld [vmem:[%s6545_s8 + $0x440] sm:$0xff]  ;;  %v2743_v12 = vadd.f32 %v2711_v0, %v2641_v63  ;;  %v2915_v13 = vmul.f32 %v6543_v36, %v5222_v2  ;;  %v3245_v32 = vadd.f32 %v3213_v6, %v3143_v19  ;;  %v2598_v2 = vld [vmem:[%s6545_s8 + $0x8] sm:$0xff] }
 0x150   : > { %v5288_v4 = vld [vmem:[%s6545_s8 + $0x540] sm:$0xff]  ;;  %v3017_v14 = vmul.f32 %v6558_v45, %v5255_v3  ;;  %v5149_v3 = vld [vmem:[%s6545_s8 + $0x108] sm:$0xff] }
 0x151   : > { %v5321_v9 = vld [vmem:[%s6545_s8 + $0x640] sm:$0xff]  ;;  %v3119_v15 = vmul.f32 %v6565_v49, %v5288_v4  ;;  %v2845_v26 = vadd.f32 %v2813_v1, %v2743_v12  ;;  %v3347_v53 = vadd.f32 %v3315_v7, %v3245_v32 }
 0x152   : > { %v5354_v10 = vld [vmem:[%s6545_s8 + $0x740] sm:$0xff]  ;;  %v3221_v27 = vmul.f32 %v6571_v51, %v5321_v9 }
 0x153   : > { %v5387_v11 = vld [vmem:[%s6545_s8 + $0x840] sm:$0xff]  ;;  %v3323_v28 = vmul.f32 %v6578_v55, %v5354_v10  ;;  %v2947_v43 = vadd.f32 %v2915_v13, %v2845_v26  ;;  %v3449_v4 = vadd.f32 %v3417_v8, %v3347_v53  ;;  %v5182_v10 = vld [vmem:[%s6545_s8 + $0x208] sm:$0xff] }
 0x154   : > { %v2613_v16 = vld [vmem:[%s6545_s8 + $0x80] sm:$0xff]  ;;  %v6617_v29 = vmul.f32 %v6584_v57, %v5387_v11 }
 0x155   : > { %v5164_v17 = vld [vmem:[%s6545_s8 + $0x180] sm:$0xff]  ;;  %v2649_v20 = vmul.f32 %v6528_v33, %v2613_v16  ;;  %v3049_v61 = vadd.f32 %v3017_v14, %v2947_v43  ;;  %v2634_v14 = vmul.f32 %v6528_v33, %v2598_v2  ;;  %v5215_v16 = vld [vmem:[%s6545_s8 + $0x308] sm:$0xff] }
 0x156   : > { %v5197_v18 = vld [vmem:[%s6545_s8 + $0x280] sm:$0xff]  ;;  %v2719_v21 = vmul.f32 %v6533_v34, %v5164_v17  ;;  %v2908_v32 = vmul.f32 %v6543_v36, %v5215_v16 }
 0x157   : > { %v2821_v22 = vmul.f32 %v6538_v35, %v5197_v18  ;;  %v5230_v23 = vld [vmem:[%s6545_s8 + $0x380] sm:$0xff]  ;;  %v3151_v11 = vadd.f32 %v3119_v15, %v3049_v61 }
 0x158   : > { %v5263_v24 = vld [vmem:[%s6545_s8 + $0x480] sm:$0xff]  ;;  %v2751_v37 = vadd.f32 %v2719_v21, %v2649_v20  ;;  %v2923_v38 = vmul.f32 %v6543_v36, %v5230_v23  ;;  %v2704_v20 = vmul.f32 %v6533_v34, %v5149_v3  ;;  %v5248_v21 = vld [vmem:[%s6545_s8 + $0x408] sm:$0xff] }
 0x159   : > { %v5296_v25 = vld [vmem:[%s6545_s8 + $0x580] sm:$0xff]  ;;  %v3025_v39 = vmul.f32 %v6558_v45, %v5263_v24  ;;  %v3253_v15 = vadd.f32 %v3221_v27, %v3151_v11  ;;  %v2806_v24 = vmul.f32 %v6538_v35, %v5182_v10  ;;  %v5322_v10 = vld [vmem:[%s6545_s8 + $0x648] sm:$0xff] }
 0x15a   : > { %v5329_v30 = vld [vmem:[%s6545_s8 + $0x680] sm:$0xff]  ;;  %v3127_v44 = vmul.f32 %v6565_v49, %v5296_v25  ;;  %v2853_v56 = vadd.f32 %v2821_v22, %v2751_v37  ;;  %v5281_v25 = vld [vmem:[%s6545_s8 + $0x508] sm:$0xff] }
 0x15b   : > { %v5362_v31 = vld [vmem:[%s6545_s8 + $0x780] sm:$0xff]  ;;  %v3229_v58 = vmul.f32 %v6571_v51, %v5329_v30  ;;  %v5314_v37 = vld [vmem:[%s6545_s8 + $0x608] sm:$0xff] }
 0x15c   : > { %v2621_v40 = vld [vmem:[%s6545_s8 + $0xc0] sm:$0xff]  ;;  %v3331_v62 = vmul.f32 %v6578_v55, %v5362_v31  ;;  %v2955_v5 = vadd.f32 %v2923_v38, %v2853_v56  ;;  %v2736_v31 = vadd.f32 %v2704_v20, %v2634_v14  ;;  %v2606_v38 = vld [vmem:[%s6545_s8 + $0x48] sm:$0xff] }
 0x15d   : > { %v5172_v41 = vld [vmem:[%s6545_s8 + $0x1c0] sm:$0xff]  ;;  %v2657_v47 = vmul.f32 %v6528_v33, %v2621_v40  ;;  %v2642_v56 = vmul.f32 %v6528_v33, %v2606_v38  ;;  %v2614_v11 = vld [vmem:[%s6545_s8 + $0x88] sm:$0xff] }
 0x15e   : > { %v5205_v42 = vld [vmem:[%s6545_s8 + $0x2c0] sm:$0xff]  ;;  %v2727_v48 = vmul.f32 %v6533_v34, %v5172_v41  ;;  %v3057_v8 = vadd.f32 %v3025_v39, %v2955_v5  ;;  %v3355_v39 = vadd.f32 %v3323_v28, %v3253_v15  ;;  %v3010_v41 = vmul.f32 %v6558_v45, %v5248_v21  ;;  %v5198_v21 = vld [vmem:[%s6545_s8 + $0x288] sm:$0xff] }
 0x15f   : > { %v5395_v46 = vld [vmem:[%s6545_s8 + $0x880] sm:$0xff]  ;;  %v2829_v59 = vmul.f32 %v6538_v35, %v5205_v42  ;;  %v5157_v42 = vld [vmem:[%s6545_s8 + $0x148] sm:$0xff]  ;;  %v3214_v28 = vmul.f32 %v6571_v51, %v5314_v37 }
 0x160   : > { %v5238_v50 = vld [vmem:[%s6545_s8 + $0x3c0] sm:$0xff]  ;;  %v2759_v63 = vadd.f32 %v2727_v48, %v2657_v47  ;;  %v3433_v6 = vmul.f32 %v6584_v57, %v5395_v46  ;;  %v3159_v30 = vadd.f32 %v3127_v44, %v3057_v8  ;;  %v2838_v47 = vadd.f32 %v2806_v24, %v2736_v31  ;;  %v5347_v48 = vld [vmem:[%s6545_s8 + $0x708] sm:$0xff] }
 0x161   : > { %v5271_v52 = vld [vmem:[%s6545_s8 + $0x4c0] sm:$0xff]  ;;  %v2931_v0 = vmul.f32 %v6543_v36, %v5238_v50  ;;  %v3112_v44 = vmul.f32 %v6565_v49, %v5281_v25  ;;  %v5190_v50 = vld [vmem:[%s6545_s8 + $0x248] sm:$0xff]  ;;  %v3316_v2 = vmul.f32 %v6578_v55, %v5347_v48  ;;  %v3222_v24 = vmul.f32 %v6571_v51, %v5322_v10 }
 0x162   : > { %v6635_v54 = vld [vmem:[%s8638_s2] ss:$0 sm:$0xff]  ;;  %v3033_v7 = vmul.f32 %v6558_v45, %v5271_v52  ;;  %v2861_v12 = vadd.f32 %v2829_v59, %v2759_v63  ;;  %v3261_v46 = vadd.f32 %v3229_v58, %v3159_v30  ;;  %v3457_v52 = vadd.f32 %v6617_v29, %v3355_v39  ;;  %v5223_v59 = vld [vmem:[%s6545_s8 + $0x348] sm:$0xff] }
 0x163   : > { %v5304_v60 = vld [vmem:[%s6545_s8 + $0x5c0] sm:$0xff]  ;;  %v6653_v17 = vadd.f32 %v6635_v54, %v3449_v4  ;;  %v2940_v61 = vadd.f32 %v2908_v32, %v2838_v47  ;;  %v5380_v58 = vld [vmem:[%s6545_s8 + $0x808] sm:$0xff]  ;;  %v2712_v63 = vmul.f32 %v6533_v34, %v5157_v42  ;;  %v2814_v3 = vmul.f32 %v6538_v35, %v5190_v50 }
 0x164   : > { %v5337_v1 = vld [vmem:[%s6545_s8 + $0x6c0] sm:$0xff]  ;;  %v3135_v13 = vmul.f32 %v6565_v49, %v5304_v60  ;;  %v2963_v22 = vadd.f32 %v2931_v0, %v2861_v12  ;;  %v3363_v60 = vadd.f32 %v3331_v62, %v3261_v46  ;;  %v5256_v0 = vld [vmem:[%s6545_s8 + $0x448] sm:$0xff]  ;;  %v2916_v62 = vmul.f32 %v6543_v36, %v5223_v59 }
 0x165   : > { %v5370_v9 = vld [vmem:[%s6545_s8 + $0x7c0] sm:$0xff]  ;;  %v3237_v18 = vmul.f32 %v6571_v51, %v5337_v1  ;;  %v3517_v26 = vsub.f32 0.0, %v6653_v17  ;;  %v6680_v1 = vadd.f32 %v6635_v54, %v3457_v52  ;;  %v5289_v4 = vld [vmem:[%s6545_s8 + $0x548] sm:$0xff]  ;;  %v3418_v14 = vmul.f32 %v6584_v57, %v5380_v58 }
 0x166   : > { %v5403_v19 = vld [vmem:[%s6545_s8 + $0x8c0] sm:$0xff]  ;;  %v3339_v23 = vmul.f32 %v6578_v55, %v5370_v9  ;;  %v3065_v40 = vadd.f32 %v3033_v7, %v2963_v22  ;;  %v3465_v5 = vadd.f32 %v3433_v6, %v3363_v60  ;;  %v3042_v7 = vadd.f32 %v3010_v41, %v2940_v61  ;;  %v5165_v8 = vld [vmem:[%s6545_s8 + $0x188] sm:$0xff] }
 0x167   : > { %v3441_v27 = vmul.f32 %v6584_v57, %v5403_v19  ;;  %v3549_v43 = vmul.f32 1.442695, %v3517_v26  ;;  %v2744_v9 = vadd.f32 %v2712_v63, %v2642_v56  ;;  %v3525_v12 = vsub.f32 0.0, %v6680_v1  ;;  %v5355_v32 = vld [vmem:[%s6545_s8 + $0x748] sm:$0xff] }
 0x168   : > { %v3167_v53 = vadd.f32 %v3135_v13, %v3065_v40  ;;  %v3018_v16 = vmul.f32 %v6558_v45, %v5256_v0  ;;  %v3144_v19 = vadd.f32 %v3112_v44, %v3042_v7  ;;  %v3120_v20 = vmul.f32 %v6565_v49, %v5289_v4  ;;  %v5231_v46 = vld [vmem:[%s6545_s8 + $0x388] sm:$0xff] }
 0x169   : > { %5509 = vpow2.f32 %v3549_v43  ;;  %v2846_v6 = vadd.f32 %v2814_v3, %v2744_v9  ;;  %v3565_v15 = vmul.f32 1.442695, %v3525_v12  ;;  %v2720_v37 = vmul.f32 %v6533_v34, %v5165_v8  ;;  %v5264_v44 = vld [vmem:[%s6545_s8 + $0x488] sm:$0xff] }
 0x16a   : > { %v3269_v29 = vadd.f32 %v3237_v18, %v3167_v53  ;;  %v6693_v18 = vadd.f32 %v6635_v54, %v3465_v5  ;;  %v3246_v30 = vadd.f32 %v3214_v28, %v3144_v19  ;;  %v2822_v40 = vmul.f32 %v6538_v35, %v5198_v21  ;;  %v5388_v53 = vld [vmem:[%s6545_s8 + $0x848] sm:$0xff] }
 0x16b   : > { %v2948_v31 = vadd.f32 %v2916_v62, %v2846_v6  ;;  %5511 = vpow2.f32 %v3565_v15  ;;  %v3324_v47 = vmul.f32 %v6578_v55, %v5355_v32  ;;  %v5297_v28 = vld [vmem:[%s6545_s8 + $0x588] sm:$0xff]  ;;  %v2924_v61 = vmul.f32 %v6543_v36, %v5231_v46 }
 0x16c   : > { %v3371_v13 = vadd.f32 %v3339_v23, %v3269_v29  ;;  %v2650_v23 = vmul.f32 %v6528_v33, %v2614_v11  ;;  %v3533_v26 = vsub.f32 0.0, %v6693_v18  ;;  %v3348_v41 = vadd.f32 %v3316_v2, %v3246_v30  ;;  %v5330_v2 = vld [vmem:[%s6545_s8 + $0x688] sm:$0xff] }
 0x16d   : > { %v3050_v42 = vadd.f32 %v3018_v16, %v2948_v31  ;;  %v3026_v29 = vmul.f32 %v6558_v45, %v5264_v44  ;;  %v3426_v4 = vmul.f32 %v6584_v57, %v5388_v53  ;;  %v3128_v7 = vmul.f32 %v6565_v49, %v5297_v28  ;;  %v2622_v9 = vld [vmem:[%s6545_s8 + $0xc8] sm:$0xff] }
 0x16e   : > { %v3473_v22 = vadd.f32 %v3441_v27, %v3371_v13  ;;  %v3581_v27 = vmul.f32 1.442695, %v3533_v26  ;;  %v2752_v43 = vadd.f32 %v2720_v37, %v2650_v23  ;;  %v3450_v50 = vadd.f32 %v3418_v14, %v3348_v41  ;;  %v5173_v62 = vld [vmem:[%s6545_s8 + $0x1c8] sm:$0xff] }
 0x16f   : > { %v5510_v25 = vpop.eup %5509  ;;  %v3152_v52 = vadd.f32 %v3120_v20, %v3050_v42  ;;  %v3230_v19 = vmul.f32 %v6571_v51, %v5330_v2  ;;  %v5363_v21 = vld [vmem:[%s6545_s8 + $0x788] sm:$0xff]  ;;  %v5216_v2 = vld [vmem:[%s6545_s8 + $0x310] sm:$0xff] }
 0x170   : > { %v6702_v38 = vadd.f32 1.0, %v5510_v25  ;;  %v6705_v39 = vadd.f32 %v6635_v54, %v3473_v22  ;;  %v2854_v60 = vadd.f32 %v2822_v40, %v2752_v43  ;;  %v6719_v63 = vadd.f32 %v6635_v54, %v3450_v50  ;;  %v5396_v15 = vld [vmem:[%s6545_s8 + $0x888] sm:$0xff] }
 0x171   : > { %v3254_v0 = vadd.f32 %v3222_v24, %v3152_v52  ;;  %v5512_v3 = vpop.eup %5511  ;;  %v2658_v22 = vmul.f32 %v6528_v33, %v2622_v9  ;;  %v2728_v24 = vmul.f32 %v6533_v34, %v5173_v62  ;;  %v5206_v40 = vld [vmem:[%s6545_s8 + $0x2c8] sm:$0xff]  ;;  %v3434_v41 = vmul.f32 %v6584_v57, %v5396_v15 }
 0x172   : > { %5513 = vrcp.f32 %v6702_v38  ;;  %v3541_v48 = vsub.f32 0.0, %v6705_v39  ;;  %v3654_v56 = vand.u32 2147483647, %v6702_v38  ;;  %v3656_v59 = vand.u32 2147483648, %v6702_v38  ;;  %v5239_v44 = vld [vmem:[%s6545_s8 + $0x3c8] sm:$0xff] }
 0x173   : > { %5515 = vpow2.f32 %v3581_v27  ;;  %vm3650_vm1 = vweird.f32 %v6702_v38  ;;  %v2956_v5 = vadd.f32 %v2924_v61, %v2854_v60  ;;  %v6728_v10 = vadd.f32 1.0, %v5512_v3 }
 0x174   : > { %v3597_v58 = vmul.f32 1.442695, %v3541_v48  ;;  %v3518_v11 = vsub.f32 0.0, %v6719_v63  ;;  %v3356_v12 = vadd.f32 %v3324_v47, %v3254_v0  ;;  %vm6731_vm2 = vcmp.eq.f32.partialorder %v3654_v56, 8.507059e+37 }
 0x175   : > { %v3657_v16 = vor.u32 1.1754944e-38, %v3656_v59  ;;  %v3058_v8 = vadd.f32 %v3026_v29, %v2956_v5  ;;  %v3774_v23 = vand.u32 2147483647, %v6728_v10  ;;  %v3776_v31 = vand.u32 2147483648, %v6728_v10 }
 0x176   : > { %5517 = vpow2.f32 %v3597_v58  ;;  %v3551_v26 = vmul.f32 1.442695, %v3518_v11  ;;  %v3458_v32 = vadd.f32 %v3426_v4, %v3356_v12  ;;  %vm3770_vm5 = vweird.f32 %v6728_v10 }
 0x177   : > { %5519 = vrcp.f32 %v6728_v10  ;;  %v3160_v37 = vadd.f32 %v3128_v7, %v3058_v8  ;;  %v3332_v27 = vmul.f32 %v6578_v55, %v5363_v21  ;;  %v2760_v47 = vadd.f32 %v2728_v24, %v2658_v22 }
 0x178   : > { %v5514_v13 = vpop.eup %5513  ;;  %vm6760_vm7 = vcmp.eq.f32.partialorder %v3774_v23, 8.507059e+37  ;;  %v6767_v53 = vadd.f32 %v6635_v54, %v3458_v32  ;;  %v2830_v56 = vmul.f32 %v6538_v35, %v5206_v40  ;;  %v3777_v61 = vor.u32 1.1754944e-38, %v3776_v31 }
 0x179   : > { %v5516_v6 = vpop.eup %5515  ;;  %v3646_v20 = vmul.f32 %v5514_v13, %v6702_v38  ;;  %vm3651_vm3 = vweird.f32 %v5514_v13  ;;  %v3262_v28 = vadd.f32 %v3230_v19, %v3160_v37  ;;  %v2932_v0 = vmul.f32 %v6543_v36, %v5239_v44 }
 0x17a   : > { %v6743_v25 = vadd.f32 1.0, %v5516_v6  ;;  %vm6756_vm6 = vmor %vm3650_vm1, %vm3651_vm3  ;;  %v3526_v5 = vsub.f32 0.0, %v6767_v53  ;;  %v2862_v12 = vadd.f32 %v2830_v56, %v2760_v47  ;;  %v5371_v47 = vld [vmem:[%s6545_s8 + $0x7c8] sm:$0xff] }
 0x17b   : > { %v3647_v30 = vsub.f32 1.0, %v3646_v20  ;;  %v3364_v11 = vadd.f32 %v3332_v27, %v3262_v28  ;;  %v5272_v20 = vld [vmem:[%s6545_s8 + $0x4c8] sm:$0xff] }
 0x17c   : > { %5521 = vrcp.f32 %v6743_v25  ;;  %v5518_v42 = vpop.eup %5517  ;;  %v3894_v46 = vand.u32 2147483647, %v6743_v25  ;;  %vm3890_vm8 = vweird.f32 %v6743_v25  ;;  %v3896_v38 = vand.u32 2147483648, %v6743_v25  ;;  %v5305_v27 = vld [vmem:[%s6545_s8 + $0x5c8] sm:$0xff] }
 0x17d   : > { %v3648_v43 = vmul.f32 %v5514_v13, %v3647_v30  ;;  %5523 = vpow2.f32 %v3551_v26  ;;  %v6764_v52 = vadd.f32 1.0, %v5518_v42  ;;  %v5520_v59 = vpop.eup %5519  ;;  %v3567_v22 = vmul.f32 1.442695, %v3526_v5  ;;  %v5404_v56 = vld [vmem:[%s6545_s8 + $0x8c8] sm:$0xff]  ;;  %v5282_v42 = vld [vmem:[%s6545_s8 + $0x510] sm:$0xff] }
 0x17e   : > { %v3766_v58 = vmul.f32 %v5520_v59, %v6728_v10  ;;  %vm3771_vm9 = vweird.f32 %v5520_v59  ;;  %vm6777_vm10 = vcmp.eq.f32.partialorder %v3894_v46, 8.507059e+37  ;;  %v3897_v6 = vor.u32 1.1754944e-38, %v3896_v38  ;;  %v5338_v46 = vld [vmem:[%s6545_s8 + $0x6c8] sm:$0xff] }
 0x17f   : > { %v3649_v60 = vadd.f32 %v5514_v13, %v3648_v43  ;;  %5525 = vrcp.f32 %v6764_v52  ;;  %v4014_v3 = vand.u32 2147483647, %v6764_v52  ;;  %v4016_v4 = vand.u32 2147483648, %v6764_v52  ;;  %vm6796_vm13 = vmor %vm3770_vm5, %vm3771_vm9 }
 0x180   : > { %v3767_v62 = vsub.f32 1.0, %v3766_v58  ;;  %vm4010_vm11 = vweird.f32 %v6764_v52  ;;  %v3466_v23 = vadd.f32 %v3434_v41, %v3364_v11  ;;  %v2964_v31 = vadd.f32 %v2932_v0, %v2862_v12  ;;  %v5183_v12 = vld [vmem:[%s6545_s8 + $0x210] sm:$0xff] }
 0x181   : > { %v3653_v29 = vsel %vm6756_vm6, %v5514_v13, %v3649_v60  ;;  %vm6800_vm14 = vcmp.eq.f32.partialorder %v4014_v3, 8.507059e+37  ;;  %v4017_v24 = vor.u32 1.1754944e-38, %v4016_v4  ;;  %v3034_v10 = vmul.f32 %v6558_v45, %v5272_v20  ;;  %v2599_v3 = vld [vmem:[%s6545_s8 + $0x10] sm:$0xff] }
 0x182   : > { %v5522_v7 = vpop.eup %5521  ;;  %v3658_v9 = vsel %vm6731_vm2, %v3657_v16, %v3653_v29  ;;  %v3768_v21 = vmul.f32 %v5520_v59, %v3767_v62  ;;  %v6820_v43 = vadd.f32 %v6635_v54, %v3466_v23  ;;  %v3136_v58 = vmul.f32 %v6565_v49, %v5305_v27  ;;  %v5150_v4 = vld [vmem:[%s6545_s8 + $0x110] sm:$0xff] }
 0x183   : > { %v5524_v8 = vpop.eup %5523  ;;  %v4125_v13 = vmul.f32 %v3658_v9, %v6653_v17  ;;  %v3886_v19 = vmul.f32 %v5522_v7, %v6743_v25  ;;  %vm3891_vm12 = vweird.f32 %v5522_v7  ;;  %v3066_v38 = vadd.f32 %v3034_v10, %v2964_v31  ;;  %v5381_v9 = vld [vmem:[%s6545_s8 + $0x810] sm:$0xff] }
 0x184   : > { %v6790_v15 = vadd.f32 1.0, %v5524_v8  ;;  %v3769_v30 = vadd.f32 %v5520_v59, %v3768_v21  ;;  %vm6815_vm0 = vmor %vm3890_vm8, %vm3891_vm12  ;;  %v3534_v60 = vsub.f32 0.0, %v6820_v43  ;;  %v3238_v50 = vmul.f32 %v6571_v51, %v5338_v46 }
 0x185   : > { %5413 = vmatmul.msk.f32.vlgmr.msra.gmra.mxu0 %vm4162_vm4, %v4125_v13  ;;  %v3887_v17 = vsub.f32 1.0, %v3886_v19  ;;  %v5526_v26 = vpop.eup %5525  ;;  %v3168_v62 = vadd.f32 %v3136_v58, %v3066_v38  ;;  %v3442_v11 = vmul.f32 %v6584_v57, %v5404_v56  ;;  %v2635_v20 = vmul.f32 %v6528_v33, %v2599_v3  ;;  %v2607_v56 = vld [vmem:[%s6545_s8 + $0x50] sm:$0xff] }
 0x186   : > { %5527 = vrcp.f32 %v6790_v15  ;;  %v4006_v37 = vmul.f32 %v5526_v26, %v6764_v52  ;;  %vm3665_vm15 = vweird.f32 %v6790_v15  ;;  %v3669_v40 = vand.u32 2147483647, %v6790_v15  ;;  %v5191_v3 = vld [vmem:[%s6545_s8 + $0x250] sm:$0xff] }
 0x187   : > { %v3888_v32 = vmul.f32 %v5522_v7, %v3887_v17  ;;  %v3773_v41 = vsel %vm6796_vm13, %v5520_v59, %v3769_v30  ;;  %vm4011_vm1 = vweird.f32 %v5526_v26  ;;  %5529 = vpow2.f32 %v3567_v22 }
 0x188   : > { %v3778_v44 = vsel %vm6760_vm7, %v3777_v61, %v3773_v41  ;;  %v4007_v28 = vsub.f32 1.0, %v4006_v37  ;;  %v3671_v25 = vand.u32 2147483648, %v6790_v15  ;;  %v3340_v61 = vmul.f32 %v6578_v55, %v5371_v47  ;;  %vm6843_vm2 = vmor %vm4010_vm11, %vm4011_vm1 }
 0x189   : > { %v3889_v48 = vadd.f32 %v5522_v7, %v3888_v32  ;;  %v4133_v59 = vmul.f32 %v3778_v44, %v6680_v1  ;;  %v3270_v52 = vadd.f32 %v3238_v50, %v3168_v62  ;;  %v2705_v21 = vmul.f32 %v6533_v34, %v5150_v4  ;;  %v5249_v32 = vld [vmem:[%s6545_s8 + $0x410] sm:$0xff] }
 0x18a   : > { %v4008_v29 = vmul.f32 %v5526_v26, %v4007_v28  ;;  %v2807_v17 = vmul.f32 %v6538_v35, %v5183_v12  ;;  %v2909_v10 = vmul.f32 %v6543_v36, %v5216_v2  ;;  %v3672_v16 = vor.u32 1.1754944e-38, %v3671_v25  ;;  %v5348_v50 = vld [vmem:[%s6545_s8 + $0x710] sm:$0xff] }
 0x18b   : > { %v3893_v0 = vsel %vm6815_vm0, %v5522_v7, %v3889_v48  ;;  %5421 = vmatmul.msk.f32.vlgmr.msra.gmra.mxu1 %vm4162_vm4, %v4133_v59  ;;  %v3583_v7 = vmul.f32 1.442695, %v3534_v60  ;;  %v3372_v30 = vadd.f32 %v3340_v61, %v3270_v52  ;;  %v2737_v31 = vadd.f32 %v2705_v21, %v2635_v20  ;;  %v5158_v61 = vld [vmem:[%s6545_s8 + $0x150] sm:$0xff] }
 0x18c   : > { %v5528_v5 = vpop.eup %5527  ;;  %v3898_v1 = vsel %vm6777_vm10, %v3897_v6, %v3893_v0  ;;  %v4009_v13 = vadd.f32 %v5526_v26, %v4008_v29  ;;  %vm3670_vm6 = vcmp.eq.f32.partialorder %v3669_v40, 8.507059e+37  ;;  %v3011_v47 = vmul.f32 %v6558_v45, %v5249_v32  ;;  %v5257_v52 = vld [vmem:[%s6545_s8 + $0x450] sm:$0xff] }
 0x18d   : > { %v4141_v8 = vmul.f32 %v3898_v1, %v6693_v18  ;;  %v3661_v19 = vmul.f32 %v5528_v5, %v6790_v15  ;;  %vm3666_vm3 = vweird.f32 %v5528_v5  ;;  %v5530_v6 = vpop.eup %5529  ;;  %5531 = vpow2.f32 %v3583_v7  ;;  %v5315_v15 = vld [vmem:[%s6545_s8 + $0x610] sm:$0xff] }
 0x18e   : > { %v4013_v22 = vsel %vm6843_vm2, %v5526_v26, %v4009_v13  ;;  %v6857_v14 = vadd.f32 1.0, %v5530_v6  ;;  %vm6869_vm5 = vmor %vm3665_vm15, %vm3666_vm3  ;;  %v2839_v41 = vadd.f32 %v2807_v17, %v2737_v31  ;;  %v3113_v60 = vmul.f32 %v6565_v49, %v5282_v42  ;;  %v5224_v13 = vld [vmem:[%s6545_s8 + $0x350] sm:$0xff] }
 0x18f   : > { %5429 = vmatmul.msk.f32.vlgmr.msra.gmra.mxu2 %vm4162_vm4, %v4141_v8  ;;  %v3662_v18 = vsub.f32 1.0, %v3661_v19  ;;  %v4018_v23 = vsel %vm6800_vm14, %v4017_v24, %v4013_v22  ;;  %v3474_v24 = vadd.f32 %v3442_v11, %v3372_v30  ;;  %v3215_v29 = vmul.f32 %v6571_v51, %v5315_v15  ;;  %v2615_v22 = vld [vmem:[%s6545_s8 + $0x90] sm:$0xff] }
 0x190   : > { %v4149_v37 = vmul.f32 %v4018_v23, %v6705_v39  ;;  %5533 = vrcp.f32 %v6857_v14  ;;  %v3789_v39 = vand.u32 2147483647, %v6857_v14  ;;  %v3791_v48 = vand.u32 2147483648, %v6857_v14  ;;  %v5290_v31 = vld [vmem:[%s6545_s8 + $0x550] sm:$0xff] }
 0x191   : > { %v3663_v27 = vmul.f32 %v5528_v5, %v3662_v18  ;;  %v6880_v28 = vadd.f32 %v6635_v54, %v3474_v24  ;;  %v2941_v25 = vadd.f32 %v2909_v10, %v2839_v41  ;;  %vm3785_vm7 = vweird.f32 %v6857_v14  ;;  %v5166_v18 = vld [vmem:[%s6545_s8 + $0x190] sm:$0xff] }
 0x192   : > { %5437 = vmatmul.msk.f32.vlgmr.msra.gmra.mxu3 %vm4162_vm4, %v4149_v37  ;;  %vm6895_vm8 = vcmp.eq.f32.partialorder %v3789_v39, 8.507059e+37  ;;  %v2643_v7 = vmul.f32 %v6528_v33, %v2607_v56  ;;  %v3792_v11 = vor.u32 1.1754944e-38, %v3791_v48  ;;  %v3317_v19 = vmul.f32 %v6578_v55, %v5348_v50  ;;  %v5199_v10 = vld [vmem:[%s6545_s8 + $0x290] sm:$0xff] }
 0x193   : > { %v3664_v46 = vadd.f32 %v5528_v5, %v3663_v27  ;;  %v5532_v44 = vpop.eup %5531  ;;  %v3542_v58 = vsub.f32 0.0, %v6880_v28  ;;  %v3043_v0 = vadd.f32 %v3011_v47, %v2941_v25  ;;  %v2713_v2 = vmul.f32 %v6533_v34, %v5158_v61  ;;  %v5232_v15 = vld [vmem:[%s6545_s8 + $0x390] sm:$0xff] }
 0x194   : > { %v6886_v59 = vadd.f32 1.0, %v5532_v44  ;;  %v2815_v6 = vmul.f32 %v6538_v35, %v5191_v3  ;;  %v3419_v21 = vmul.f32 %v6584_v57, %v5381_v9  ;;  %v2917_v30 = vmul.f32 %v6543_v36, %v5224_v13  ;;  %v5356_v61 = vld [vmem:[%s6545_s8 + $0x750] sm:$0xff] }
 0x195   : > { %v3668_v40 = vsel %vm6869_vm5, %v5528_v5, %v3664_v46  ;;  %v3599_v8 = vmul.f32 1.442695, %v3542_v58  ;;  %v2745_v23 = vadd.f32 %v2713_v2, %v2643_v7  ;;  %v3019_v26 = vmul.f32 %v6558_v45, %v5257_v52  ;;  %v5265_v58 = vld [vmem:[%s6545_s8 + $0x490] sm:$0xff] }
 0x196   : > { %v3673_v38 = vsel %vm3670_vm6, %v3672_v16, %v3668_v40  ;;  %v5534_v4 = vpop.eup %5533  ;;  %5535 = vrcp.f32 %v6886_v59  ;;  %v3909_v12 = vand.u32 2147483647, %v6886_v59  ;;  %vm3905_vm10 = vweird.f32 %v6886_v59  ;;  %v5323_v16 = vld [vmem:[%s6545_s8 + $0x650] sm:$0xff] }
 0x197   : > { %v4126_v5 = vmul.f32 %v3673_v38, %v6719_v63  ;;  %v3781_v62 = vmul.f32 %v5534_v4, %v6857_v14  ;;  %v3145_v63 = vadd.f32 %v3113_v60, %v3043_v0  ;;  %vm3786_vm9 = vweird.f32 %v5534_v4  ;;  %v5331_v2 = vld [vmem:[%s6545_s8 + $0x690] sm:$0xff] }
 0x198   : > { %5537 = vpow2.f32 %v3599_v8  ;;  %vm6917_vm11 = vcmp.eq.f32.partialorder %v3909_v12, 8.507059e+37  ;;  %v3911_v27 = vand.u32 2147483648, %v6886_v59  ;;  %vm6927_vm12 = vmor %vm3785_vm7, %vm3786_vm9  ;;  %v2847_v46 = vadd.f32 %v2815_v6, %v2745_v23  ;;  %v5364_v6 = vld [vmem:[%s6545_s8 + $0x790] sm:$0xff] }
 0x199   : > { %5414 = vmatmul.msk.f32.gmra.mxu0 %vm4162_vm4, %v4126_v5  ;;  %v3782_v20 = vsub.f32 1.0, %v3781_v62  ;;  %v3247_v17 = vadd.f32 %v3215_v29, %v3145_v63  ;;  %v2651_v39 = vmul.f32 %v6528_v33, %v2615_v22  ;;  %v2721_v47 = vmul.f32 %v6533_v34, %v5166_v18  ;;  %v5298_v5 = vld [vmem:[%s6545_s8 + $0x590] sm:$0xff] }
 0x19a   : > { %v3121_v25 = vmul.f32 %v6565_v49, %v5290_v31  ;;  %v2823_v14 = vmul.f32 %v6538_v35, %v5199_v10  ;;  %v2949_v40 = vadd.f32 %v2917_v30, %v2847_v46  ;;  %v3223_v60 = vmul.f32 %v6571_v51, %v5323_v16  ;;  %v2623_v18 = vld [vmem:[%s6545_s8 + $0xd0] sm:$0xff] }
 0x19b   : > { %v3783_v32 = vmul.f32 %v5534_v4, %v3782_v20  ;;  %v3349_v42 = vadd.f32 %v3317_v19, %v3247_v17  ;;  %v2753_v38 = vadd.f32 %v2721_v47, %v2651_v39  ;;  %v2925_v3 = vmul.f32 %v6543_v36, %v5232_v15  ;;  %v5174_v17 = vld [vmem:[%s6545_s8 + $0x1d0] sm:$0xff] }
 0x19c   : > { %v5536_v24 = vpop.eup %5535  ;;  %v3051_v12 = vadd.f32 %v3019_v26, %v2949_v40  ;;  %v3027_v19 = vmul.f32 %v6558_v45, %v5265_v58  ;;  %v3129_v52 = vmul.f32 %v6565_v49, %v5298_v5  ;;  %v5207_v23 = vld [vmem:[%s6545_s8 + $0x2d0] sm:$0xff]  ;;  %v3231_v10 = vmul.f32 %v6571_v51, %v5331_v2 }
 0x19d   : > { %v3784_v44 = vadd.f32 %v5534_v4, %v3783_v32  ;;  %v3901_v48 = vmul.f32 %v5536_v24, %v6886_v59  ;;  %v3451_v56 = vadd.f32 %v3419_v21, %v3349_v42  ;;  %vm3906_vm13 = vweird.f32 %v5536_v24  ;;  %v5240_v42 = vld [vmem:[%s6545_s8 + $0x3d0] sm:$0xff] }
 0x19e   : > { %v5538_v0 = vpop.eup %5537  ;;  %v2855_v63 = vadd.f32 %v2823_v14, %v2753_v38  ;;  %vm6959_vm14 = vmor %vm3905_vm10, %vm3906_vm13  ;;  %v3153_v22 = vadd.f32 %v3121_v25, %v3051_v12  ;;  %v3333_v32 = vmul.f32 %v6578_v55, %v5364_v6  ;;  %v5397_v39 = vld [vmem:[%s6545_s8 + $0x890] sm:$0xff]  ;;  %v2659_v47 = vmul.f32 %v6528_v33, %v2623_v18  ;;  %v2600_v38 = vld [vmem:[%s6545_s8 + $0x18] sm:$0xff] }
 0x19f   : > { %v3788_v29 = vsel %vm6927_vm12, %v5534_v4, %v3784_v44  ;;  %v3902_v50 = vsub.f32 1.0, %v3901_v48  ;;  %v6946_v7 = vadd.f32 1.0, %v5538_v0  ;;  %v6949_v62 = vadd.f32 %v6635_v54, %v3451_v56  ;;  %v5389_v4 = vld [vmem:[%s6545_s8 + $0x850] sm:$0xff] }
 0x1a0   : > { %v3793_v9 = vsel %vm6895_vm8, %v3792_v11, %v3788_v29  ;;  %v3912_v11 = vor.u32 1.1754944e-38, %v3911_v27  ;;  %v2957_v59 = vadd.f32 %v2925_v3, %v2855_v63  ;;  %v3427_v31 = vmul.f32 %v6584_v57, %v5389_v4  ;;  %v5273_v14 = vld [vmem:[%s6545_s8 + $0x4d0] sm:$0xff]  ;;  %v5184_v4 = vld [vmem:[%s6545_s8 + $0x218] sm:$0xff] }
 0x1a1   : > { %v4134_v8 = vmul.f32 %v3793_v9, %v6767_v53  ;;  %v3903_v13 = vmul.f32 %v5536_v24, %v3902_v50  ;;  %5539 = vrcp.f32 %v6946_v7  ;;  %v3325_v53 = vmul.f32 %v6578_v55, %v5356_v61  ;;  %v5306_v29 = vld [vmem:[%s6545_s8 + $0x5d0] sm:$0xff]  ;;  %v5151_v50 = vld [vmem:[%s6545_s8 + $0x118] sm:$0xff] }
 0x1a2   : > { %v3519_v21 = vsub.f32 0.0, %v6949_v62  ;;  %v4029_v30 = vand.u32 2147483647, %v6946_v7  ;;  %v3255_v16 = vadd.f32 %v3223_v60, %v3153_v22  ;;  %v3059_v41 = vadd.f32 %v3027_v19, %v2957_v59  ;;  %v5339_v5 = vld [vmem:[%s6545_s8 + $0x6d0] sm:$0xff]  ;;  %v5217_v22 = vld [vmem:[%s6545_s8 + $0x318] sm:$0xff] }
 0x1a3   : > { %5422 = vmatmul.msk.f32.gmra.mxu1 %vm4162_vm4, %v4134_v8  ;;  %v3904_v20 = vadd.f32 %v5536_v24, %v3903_v13  ;;  %v2729_v15 = vmul.f32 %v6533_v34, %v5174_v17  ;;  %v2831_v44 = vmul.f32 %v6538_v35, %v5207_v23  ;;  %vm4025_vm15 = vweird.f32 %v6946_v7  ;;  %v5372_v6 = vld [vmem:[%s6545_s8 + $0x7d0] sm:$0xff]  ;;  %v5250_v59 = vld [vmem:[%s6545_s8 + $0x418] sm:$0xff]  ;;  %v7026_v17 = vld [vmem:[%s8637_s1 + $0x2] ss:$0 sm:$0xff] }
 0x1a4   : > { %v3553_v26 = vmul.f32 1.442695, %v3519_v21  ;;  %v3161_v25 = vadd.f32 %v3129_v52, %v3059_v41  ;;  %v4031_v37 = vand.u32 2147483648, %v6946_v7  ;;  %v2933_v60 = vmul.f32 %v6543_v36, %v5240_v42  ;;  %v5405_v21 = vld [vmem:[%s6545_s8 + $0x8d0] sm:$0xff]  ;;  %v5225_v61 = vld [vmem:[%s6545_s8 + $0x358] sm:$0xff] }
 0x1a5   : > { %v3908_v27 = vsel %vm6959_vm14, %v5536_v24, %v3904_v20  ;;  %v3357_v24 = vadd.f32 %v3325_v53, %v3255_v16  ;;  %v2761_v40 = vadd.f32 %v2729_v15, %v2659_v47  ;;  %v3435_v0 = vmul.f32 %v6584_v57, %v5397_v39  ;;  %v2608_v39 = vld [vmem:[%s6545_s8 + $0x58] sm:$0xff] }
 0x1a6   : > { %v3913_v46 = vsel %vm6917_vm11, %v3912_v11, %v3908_v27  ;;  %5541 = vpow2.f32 %v3553_v26  ;;  %v3263_v58 = vadd.f32 %v3231_v10, %v3161_v25  ;;  %vm6995_vm1 = vcmp.eq.f32.partialorder %v4029_v30, 8.507059e+37  ;;  %v7044_v26 = vld [vmem:[%s8637_s1 + $0x4] ss:$0 sm:$0xff]  ;;  %v5159_v47 = vld [vmem:[%s6545_s8 + $0x158] sm:$0xff] }
 0x1a7   : > { %v4142_v48 = vmul.f32 %v3913_v46, %v6820_v43  ;;  %v5540_v56 = vpop.eup %5539  ;;  %v3459_v43 = vadd.f32 %v3427_v31, %v3357_v24  ;;  %v2863_v3 = vadd.f32 %v2831_v44, %v2761_v40  ;;  %v3035_v36 = vmul.f32 %v6558_v45, %v5273_v14  ;;  %v5316_v46 = vld [vmem:[%s6545_s8 + $0x618] sm:$0xff]  ;;  %v7063_v40 = vld [vmem:[%s8637_s1 + $0x5] ss:$0 sm:$0xff] }
 0x1a8   : > { %v4021_v35 = vmul.f32 %v5540_v56, %v6946_v7  ;;  %vm4026_vm0 = vweird.f32 %v5540_v56  ;;  %v3365_v8 = vadd.f32 %v3333_v32, %v3263_v58  ;;  %v2636_v13 = vmul.f32 %v6528_v33, %v2600_v38  ;;  %v7038_v32 = vld [vmem:[%s8637_s1 + $0x3] ss:$0 sm:$0xff]  ;;  %v5192_v25 = vld [vmem:[%s6545_s8 + $0x258] sm:$0xff]  ;;  %v7111_v33 = vld [vmem:[%s8637_s1 + $0x8] ss:$0 sm:$0xff] }
 0x1a9   : > { %5430 = vmatmul.msk.f32.gmra.mxu2 %vm4162_vm4, %v4142_v48  ;;  %v7002_v12 = vadd.f32 %v6635_v54, %v3459_v43  ;;  %v4032_v63 = vor.u32 1.1754944e-38, %v4031_v37  ;;  %v2965_v19 = vadd.f32 %v2933_v60, %v2863_v3  ;;  %v3137_v2 = vmul.f32 %v6565_v49, %v5306_v29  ;;  %vm7017_vm2 = vmor %vm4025_vm15, %vm4026_vm0  ;;  %v5349_v58 = vld [vmem:[%s6545_s8 + $0x718] sm:$0xff]  ;;  %v7082_v29 = vld [vmem:[%s8637_s1 + $0x1] ss:$0 sm:$0xff] }
 0x1aa   : > { %v4022_v9 = vsub.f32 1.0, %v4021_v35  ;;  %v2706_v1 = vmul.f32 %v6533_v34, %v5151_v50  ;;  %v3467_v52 = vadd.f32 %v3435_v0, %v3365_v8  ;;  %v3239_v20 = vmul.f32 %v6571_v51, %v5339_v5  ;;  %v7069_v35 = vld [vmem:[%s8637_s1 + $0x6] ss:$0 sm:$0xff] }
 0x1ab   : > { %v3527_v53 = vsub.f32 0.0, %v7002_v12  ;;  %v3067_v34 = vadd.f32 %v3035_v36, %v2965_v19  ;;  %v2808_v51 = vmul.f32 %v7026_v17, %v5184_v4  ;;  %v3341_v31 = vmul.f32 %v6578_v55, %v5372_v6  ;;  %v5283_v55 = vld [vmem:[%s6545_s8 + $0x518] sm:$0xff] }
 0x1ac   : > { %v5542_v45 = vpop.eup %5541  ;;  %v4023_v11 = vmul.f32 %v5540_v56, %v4022_v9  ;;  %v2738_v18 = vadd.f32 %v2706_v1, %v2636_v13  ;;  %v7030_v30 = vadd.f32 %v6635_v54, %v3467_v52  ;;  %v3443_v10 = vmul.f32 %v6584_v57, %v5405_v21  ;;  %v5382_v36 = vld [vmem:[%s6545_s8 + $0x818] sm:$0xff] }
 0x1ad   : > { %v7021_v49 = vadd.f32 1.0, %v5542_v45  ;;  %v3569_v7 = vmul.f32 1.442695, %v3527_v53  ;;  %v2910_v27 = vmul.f32 %v7038_v32, %v5217_v22  ;;  %v3012_v16 = vmul.f32 %v7044_v26, %v5250_v59  ;;  %v5258_v19 = vld [vmem:[%s6545_s8 + $0x458] sm:$0xff]  ;;  %v7099_v45 = vld [vmem:[%s8637_s1 + $0x7] ss:$0 sm:$0xff] }
 0x1ae   : > { %v4024_v23 = vadd.f32 %v5540_v56, %v4023_v11  ;;  %v3535_v57 = vsub.f32 0.0, %v7030_v30  ;;  %v3169_v42 = vadd.f32 %v3137_v2, %v3067_v34  ;;  %v2840_v24 = vadd.f32 %v2808_v51, %v2738_v18  ;;  %v5291_v52 = vld [vmem:[%s6545_s8 + $0x558] sm:$0xff] }
 0x1af   : > { %5543 = vrcp.f32 %v7021_v49  ;;  %v3684_v44 = vand.u32 2147483647, %v7021_v49  ;;  %v3686_v48 = vand.u32 2147483648, %v7021_v49  ;;  %v3114_v60 = vmul.f32 %v7063_v40, %v5283_v55  ;;  %v2616_v21 = vld [vmem:[%s6545_s8 + $0x98] sm:$0xff] }
 0x1b0   : > { %v4028_v41 = vsel %vm7017_vm2, %v5540_v56, %v4024_v23  ;;  %5545 = vpow2.f32 %v3569_v7  ;;  %v3585_v56 = vmul.f32 1.442695, %v3535_v57  ;;  %v3271_v37 = vadd.f32 %v3239_v20, %v3169_v42  ;;  %v5324_v20 = vld [vmem:[%s6545_s8 + $0x658] sm:$0xff] }
 0x1b1   : > { %v4033_v15 = vsel %vm6995_vm1, %v4032_v63, %v4028_v41  ;;  %v2942_v38 = vadd.f32 %v2910_v27, %v2840_v24  ;;  %v3216_v43 = vmul.f32 %v7069_v35, %v5316_v46  ;;  %v2714_v50 = vmul.f32 %v7082_v29, %v5159_v47 }
 0x1b2   : > { %v4150_v14 = vmul.f32 %v4033_v15, %v6880_v28  ;;  %v7076_v28 = vld [vmem:[%s8637_s1] ss:$0 sm:$0xff]  ;;  %vm3680_vm3 = vweird.f32 %v7021_v49  ;;  %5547 = vpow2.f32 %v3585_v56  ;;  %v3373_v3 = vadd.f32 %v3341_v31, %v3271_v37  ;;  %v5167_v31 = vld [vmem:[%s6545_s8 + $0x198] sm:$0xff] }
 0x1b3   : > { %v2644_v0 = vmul.f32 %v7076_v28, %v2608_v39  ;;  %v2816_v5 = vmul.f32 %v7026_v17, %v5192_v25  ;;  %vm7090_vm5 = vcmp.eq.f32.partialorder %v3684_v44, 8.507059e+37  ;;  %v3687_v13 = vor.u32 1.1754944e-38, %v3686_v48  ;;  %v5357_v39 = vld [vmem:[%s6545_s8 + $0x758] sm:$0xff] }
 0x1b4   : > { %5438 = vmatmul.msk.f32.gmra.mxu3 %vm4162_vm4, %v4150_v14  ;;  %v3044_v4 = vadd.f32 %v3012_v16, %v2942_v38  ;;  %v3475_v1 = vadd.f32 %v3443_v10, %v3373_v3  ;;  %v3318_v11 = vmul.f32 %v7099_v45, %v5349_v58  ;;  %v2918_v53 = vmul.f32 %v7038_v32, %v5225_v61 }
 0x1b5   : > { %v5544_v9 = vpop.eup %5543  ;;  %v2746_v63 = vadd.f32 %v2714_v50, %v2644_v0  ;;  %v3420_v34 = vmul.f32 %v7111_v33, %v5382_v36  ;;  %v3020_v7 = vmul.f32 %v7044_v26, %v5258_v19  ;;  %v3122_v10 = vmul.f32 %v7063_v40, %v5291_v52  ;;  %v5200_v0 = vld [vmem:[%s6545_s8 + $0x298] sm:$0xff]  ;;  %v7158_v19 = vld [vmem:[%s8638_s2] ss:$0 sm:$0xff] }
 0x1b6   : > { %v5546_v2 = vpop.eup %5545  ;;  %v3676_v6 = vmul.f32 %v5544_v9, %v7021_v49  ;;  %v3146_v59 = vadd.f32 %v3114_v60, %v3044_v4  ;;  %vm3681_vm6 = vweird.f32 %v5544_v9  ;;  %v7115_v23 = vadd.f32 %v6635_v54, %v3475_v1  ;;  %v5390_v54 = vld [vmem:[%s6545_s8 + $0x858] sm:$0xff] }
 0x1b7   : > { %v7106_v22 = vadd.f32 1.0, %v5546_v2  ;;  %v2848_v18 = vadd.f32 %v2816_v5, %v2746_v63  ;;  %v3224_v27 = vmul.f32 %v7069_v35, %v5324_v20  ;;  %v2652_v16 = vmul.f32 %v7076_v28, %v2616_v21  ;;  %vm7129_vm7 = vmor %vm3680_vm3, %vm3681_vm6  ;;  %v5233_v50 = vld [vmem:[%s6545_s8 + $0x398] sm:$0xff] }
 0x1b8   : > { %v3677_v51 = vsub.f32 1.0, %v3676_v6  ;;  %v5548_v55 = vpop.eup %5547  ;;  %v3543_v57 = vsub.f32 0.0, %v7115_v23  ;;  %v3248_v42 = vadd.f32 %v3216_v43, %v3146_v59  ;;  %v2722_v24 = vmul.f32 %v7082_v29, %v5167_v31  ;;  %v5299_v2 = vld [vmem:[%s6545_s8 + $0x598] sm:$0xff] }
 0x1b9   : > { %5549 = vrcp.f32 %v7106_v22  ;;  %v2950_v46 = vadd.f32 %v2918_v53, %v2848_v18  ;;  %v3804_v15 = vand.u32 2147483647, %v7106_v22  ;;  %v3806_v44 = vand.u32 2147483648, %v7106_v22  ;;  %v2624_v21 = vld [vmem:[%s6545_s8 + $0xd8] sm:$0xff] }
 0x1ba   : > { %v3678_v41 = vmul.f32 %v5544_v9, %v3677_v51  ;;  %v7135_v48 = vadd.f32 1.0, %v5548_v55  ;;  %v3601_v14 = vmul.f32 1.442695, %v3543_v57  ;;  %v3350_v56 = vadd.f32 %v3318_v11, %v3248_v42  ;;  %v5175_v31 = vld [vmem:[%s6545_s8 + $0x1d8] sm:$0xff]  ;;  %v5185_v57 = vld [vmem:[%s6545_s8 + $0x220] sm:$0xff] }
 0x1bb   : > { %v3052_v37 = vadd.f32 %v3020_v7, %v2950_v46  ;;  %vm3800_vm8 = vweird.f32 %v7106_v22  ;;  %v3326_v49 = vmul.f32 %v7099_v45, %v5357_v39  ;;  %v3428_v60 = vmul.f32 %v7111_v33, %v5390_v54 }
 0x1bc   : > { %v3679_v25 = vadd.f32 %v5544_v9, %v3678_v41  ;;  %5551 = vrcp.f32 %v7135_v48  ;;  %v3452_v43 = vadd.f32 %v3420_v34, %v3350_v56  ;;  %vm7148_vm9 = vcmp.eq.f32.partialorder %v3804_v15, 8.507059e+37  ;;  %v5332_v41 = vld [vmem:[%s6545_s8 + $0x698] sm:$0xff] }
 0x1bd   : > { %5553 = vpow2.f32 %v3601_v14  ;;  %v3154_v58 = vadd.f32 %v3122_v10, %v3052_v37  ;;  %v3807_v5 = vor.u32 1.1754944e-38, %v3806_v44  ;;  %v2754_v4 = vadd.f32 %v2722_v24, %v2652_v16  ;;  %v5365_v44 = vld [vmem:[%s6545_s8 + $0x798] sm:$0xff] }
 0x1be   : > { %v3683_v38 = vsel %vm7129_vm7, %v5544_v9, %v3679_v25  ;;  %vm3920_vm10 = vweird.f32 %v7135_v48  ;;  %v7161_v8 = vadd.f32 %v7158_v19, %v3452_v43  ;;  %v3924_v6 = vand.u32 2147483647, %v7135_v48  ;;  %v5208_v43 = vld [vmem:[%s6545_s8 + $0x2d8] sm:$0xff] }
 0x1bf   : > { %v5550_v61 = vpop.eup %5549  ;;  %v3688_v3 = vsel %vm7090_vm5, %v3687_v13, %v3683_v38  ;;  %v5266_v13 = vld [vmem:[%s6545_s8 + $0x498] sm:$0xff]  ;;  %v3256_v1 = vadd.f32 %v3224_v27, %v3154_v58  ;;  %v2926_v11 = vmul.f32 %v7038_v32, %v5233_v50  ;;  %v3926_v52 = vand.u32 2147483648, %v7135_v48 }
 0x1c0   : > { %v4127_v63 = vmul.f32 %v3688_v3, %v6949_v62  ;;  %v3796_v9 = vmul.f32 %v5550_v61, %v7106_v22  ;;  %v2824_v62 = vmul.f32 %v7026_v17, %v5200_v0  ;;  %vm3801_vm11 = vweird.f32 %v5550_v61  ;;  %v5398_v38 = vld [vmem:[%s6545_s8 + $0x898] sm:$0xff] }
 0x1c1   : > { %v3520_v20 = vsub.f32 0.0, %v7161_v8  ;;  %v3358_v34 = vadd.f32 %v3326_v49, %v3256_v1  ;;  %v3028_v51 = vmul.f32 %v7044_v26, %v5266_v13  ;;  %v3130_v7 = vmul.f32 %v7063_v40, %v5299_v2  ;;  %vm7180_vm13 = vmor %vm3800_vm8, %vm3801_vm11 }
 0x1c2   : > { %5415 = vmatmul.msk.f32.gmra.mxu0 %vm4162_vm4, %v4127_v63  ;;  %v3797_v53 = vsub.f32 1.0, %v3796_v9  ;;  %v5552_v59 = vpop.eup %5551  ;;  %v2856_v18 = vadd.f32 %v2824_v62, %v2754_v4  ;;  %v2660_v54 = vmul.f32 %v7076_v28, %v2624_v21  ;;  %v2730_v24 = vmul.f32 %v7082_v29, %v5175_v31  ;;  %v5241_v4 = vld [vmem:[%s6545_s8 + $0x3d8] sm:$0xff] }
 0x1c3   : > { %v5554_v10 = vpop.eup %5553  ;;  %v3916_v16 = vmul.f32 %v5552_v59, %v7135_v48  ;;  %vm3921_vm12 = vweird.f32 %v5552_v59  ;;  %v3555_v55 = vmul.f32 1.442695, %v3520_v20  ;;  %v3460_v46 = vadd.f32 %v3428_v60, %v3358_v34 }
 0x1c4   : > { %v3798_v27 = vmul.f32 %v5550_v61, %v3797_v53  ;;  %v7184_v42 = vadd.f32 1.0, %v5554_v10  ;;  %v2958_v39 = vadd.f32 %v2926_v11, %v2856_v18  ;;  %vm7189_vm14 = vcmp.eq.f32.partialorder %v3924_v6, 8.507059e+37  ;;  %vm7207_vm15 = vmor %vm3920_vm10, %vm3921_vm12  ;;  %v5274_v6 = vld [vmem:[%s6545_s8 + $0x4d8] sm:$0xff] }
 0x1c5   : > { %v3917_v15 = vsub.f32 1.0, %v3916_v16  ;;  %5555 = vpow2.f32 %v3555_v55  ;;  %v3927_v25 = vor.u32 1.1754944e-38, %v3926_v52  ;;  %v3232_v14 = vmul.f32 %v7069_v35, %v5332_v41  ;;  %v5340_v10 = vld [vmem:[%s6545_s8 + $0x6d8] sm:$0xff]  ;;  %v5152_v16 = vld [vmem:[%s6545_s8 + $0x120] sm:$0xff] }
 0x1c6   : > { %v3799_v47 = vadd.f32 %v5550_v61, %v3798_v27  ;;  %5557 = vrcp.f32 %v7184_v42  ;;  %v7198_v49 = vadd.f32 %v7158_v19, %v3460_v46  ;;  %v3060_v60 = vadd.f32 %v3028_v51, %v2958_v39  ;;  %v5307_v51 = vld [vmem:[%s6545_s8 + $0x5d8] sm:$0xff]  ;;  %v2601_v27 = vld [vmem:[%s6545_s8 + $0x20] sm:$0xff] }
 0x1c7   : > { %v3918_v37 = vmul.f32 %v5552_v59, %v3917_v15  ;;  %v4044_v50 = vand.u32 2147483647, %v7184_v42  ;;  %v2762_v3 = vadd.f32 %v2730_v24, %v2660_v54  ;;  %vm4040_vm0 = vweird.f32 %v7184_v42  ;;  %v5406_v15 = vld [vmem:[%s6545_s8 + $0x8d8] sm:$0xff] }
 0x1c8   : > { %v3803_v56 = vsel %vm7180_vm13, %v5550_v61, %v3799_v47  ;;  %v3334_v61 = vmul.f32 %v7099_v45, %v5365_v44  ;;  %v3528_v13 = vsub.f32 0.0, %v7198_v49  ;;  %v3162_v36 = vadd.f32 %v3130_v7, %v3060_v60  ;;  %v5373_v47 = vld [vmem:[%s6545_s8 + $0x7d8] sm:$0xff] }
 0x1c9   : > { %v3808_v58 = vsel %vm7148_vm9, %v3807_v5, %v3803_v56  ;;  %v3919_v9 = vadd.f32 %v5552_v59, %v3918_v37  ;;  %v4046_v48 = vand.u32 2147483648, %v7184_v42  ;;  %v3436_v5 = vmul.f32 %v7111_v33, %v5398_v38  ;;  %v5218_v38 = vld [vmem:[%s6545_s8 + $0x320] sm:$0xff] }
 0x1ca   : > { %v4135_v63 = vmul.f32 %v3808_v58, %v7002_v12  ;;  %v2832_v2 = vmul.f32 %v7026_v17, %v5208_v43  ;;  %v3571_v62 = vmul.f32 1.442695, %v3528_v13  ;;  %v3264_v11 = vadd.f32 %v3232_v14, %v3162_v36  ;;  %v5284_v13 = vld [vmem:[%s6545_s8 + $0x520] sm:$0xff] }
 0x1cb   : > { %v5556_v1 = vpop.eup %5555  ;;  %v3923_v12 = vsel %vm7207_vm15, %v5552_v59, %v3919_v9  ;;  %v2934_v53 = vmul.f32 %v7038_v32, %v5241_v4  ;;  %vm7227_vm1 = vcmp.eq.f32.partialorder %v4044_v50, 8.507059e+37  ;;  %v3036_v31 = vmul.f32 %v7044_v26, %v5274_v6  ;;  %v5317_v36 = vld [vmem:[%s6545_s8 + $0x620] sm:$0xff] }
 0x1cc   : > { %5423 = vmatmul.msk.f32.gmra.mxu1 %vm4162_vm4, %v4135_v63  ;;  %v5558_v52 = vpop.eup %5557  ;;  %v3928_v20 = vsel %vm7189_vm14, %v3927_v25, %v3923_v12  ;;  %v7231_v34 = vadd.f32 1.0, %v5556_v1  ;;  %v2864_v18 = vadd.f32 %v2832_v2, %v2762_v3  ;;  %5559 = vpow2.f32 %v3571_v62 }
 0x1cd   : > { %v4143_v59 = vmul.f32 %v3928_v20, %v7030_v30  ;;  %v4036_v7 = vmul.f32 %v5558_v52, %v7184_v42  ;;  %vm4041_vm2 = vweird.f32 %v5558_v52  ;;  %v4047_v55 = vor.u32 1.1754944e-38, %v4046_v48  ;;  %v5350_v20 = vld [vmem:[%s6545_s8 + $0x720] sm:$0xff] }
 0x1ce   : > { %5561 = vrcp.f32 %v7231_v34  ;;  %v3699_v41 = vand.u32 2147483647, %v7231_v34  ;;  %v3701_v46 = vand.u32 2147483648, %v7231_v34  ;;  %v3366_v39 = vadd.f32 %v3334_v61, %v3264_v11  ;;  %vm7256_vm3 = vmor %vm4040_vm0, %vm4041_vm2  ;;  %v5251_v61 = vld [vmem:[%s6545_s8 + $0x420] sm:$0xff] }
 0x1cf   : > { %5431 = vmatmul.msk.f32.gmra.mxu2 %vm4162_vm4, %v4143_v59  ;;  %v4037_v30 = vsub.f32 1.0, %v4036_v7  ;;  %v2966_v54 = vadd.f32 %v2934_v53, %v2864_v18  ;;  %v3138_v44 = vmul.f32 %v7063_v40, %v5307_v51  ;;  %v3240_v24 = vmul.f32 %v7069_v35, %v5340_v10  ;;  %v2609_v18 = vld [vmem:[%s6545_s8 + $0x60] sm:$0xff] }
 0x1d0   : > { %v2637_v22 = vmul.f32 %v7076_v28, %v2601_v27  ;;  %v2707_v25 = vmul.f32 %v7082_v29, %v5152_v16  ;;  %v3468_v56 = vadd.f32 %v3436_v5, %v3366_v39  ;;  %v2809_v60 = vmul.f32 %v7026_v17, %v5185_v57 }
 0x1d1   : > { %v4038_v14 = vmul.f32 %v5558_v52, %v4037_v30  ;;  %v3068_v37 = vadd.f32 %v3036_v31, %v2966_v54  ;;  %vm3695_vm5 = vweird.f32 %v7231_v34  ;;  %v3342_v58 = vmul.f32 %v7099_v45, %v5373_v47  ;;  %v5160_v31 = vld [vmem:[%s6545_s8 + $0x160] sm:$0xff] }
 0x1d2   : > { %v3444_v0 = vmul.f32 %v7111_v33, %v5406_v15  ;;  %v2739_v50 = vadd.f32 %v2707_v25, %v2637_v22  ;;  %v5560_v3 = vpop.eup %5559  ;;  %vm7264_vm6 = vcmp.eq.f32.partialorder %v3699_v41, 8.507059e+37  ;;  %v3702_v42 = vor.u32 1.1754944e-38, %v3701_v46  ;;  %v5193_v41 = vld [vmem:[%s6545_s8 + $0x260] sm:$0xff] }
 0x1d3   : > { %v4039_v4 = vadd.f32 %v5558_v52, %v4038_v14  ;;  %v7269_v9 = vadd.f32 %v7158_v19, %v3468_v56  ;;  %v7273_v5 = vadd.f32 1.0, %v5560_v3  ;;  %v3170_v2 = vadd.f32 %v3138_v44, %v3068_v37  ;;  %v5226_v46 = vld [vmem:[%s6545_s8 + $0x360] sm:$0xff] }
 0x1d4   : > { %v5562_v48 = vpop.eup %5561  ;;  %v2841_v6 = vadd.f32 %v2809_v60, %v2739_v50  ;;  %v2911_v1 = vmul.f32 %v7038_v32, %v5218_v38  ;;  %v3013_v53 = vmul.f32 %v7044_v26, %v5251_v61  ;;  %v3115_v59 = vmul.f32 %v7063_v40, %v5284_v13  ;;  %v5259_v47 = vld [vmem:[%s6545_s8 + $0x460] sm:$0xff] }
 0x1d5   : > { %v4043_v12 = vsel %vm7256_vm3, %v5558_v52, %v4039_v4  ;;  %v3691_v62 = vmul.f32 %v5562_v48, %v7231_v34  ;;  %v3536_v11 = vsub.f32 0.0, %v7269_v9  ;;  %5563 = vrcp.f32 %v7273_v5  ;;  %v5383_v52 = vld [vmem:[%s6545_s8 + $0x820] sm:$0xff] }
 0x1d6   : > { %v4048_v51 = vsel %vm7227_vm1, %v4047_v55, %v4043_v12  ;;  %v3217_v7 = vmul.f32 %v7069_v35, %v5317_v36  ;;  %vm3696_vm7 = vweird.f32 %v5562_v48  ;;  %v3272_v57 = vadd.f32 %v3240_v24, %v3170_v2  ;;  %v5292_v25 = vld [vmem:[%s6545_s8 + $0x560] sm:$0xff] }
 0x1d7   : > { %v4151_v10 = vmul.f32 %v4048_v51, %v7115_v23  ;;  %v3692_v27 = vsub.f32 1.0, %v3691_v62  ;;  %v3587_v16 = vmul.f32 1.442695, %v3536_v11  ;;  %v2943_v21 = vadd.f32 %v2911_v1, %v2841_v6  ;;  %vm7301_vm8 = vmor %vm3695_vm5, %vm3696_vm7  ;;  %v5168_v2 = vld [vmem:[%s6545_s8 + $0x1a0] sm:$0xff] }
 0x1d8   : > { %v3319_v55 = vmul.f32 %v7099_v45, %v5350_v20  ;;  %v2645_v30 = vmul.f32 %v7076_v28, %v2609_v18  ;;  %v3421_v54 = vmul.f32 %v7111_v33, %v5383_v52  ;;  %v2715_v23 = vmul.f32 %v7082_v29, %v5160_v31  ;;  %v5325_v12 = vld [vmem:[%s6545_s8 + $0x660] sm:$0xff] }
 0x1d9   : > { %5439 = vmatmul.msk.f32.gmra.mxu3 %vm4162_vm4, %v4151_v10  ;;  %v3693_v39 = vmul.f32 %v5562_v48, %v3692_v27  ;;  %5565 = vpow2.f32 %v3587_v16  ;;  %vm3815_vm9 = vweird.f32 %v7273_v5  ;;  %v3374_v44 = vadd.f32 %v3342_v58, %v3272_v57  ;;  %v2617_v58 = vld [vmem:[%s6545_s8 + $0xa0] sm:$0xff] }
 0x1da   : > { %v3045_v24 = vadd.f32 %v3013_v53, %v2943_v21  ;;  %v2817_v22 = vmul.f32 %v7026_v17, %v5193_v41  ;;  %v3819_v56 = vand.u32 2147483647, %v7273_v5  ;;  %v2747_v37 = vadd.f32 %v2715_v23, %v2645_v30  ;;  %v5358_v20 = vld [vmem:[%s6545_s8 + $0x760] sm:$0xff] }
 0x1db   : > { %v3694_v14 = vadd.f32 %v5562_v48, %v3693_v39  ;;  %v2919_v60 = vmul.f32 %v7038_v32, %v5226_v46  ;;  %v5564_v34 = vpop.eup %5563  ;;  %v3821_v38 = vand.u32 2147483648, %v7273_v5  ;;  %v3476_v43 = vadd.f32 %v3444_v0, %v3374_v44  ;;  %v5201_v51 = vld [vmem:[%s6545_s8 + $0x2a0] sm:$0xff] }
 0x1dc   : > { %v3147_v50 = vadd.f32 %v3115_v59, %v3045_v24  ;;  %v3021_v61 = vmul.f32 %v7044_v26, %v5259_v47  ;;  %v3811_v4 = vmul.f32 %v5564_v34, %v7273_v5  ;;  %v2849_v13 = vadd.f32 %v2817_v22, %v2747_v37  ;;  %v5391_v27 = vld [vmem:[%s6545_s8 + $0x860] sm:$0xff] }
 0x1dd   : > { %v3698_v3 = vsel %vm7301_vm8, %v5562_v48, %v3694_v14  ;;  %v3123_v36 = vmul.f32 %v7063_v40, %v5292_v25  ;;  %vm3816_vm10 = vweird.f32 %v5564_v34  ;;  %v7321_v0 = vadd.f32 %v7158_v19, %v3476_v43  ;;  %v5234_v16 = vld [vmem:[%s6545_s8 + $0x3a0] sm:$0xff] }
 0x1de   : > { %v3703_v6 = vsel %vm7264_vm6, %v3702_v42, %v3698_v3  ;;  %v3249_v1 = vadd.f32 %v3217_v7, %v3147_v50  ;;  %v3812_v11 = vsub.f32 1.0, %v3811_v4  ;;  %v2951_v53 = vadd.f32 %v2919_v60, %v2849_v13  ;;  %vm7343_vm12 = vmor %vm3815_vm9, %vm3816_vm10  ;;  %v5267_v47 = vld [vmem:[%s6545_s8 + $0x4a0] sm:$0xff] }
 0x1df   : > { %v5566_v62 = vpop.eup %5565  ;;  %v4128_v48 = vmul.f32 %v3703_v6, %v7161_v8  ;;  %v2653_v18 = vmul.f32 %v7076_v28, %v2617_v58  ;;  %v3544_v63 = vsub.f32 0.0, %v7321_v0  ;;  %v2723_v52 = vmul.f32 %v7082_v29, %v5168_v2  ;;  %v2625_v14 = vld [vmem:[%s6545_s8 + $0xe0] sm:$0xff] }
 0x1e0   : > { %v7328_v59 = vadd.f32 1.0, %v5566_v62  ;;  %v3351_v42 = vadd.f32 %v3319_v55, %v3249_v1  ;;  %v3813_v7 = vmul.f32 %v5564_v34, %v3812_v11  ;;  %vm7333_vm11 = vcmp.eq.f32.partialorder %v3819_v56, 8.507059e+37  ;;  %v5176_v56 = vld [vmem:[%s6545_s8 + $0x1e0] sm:$0xff] }
 0x1e1   : > { %5416 = vmatmul.msk.f32.gmra.mxu0 %vm4162_vm4, %v4128_v48  ;;  %v3053_v31 = vadd.f32 %v3021_v61, %v2951_v53  ;;  %v3225_v10 = vmul.f32 %v7069_v35, %v5325_v12  ;;  %v3822_v57 = vor.u32 1.1754944e-38, %v3821_v38  ;;  %v3327_v21 = vmul.f32 %v7099_v45, %v5358_v20  ;;  %v5333_v50 = vld [vmem:[%s6545_s8 + $0x6a0] sm:$0xff] }
 0x1e2   : > { %5567 = vrcp.f32 %v7328_v59  ;;  %v2825_v55 = vmul.f32 %v7026_v17, %v5201_v51  ;;  %v3814_v30 = vadd.f32 %v5564_v34, %v3813_v7  ;;  %v3603_v46 = vmul.f32 1.442695, %v3544_v63  ;;  %v5209_v4 = vld [vmem:[%s6545_s8 + $0x2e0] sm:$0xff] }
 0x1e3   : > { %v3453_v39 = vadd.f32 %v3421_v54, %v3351_v42  ;;  %v3155_v23 = vadd.f32 %v3123_v36, %v3053_v31  ;;  %vm3935_vm13 = vweird.f32 %v7328_v59  ;;  %v3429_v5 = vmul.f32 %v7111_v33, %v5391_v27  ;;  %v5300_v54 = vld [vmem:[%s6545_s8 + $0x5a0] sm:$0xff] }
 0x1e4   : > { %v2755_v15 = vadd.f32 %v2723_v52, %v2653_v18  ;;  %v2927_v44 = vmul.f32 %v7038_v32, %v5234_v16  ;;  %v3818_v24 = vsel %vm7343_vm12, %v5564_v34, %v3814_v30  ;;  %5569 = vpow2.f32 %v3603_v46  ;;  %v5242_v12 = vld [vmem:[%s6545_s8 + $0x3e0] sm:$0xff] }
 0x1e5   : > { %v7357_v22 = vadd.f32 %v7158_v19, %v3453_v39  ;;  %v3257_v25 = vadd.f32 %v3225_v10, %v3155_v23  ;;  %v3823_v37 = vsel %vm7333_vm11, %v3822_v57, %v3818_v24  ;;  %v3939_v60 = vand.u32 2147483647, %v7328_v59  ;;  %v5366_v20 = vld [vmem:[%s6545_s8 + $0x7a0] sm:$0xff] }
 0x1e6   : > { %v2857_v38 = vadd.f32 %v2825_v55, %v2755_v15  ;;  %v3029_v43 = vmul.f32 %v7044_v26, %v5267_v47  ;;  %v4136_v34 = vmul.f32 %v3823_v37, %v7198_v49  ;;  %v3941_v61 = vand.u32 2147483648, %v7328_v59  ;;  %v5275_v63 = vld [vmem:[%s6545_s8 + $0x4e0] sm:$0xff]  ;;  %v5153_v37 = vld [vmem:[%s6545_s8 + $0x128] sm:$0xff] }
 0x1e7   : > { %v3521_v58 = vsub.f32 0.0, %v7357_v22  ;;  %v3359_v3 = vadd.f32 %v3327_v21, %v3257_v25  ;;  %v3131_v2 = vmul.f32 %v7063_v40, %v5300_v54  ;;  %v2661_v6 = vmul.f32 %v7076_v28, %v2625_v14  ;;  %v5399_v8 = vld [vmem:[%s6545_s8 + $0x8a0] sm:$0xff] }
 0x1e8   : > { %v5568_v13 = vpop.eup %5567  ;;  %v2959_v36 = vadd.f32 %v2927_v44, %v2857_v38  ;;  %v2731_v1 = vmul.f32 %v7082_v29, %v5176_v56  ;;  %5424 = vmatmul.msk.f32.gmra.mxu1 %vm4162_vm4, %v4136_v34  ;;  %v3233_v11 = vmul.f32 %v7069_v35, %v5333_v50  ;;  %v2833_v51 = vmul.f32 %v7026_v17, %v5209_v4  ;;  %v5308_v10 = vld [vmem:[%s6545_s8 + $0x5e0] sm:$0xff]  ;;  %v2602_v56 = vld [vmem:[%s6545_s8 + $0x28] sm:$0xff] }
 0x1e9   : > { %v3931_v49 = vmul.f32 %v5568_v13, %v7328_v59  ;;  %v3557_v62 = vmul.f32 1.442695, %v3521_v58  ;;  %v3461_v48 = vadd.f32 %v3429_v5, %v3359_v3  ;;  %vm3936_vm14 = vweird.f32 %v5568_v13  ;;  %v5341_v39 = vld [vmem:[%s6545_s8 + $0x6e0] sm:$0xff]  ;;  %v5186_v4 = vld [vmem:[%s6545_s8 + $0x228] sm:$0xff] }
 0x1ea   : > { %v3061_v53 = vadd.f32 %v3029_v43, %v2959_v36  ;;  %v2763_v18 = vadd.f32 %v2731_v1, %v2661_v6  ;;  %v5570_v42 = vpop.eup %5569  ;;  %v2935_v31 = vmul.f32 %v7038_v32, %v5242_v12  ;;  %vm7387_vm15 = vcmp.eq.f32.partialorder %v3939_v60, 8.507059e+37  ;;  %v5374_v23 = vld [vmem:[%s6545_s8 + $0x7e0] sm:$0xff]  ;;  %vm7401_vm0 = vmor %vm3935_vm13, %vm3936_vm14 }
 0x1eb   : > { %v3932_v52 = vsub.f32 1.0, %v3931_v49  ;;  %5571 = vpow2.f32 %v3557_v62  ;;  %v7382_v7 = vadd.f32 %v7158_v19, %v3461_v48  ;;  %v7391_v16 = vadd.f32 1.0, %v5570_v42  ;;  %v5407_v3 = vld [vmem:[%s6545_s8 + $0x8e0] sm:$0xff]  ;;  %v5219_v62 = vld [vmem:[%s6545_s8 + $0x328] sm:$0xff] }
 0x1ec   : > { %v3163_v41 = vadd.f32 %v3131_v2, %v3061_v53  ;;  %v2865_v57 = vadd.f32 %v2833_v51, %v2763_v18  ;;  %v3335_v30 = vmul.f32 %v7099_v45, %v5366_v20  ;;  %v3037_v46 = vmul.f32 %v7044_v26, %v5275_v63 }
 0x1ed   : > { %v3933_v21 = vmul.f32 %v5568_v13, %v3932_v52  ;;  %v3529_v55 = vsub.f32 0.0, %v7382_v7  ;;  %v3942_v5 = vor.u32 1.1754944e-38, %v3941_v61  ;;  %5573 = vrcp.f32 %v7391_v16 }
 0x1ee   : > { %v3437_v15 = vmul.f32 %v7111_v33, %v5399_v8  ;;  %v3139_v44 = vmul.f32 %v7063_v40, %v5308_v10  ;;  %v3265_v54 = vadd.f32 %v3233_v11, %v3163_v41  ;;  %v2967_v14 = vadd.f32 %v2935_v31, %v2865_v57  ;;  %v5252_v10 = vld [vmem:[%s6545_s8 + $0x428] sm:$0xff] }
 0x1ef   : > { %v3934_v24 = vadd.f32 %v5568_v13, %v3933_v21  ;;  %v3573_v25 = vmul.f32 1.442695, %v3529_v55  ;;  %v4059_v59 = vand.u32 2147483647, %v7391_v16  ;;  %v4061_v60 = vand.u32 2147483648, %v7391_v16  ;;  %v5285_v55 = vld [vmem:[%s6545_s8 + $0x528] sm:$0xff] }
 0x1f0   : > { %v3241_v38 = vmul.f32 %v7069_v35, %v5341_v39  ;;  %v3343_v43 = vmul.f32 %v7099_v45, %v5374_v23  ;;  %v3367_v61 = vadd.f32 %v3335_v30, %v3265_v54  ;;  %v3069_v58 = vadd.f32 %v3037_v46, %v2967_v14  ;;  %v5318_v30 = vld [vmem:[%s6545_s8 + $0x628] sm:$0xff] }
 0x1f1   : > { %v5572_v50 = vpop.eup %5571  ;;  %v3938_v34 = vsel %vm7401_vm0, %v5568_v13, %v3934_v24  ;;  %5575 = vpow2.f32 %v3573_v25  ;;  %v2638_v6 = vmul.f32 %v7076_v28, %v2602_v56  ;;  %v2708_v1 = vmul.f32 %v7082_v29, %v5153_v37  ;;  %v5351_v46 = vld [vmem:[%s6545_s8 + $0x728] sm:$0xff] }
 0x1f2   : > { %v3943_v36 = vsel %vm7387_vm15, %v3942_v5, %v3938_v34  ;;  %v7420_v2 = vadd.f32 1.0, %v5572_v50  ;;  %vm4055_vm1 = vweird.f32 %v7391_v16  ;;  %v3469_v49 = vadd.f32 %v3437_v15, %v3367_v61  ;;  %v5384_v5 = vld [vmem:[%s6545_s8 + $0x828] sm:$0xff] }
 0x1f3   : > { %v4144_v12 = vmul.f32 %v3943_v36, %v7269_v9  ;;  %v3171_v13 = vadd.f32 %v3139_v44, %v3069_v58  ;;  %v5574_v48 = vpop.eup %5573  ;;  %v3445_v53 = vmul.f32 %v7111_v33, %v5407_v3  ;;  %v2810_v20 = vmul.f32 %v7026_v17, %v5186_v4  ;;  %v5194_v61 = vld [vmem:[%s6545_s8 + $0x268] sm:$0xff] }
 0x1f4   : > { %5577 = vrcp.f32 %v7420_v2  ;;  %v3716_v11 = vand.u32 2147483648, %v7420_v2  ;;  %v4051_v9 = vmul.f32 %v5574_v48, %v7391_v16  ;;  %v3714_v18 = vand.u32 2147483647, %v7420_v2  ;;  %v5227_v36 = vld [vmem:[%s6545_s8 + $0x368] sm:$0xff] }
 0x1f5   : > { %5432 = vmatmul.msk.f32.gmra.mxu2 %vm4162_vm4, %v4144_v12  ;;  %v7435_v51 = vadd.f32 %v7158_v19, %v3469_v49  ;;  %v3273_v63 = vadd.f32 %v3241_v38, %v3171_v13  ;;  %vm7437_vm2 = vcmp.eq.f32.partialorder %v4059_v59, 8.507059e+37  ;;  %v4062_v52 = vor.u32 1.1754944e-38, %v4061_v60  ;;  %v2610_v38 = vld [vmem:[%s6545_s8 + $0x68] sm:$0xff] }
 0x1f6   : > { %v2740_v8 = vadd.f32 %v2708_v1, %v2638_v6  ;;  %v2912_v31 = vmul.f32 %v7038_v32, %v5219_v62  ;;  %v4052_v41 = vsub.f32 1.0, %v4051_v9  ;;  %vm4056_vm3 = vweird.f32 %v5574_v48 }
 0x1f7   : > { %v5576_v27 = vpop.eup %5575  ;;  %v3537_v57 = vsub.f32 0.0, %v7435_v51  ;;  %v3375_v21 = vadd.f32 %v3343_v43, %v3273_v63  ;;  %vm3710_vm5 = vweird.f32 %v7420_v2  ;;  %v7448_v39 = vor.u32 1.1754944e-38, %v3716_v11  ;;  %vm7461_vm7 = vmor %vm4055_vm1, %vm4056_vm3  ;;  %v5161_v43 = vld [vmem:[%s6545_s8 + $0x168] sm:$0xff] }
 0x1f8   : > { %v7450_v23 = vadd.f32 1.0, %v5576_v27  ;;  %v2842_v47 = vadd.f32 %v2810_v20, %v2740_v8  ;;  %v4053_v15 = vmul.f32 %v5574_v48, %v4052_v41  ;;  %vm7453_vm6 = vcmp.eq.f32.partialorder %v3714_v18, 8.507059e+37  ;;  %v5260_v63 = vld [vmem:[%s6545_s8 + $0x468] sm:$0xff] }
 0x1f9   : > { %v3589_v24 = vmul.f32 1.442695, %v3537_v57  ;;  %v3477_v25 = vadd.f32 %v3445_v53, %v3375_v21  ;;  %v3014_v54 = vmul.f32 %v7044_v26, %v5252_v10  ;;  %v3116_v37 = vmul.f32 %v7063_v40, %v5285_v55  ;;  %v5293_v21 = vld [vmem:[%s6545_s8 + $0x568] sm:$0xff] }
 0x1fa   : > { %v5578_v14 = vpop.eup %5577  ;;  %5579 = vrcp.f32 %v7450_v23  ;;  %v3218_v59 = vmul.f32 %v7069_v35, %v5318_v30  ;;  %v3320_v60 = vmul.f32 %v7099_v45, %v5351_v46  ;;  %v4054_v50 = vadd.f32 %v5574_v48, %v4053_v15 }
 0x1fb   : > { %v3706_v34 = vmul.f32 %v5578_v14, %v7420_v2  ;;  %5581 = vpow2.f32 %v3589_v24  ;;  %v3422_v16 = vmul.f32 %v7111_v33, %v5384_v5  ;;  %vm3711_vm8 = vweird.f32 %v5578_v14  ;;  %v5326_v24 = vld [vmem:[%s6545_s8 + $0x668] sm:$0xff] }
 0x1fc   : > { %v3834_v58 = vand.u32 2147483647, %v7450_v23  ;;  %v7476_v3 = vadd.f32 %v7158_v19, %v3477_v25  ;;  %v2944_v4 = vadd.f32 %v2912_v31, %v2842_v47  ;;  %v4058_v6 = vsel %vm7461_vm7, %v5574_v48, %v4054_v50  ;;  %vm7493_vm9 = vmor %vm3710_vm5, %vm3711_vm8  ;;  %v2618_v25 = vld [vmem:[%s6545_s8 + $0xa8] sm:$0xff] }
 0x1fd   : > { %v3707_v1 = vsub.f32 1.0, %v3706_v34  ;;  %v2646_v12 = vmul.f32 %v7076_v28, %v2610_v38  ;;  %v2716_v49 = vmul.f32 %v7082_v29, %v5161_v43  ;;  %v4063_v13 = vsel %vm7437_vm2, %v4062_v52, %v4058_v6  ;;  %v5169_v38 = vld [vmem:[%s6545_s8 + $0x1a8] sm:$0xff] }
 0x1fe   : > { %v3545_v62 = vsub.f32 0.0, %v7476_v3  ;;  %v3046_v11 = vadd.f32 %v3014_v54, %v2944_v4  ;;  %v2818_v53 = vmul.f32 %v7026_v17, %v5194_v61  ;;  %v4152_v20 = vmul.f32 %v4063_v13, %v7321_v0  ;;  %v5392_v61 = vld [vmem:[%s6545_s8 + $0x868] sm:$0xff] }
 0x1ff   : > { %v3708_v9 = vmul.f32 %v5578_v14, %v3707_v1  ;;  %v2748_v18 = vadd.f32 %v2716_v49, %v2646_v12  ;;  %v2920_v48 = vmul.f32 %v7038_v32, %v5227_v36  ;;  %vm3830_vm10 = vweird.f32 %v7450_v23  ;;  %v5235_v12 = vld [vmem:[%s6545_s8 + $0x3a8] sm:$0xff] }
 0x200   : > { %v5580_v8 = vpop.eup %5579  ;;  %v3836_v52 = vand.u32 2147483648, %v7450_v23  ;;  %v3605_v31 = vmul.f32 1.442695, %v3545_v62  ;;  %v3148_v0 = vadd.f32 %v3116_v37, %v3046_v11  ;;  %5440 = vmatmul.msk.f32.gmra.mxu3 %vm4162_vm4, %v4152_v20  ;;  %vm7501_vm11 = vcmp.eq.f32.partialorder %v3834_v58, 8.507059e+37  ;;  %v5202_v58 = vld [vmem:[%s6545_s8 + $0x2a8] sm:$0xff] }
 0x201   : > { %v5582_v10 = vpop.eup %5581  ;;  %v3709_v27 = vadd.f32 %v5578_v14, %v3708_v9  ;;  %v3826_v41 = vmul.f32 %v5580_v8, %v7450_v23  ;;  %v2850_v57 = vadd.f32 %v2818_v53, %v2748_v18  ;;  %v3022_v46 = vmul.f32 %v7044_v26, %v5260_v63  ;;  %v5268_v53 = vld [vmem:[%s6545_s8 + $0x4a8] sm:$0xff] }
 0x202   : > { %v7506_v55 = vadd.f32 1.0, %v5582_v10  ;;  %5583 = vpow2.f32 %v3605_v31  ;;  %v3250_v30 = vadd.f32 %v3218_v59, %v3148_v0  ;;  %vm3831_vm12 = vweird.f32 %v5580_v8  ;;  %v5359_v59 = vld [vmem:[%s6545_s8 + $0x768] sm:$0xff] }
 0x203   : > { %v3713_v47 = vsel %vm7493_vm9, %v5578_v14, %v3709_v27  ;;  %v3827_v5 = vsub.f32 1.0, %v3826_v41  ;;  %v2952_v15 = vadd.f32 %v2920_v48, %v2850_v57  ;;  %v3837_v56 = vor.u32 1.1754944e-38, %v3836_v52  ;;  %vm7527_vm13 = vmor %vm3830_vm10, %vm3831_vm12  ;;  %v5301_v48 = vld [vmem:[%s6545_s8 + $0x5a8] sm:$0xff] }
 0x204   : > { %v3718_v54 = vsel %vm7453_vm6, %v7448_v39, %v3713_v47  ;;  %5585 = vrcp.f32 %v7506_v55  ;;  %v3124_v37 = vmul.f32 %v7063_v40, %v5293_v21  ;;  %v3954_v50 = vand.u32 2147483647, %v7506_v55  ;;  %v5334_v27 = vld [vmem:[%s6545_s8 + $0x6a8] sm:$0xff] }
 0x205   : > { %v4129_v14 = vmul.f32 %v3718_v54, %v7357_v22  ;;  %v3828_v43 = vmul.f32 %v5580_v8, %v3827_v5  ;;  %v3352_v34 = vadd.f32 %v3320_v60, %v3250_v30  ;;  %v3956_v44 = vand.u32 2147483648, %v7506_v55  ;;  %v5367_v41 = vld [vmem:[%s6545_s8 + $0x7a8] sm:$0xff] }
 0x206   : > { %v3054_v4 = vadd.f32 %v3022_v46, %v2952_v15  ;;  %v3226_v22 = vmul.f32 %v7069_v35, %v5326_v24  ;;  %v2654_v36 = vmul.f32 %v7076_v28, %v2618_v25  ;;  %v3328_v1 = vmul.f32 %v7099_v45, %v5359_v59  ;;  %v2626_v21 = vld [vmem:[%s6545_s8 + $0xe8] sm:$0xff] }
 0x207   : > { %5417 = vmatmul.msk.f32.gmra.mxu0 %vm4162_vm4, %v4129_v14  ;;  %v3829_v60 = vadd.f32 %v5580_v8, %v3828_v43  ;;  %v3454_v6 = vadd.f32 %v3422_v16, %v3352_v34  ;;  %v2724_v23 = vmul.f32 %v7082_v29, %v5169_v38  ;;  %vm3950_vm14 = vweird.f32 %v7506_v55  ;;  %v5177_v47 = vld [vmem:[%s6545_s8 + $0x1e8] sm:$0xff]  ;;  %v7648_v16 = vld [vmem:[%s8637_s1 + $0x6] ss:$0 sm:$0xff] }
 0x208   : > { %v5584_v49 = vpop.eup %5583  ;;  %v3156_v13 = vadd.f32 %v3124_v37, %v3054_v4  ;;  %v3430_v62 = vmul.f32 %v7111_v33, %v5392_v61  ;;  %v2826_v11 = vmul.f32 %v7026_v17, %v5202_v58  ;;  %vm7544_vm15 = vcmp.eq.f32.partialorder %v3954_v50, 8.507059e+37  ;;  %v5210_v5 = vld [vmem:[%s6545_s8 + $0x2e8] sm:$0xff] }
 0x209   : > { %v3833_v20 = vsel %vm7527_vm13, %v5580_v8, %v3829_v60  ;;  %v7548_v29 = vadd.f32 1.0, %v5584_v49  ;;  %v7551_v9 = vadd.f32 %v7158_v19, %v3454_v6  ;;  %v2756_v18 = vadd.f32 %v2724_v23, %v2654_v36  ;;  %v5243_v38 = vld [vmem:[%s6545_s8 + $0x3e8] sm:$0xff]  ;;  %v7619_v6 = vld [vmem:[%s8637_s1 + $0x3] ss:$0 sm:$0xff]  ;;  %v7625_v23 = vld [vmem:[%s8637_s1 + $0x4] ss:$0 sm:$0xff] }
 0x20a   : > { %v7554_v63 = vpop.eup %5585  ;;  %v3838_v17 = vsel %vm7501_vm11, %v3837_v56, %v3833_v20  ;;  %v3957_v42 = vor.u32 1.1754944e-38, %v3956_v44  ;;  %v3258_v8 = vadd.f32 %v3226_v22, %v3156_v13  ;;  %v2928_v52 = vmul.f32 %v7038_v32, %v5235_v12  ;;  %v5276_v14 = vld [vmem:[%s6545_s8 + $0x4e8] sm:$0xff] }
 0x20b   : > { %v4137_v31 = vmul.f32 %v3838_v17, %v7382_v7  ;;  %v3946_v0 = vmul.f32 %v7554_v63, %v7506_v55  ;;  %5587 = vrcp.f32 %v7548_v29  ;;  %v3030_v10 = vmul.f32 %v7044_v26, %v5268_v53  ;;  %v7606_v55 = vld [vmem:[%s8637_s1 + $0x2] ss:$0 sm:$0xff]  ;;  %v5309_v22 = vld [vmem:[%s6545_s8 + $0x5e8] sm:$0xff]  ;;  %v5154_v53 = vld [vmem:[%s6545_s8 + $0x130] sm:$0xff] }
 0x20c   : > { %v4074_v2 = vand.u32 2147483647, %v7548_v29  ;;  %v4076_v57 = vand.u32 2147483648, %v7548_v29  ;;  %v3522_v32 = vsub.f32 0.0, %v7551_v9  ;;  %v3132_v7 = vmul.f32 %v7063_v40, %v5301_v48  ;;  %v5400_v40 = vld [vmem:[%s6545_s8 + $0x8a8] sm:$0xff] }
 0x20d   : > { %5425 = vmatmul.msk.f32.gmra.mxu1 %vm4162_vm4, %v4137_v31  ;;  %v3947_v30 = vsub.f32 1.0, %v3946_v0  ;;  %vm3951_vm0 = vweird.f32 %v7554_v63  ;;  %v3360_v26 = vadd.f32 %v3328_v1, %v3258_v8  ;;  %v2858_v46 = vadd.f32 %v2826_v11, %v2756_v18  ;;  %v2603_v11 = vld [vmem:[%s6545_s8 + $0x30] sm:$0xff]  ;;  %v7640_v17 = vld [vmem:[%s8637_s1 + $0x5] ss:$0 sm:$0xff] }
 0x20e   : > { %vm4070_vm1 = vweird.f32 %v7548_v29  ;;  %v3559_v15 = vmul.f32 1.442695, %v3522_v32  ;;  %v3234_v24 = vmul.f32 %v7069_v35, %v5334_v27  ;;  %v3336_v25 = vmul.f32 %v7099_v45, %v5367_v41  ;;  %vm7587_vm2 = vmor %vm3950_vm14, %vm3951_vm0  ;;  %v5187_v8 = vld [vmem:[%s6545_s8 + $0x230] sm:$0xff]  ;;  %v7656_v32 = vld [vmem:[%s8637_s1] ss:$0 sm:$0xff] }
 0x20f   : > { %v3948_v54 = vmul.f32 %v7554_v63, %v3947_v30  ;;  %v3462_v56 = vadd.f32 %v3430_v62, %v3360_v26  ;;  %v2960_v37 = vadd.f32 %v2928_v52, %v2858_v46  ;;  %v2662_v59 = vmul.f32 %v7076_v28, %v2626_v21  ;;  %v7600_v28 = vld [vmem:[%s8637_s1 + $0x1] ss:$0 sm:$0xff] }
 0x210   : > { %vm7591_vm3 = vcmp.eq.f32.partialorder %v4074_v2, 8.507059e+37  ;;  %v7595_v45 = vor.u32 1.1754944e-38, %v4076_v57  ;;  %5589 = vpow2.f32 %v3559_v15  ;;  %v2732_v50 = vmul.f32 %v7600_v28, %v5177_v47  ;;  %v5375_v57 = vld [vmem:[%s6545_s8 + $0x7e8] sm:$0xff] }
 0x211   : > { %v2834_v34 = vmul.f32 %v7606_v55, %v5210_v5  ;;  %v5588_v61 = vpop.eup %5587  ;;  %v3949_v58 = vadd.f32 %v7554_v63, %v3948_v54  ;;  %v7611_v39 = vadd.f32 %v7158_v19, %v3462_v56  ;;  %v3062_v44 = vadd.f32 %v3030_v10, %v2960_v37  ;;  %v5220_v10 = vld [vmem:[%s6545_s8 + $0x330] sm:$0xff] }
 0x212   : > { %v3438_v4 = vmul.f32 %v7111_v33, %v5400_v40  ;;  %v4066_v36 = vmul.f32 %v5588_v61, %v7548_v29  ;;  %v2764_v60 = vadd.f32 %v2732_v50, %v2662_v59  ;;  %v2936_v1 = vmul.f32 %v7619_v6, %v5243_v38  ;;  %v5342_v33 = vld [vmem:[%s6545_s8 + $0x6e8] sm:$0xff]  ;;  %v5253_v40 = vld [vmem:[%s6545_s8 + $0x430] sm:$0xff] }
 0x213   : > { %v3038_v12 = vmul.f32 %v7625_v23, %v5276_v14  ;;  %v3953_v49 = vsel %vm7587_vm2, %v7554_v63, %v3949_v58  ;;  %vm4071_vm5 = vweird.f32 %v5588_v61  ;;  %v3530_v13 = vsub.f32 0.0, %v7611_v39  ;;  %v5408_v14 = vld [vmem:[%s6545_s8 + $0x8e8] sm:$0xff]  ;;  %v5286_v50 = vld [vmem:[%s6545_s8 + $0x530] sm:$0xff] }
 0x214   : > { %v3164_v62 = vadd.f32 %v3132_v7, %v3062_v44  ;;  %v3958_v20 = vsel %vm7544_vm15, %v3957_v42, %v3953_v49  ;;  %v4067_v18 = vsub.f32 1.0, %v4066_v36  ;;  %v2866_v48 = vadd.f32 %v2834_v34, %v2764_v60  ;;  %vm7664_vm6 = vmor %vm4070_vm1, %vm4071_vm5  ;;  %v2611_v44 = vld [vmem:[%s6545_s8 + $0x70] sm:$0xff] }
 0x215   : > { %v3140_v63 = vmul.f32 %v7640_v17, %v5309_v22  ;;  %v4145_v52 = vmul.f32 %v3958_v20, %v7435_v51  ;;  %v3575_v31 = vmul.f32 1.442695, %v3530_v13  ;;  %v3242_v42 = vmul.f32 %v7648_v16, %v5342_v33  ;;  %v5319_v60 = vld [vmem:[%s6545_s8 + $0x630] sm:$0xff] }
 0x216   : > { %v3266_v0 = vadd.f32 %v3234_v24, %v3164_v62  ;;  %v5590_v27 = vpop.eup %5589  ;;  %v4068_v41 = vmul.f32 %v5588_v61, %v4067_v18  ;;  %v2968_v2 = vadd.f32 %v2936_v1, %v2866_v48  ;;  %v2639_v51 = vmul.f32 %v7656_v32, %v2603_v11  ;;  %v5352_v1 = vld [vmem:[%s6545_s8 + $0x730] sm:$0xff] }
 0x217   : > { %v2709_v7 = vmul.f32 %v7600_v28, %v5154_v53  ;;  %5433 = vmatmul.msk.f32.gmra.mxu2 %vm4162_vm4, %v4145_v52  ;;  %v7668_v30 = vadd.f32 1.0, %v5590_v27  ;;  %5591 = vpow2.f32 %v3575_v31  ;;  %v2811_v46 = vmul.f32 %v7606_v55, %v5187_v8  ;;  %v5385_v49 = vld [vmem:[%s6545_s8 + $0x830] sm:$0xff] }
 0x218   : > { %v3368_v26 = vadd.f32 %v3336_v25, %v3266_v0  ;;  %v4069_v47 = vadd.f32 %v5588_v61, %v4068_v41  ;;  %v3070_v5 = vadd.f32 %v3038_v12, %v2968_v2  ;;  %v2913_v24 = vmul.f32 %v7619_v6, %v5220_v10  ;;  %v7679_v25 = vld [vmem:[%s8637_s1 + $0x7] ss:$0 sm:$0xff]  ;;  %v5162_v12 = vld [vmem:[%s6545_s8 + $0x170] sm:$0xff] }
 0x219   : > { %v2741_v15 = vadd.f32 %v2709_v7, %v2639_v51  ;;  %5593 = vrcp.f32 %v7668_v30  ;;  %v3729_v29 = vand.u32 2147483647, %v7668_v30  ;;  %v3731_v54 = vand.u32 2147483648, %v7668_v30  ;;  %v5195_v13 = vld [vmem:[%s6545_s8 + $0x270] sm:$0xff] }
 0x21a   : > { %v3344_v56 = vmul.f32 %v7679_v25, %v5375_v57  ;;  %v4073_v37 = vsel %vm7664_vm6, %v5588_v61, %v4069_v47  ;;  %v3470_v59 = vadd.f32 %v3438_v4, %v3368_v26  ;;  %v3172_v38 = vadd.f32 %v3140_v63, %v3070_v5  ;;  %v5228_v48 = vld [vmem:[%s6545_s8 + $0x370] sm:$0xff] }
 0x21b   : > { %v2843_v43 = vadd.f32 %v2811_v46, %v2741_v15  ;;  %v4078_v34 = vsel %vm7591_vm3, %v7595_v45, %v4073_v37  ;;  %v3015_v58 = vmul.f32 %v7625_v23, %v5253_v40  ;;  %vm3725_vm7 = vweird.f32 %v7668_v30  ;;  %v7704_v45 = vld [vmem:[%s8637_s1 + $0x8] ss:$0 sm:$0xff]  ;;  %v5261_v51 = vld [vmem:[%s6545_s8 + $0x470] sm:$0xff]  ;;  %v7738_v40 = vld [vmem:[%s8638_s2] ss:$0 sm:$0xff] }
 0x21c   : > { %v4153_v22 = vmul.f32 %v4078_v34, %v7476_v3  ;;  %v7693_v36 = vadd.f32 %v7158_v19, %v3470_v59  ;;  %v3274_v61 = vadd.f32 %v3242_v42, %v3172_v38  ;;  %v7699_v35 = vor.u32 1.1754944e-38, %v3731_v54  ;;  %v5294_v46 = vld [vmem:[%s6545_s8 + $0x570] sm:$0xff] }
 0x21d   : > { %v2945_v4 = vadd.f32 %v2913_v24, %v2843_v43  ;;  %v5592_v33 = vpop.eup %5591  ;;  %v3446_v3 = vmul.f32 %v7704_v45, %v5408_v14  ;;  %v3117_v19 = vmul.f32 %v7640_v17, %v5286_v50  ;;  %vm7711_vm8 = vcmp.eq.f32.partialorder %v3729_v29, 8.507059e+37  ;;  %v5327_v47 = vld [vmem:[%s6545_s8 + $0x670] sm:$0xff] }
 0x21e   : > { %5441 = vmatmul.msk.f32.gmra.mxu3 %vm4162_vm4, %v4153_v22  ;;  %v7715_v11 = vadd.f32 1.0, %v5592_v33  ;;  %v3538_v53 = vsub.f32 0.0, %v7693_v36  ;;  %v3376_v20 = vadd.f32 %v3344_v56, %v3274_v61  ;;  %v3219_v8 = vmul.f32 %v7648_v16, %v5319_v60  ;;  %v5360_v5 = vld [vmem:[%s6545_s8 + $0x770] sm:$0xff] }
 0x21f   : > { %v3047_v18 = vadd.f32 %v3015_v58, %v2945_v4  ;;  %v5594_v63 = vpop.eup %5593  ;;  %v3321_v52 = vmul.f32 %v7679_v25, %v5352_v1  ;;  %v2647_v31 = vmul.f32 %v7656_v32, %v2611_v44  ;;  %v2717_v0 = vmul.f32 %v7600_v28, %v5162_v12  ;;  %v2619_v54 = vld [vmem:[%s6545_s8 + $0xb0] sm:$0xff] }
 0x220   : > { %v3721_v42 = vmul.f32 %v5594_v63, %v7668_v30  ;;  %5595 = vrcp.f32 %v7715_v11  ;;  %v3423_v10 = vmul.f32 %v7704_v45, %v5385_v49  ;;  %v2819_v27 = vmul.f32 %v7606_v55, %v5195_v13  ;;  %v5170_v14 = vld [vmem:[%s6545_s8 + $0x1b0] sm:$0xff] }
 0x221   : > { %vm3726_vm9 = vweird.f32 %v5594_v63  ;;  %v3591_v41 = vmul.f32 1.442695, %v3538_v53  ;;  %v3478_v2 = vadd.f32 %v3446_v3, %v3376_v20  ;;  %v2921_v57 = vmul.f32 %v7619_v6, %v5228_v48  ;;  %v5203_v22 = vld [vmem:[%s6545_s8 + $0x2b0] sm:$0xff] }
 0x222   : > { %v3722_v7 = vsub.f32 1.0, %v3721_v42  ;;  %vm3845_vm10 = vweird.f32 %v7715_v11  ;;  %v3149_v21 = vadd.f32 %v3117_v19, %v3047_v18  ;;  %v2749_v26 = vadd.f32 %v2717_v0, %v2647_v31  ;;  %vm7749_vm11 = vmor %vm3725_vm7, %vm3726_vm9  ;;  %v5236_v20 = vld [vmem:[%s6545_s8 + $0x3b0] sm:$0xff] }
 0x223   : > { %v3849_v15 = vand.u32 2147483647, %v7715_v11  ;;  %v3851_v24 = vand.u32 2147483648, %v7715_v11  ;;  %5597 = vpow2.f32 %v3591_v41  ;;  %v7741_v29 = vadd.f32 %v7738_v40, %v3478_v2  ;;  %v5269_v18 = vld [vmem:[%s6545_s8 + $0x4b0] sm:$0xff] }
 0x224   : > { %v3723_v56 = vmul.f32 %v5594_v63, %v3722_v7  ;;  %v3251_v37 = vadd.f32 %v3219_v8, %v3149_v21  ;;  %v2851_v59 = vadd.f32 %v2819_v27, %v2749_v26  ;;  %v3023_v38 = vmul.f32 %v7625_v23, %v5261_v51  ;;  %v5393_v31 = vld [vmem:[%s6545_s8 + $0x870] sm:$0xff] }
 0x225   : > { %v3546_v50 = vsub.f32 0.0, %v7741_v29  ;;  %v3125_v34 = vmul.f32 %v7640_v17, %v5294_v46  ;;  %v3227_v58 = vmul.f32 %v7648_v16, %v5327_v47  ;;  %v3329_v44 = vmul.f32 %v7679_v25, %v5360_v5  ;;  %v5335_v51 = vld [vmem:[%s6545_s8 + $0x6b0] sm:$0xff] }
 0x226   : > { %v5596_v61 = vpop.eup %5595  ;;  %v3724_v4 = vadd.f32 %v5594_v63, %v3723_v56  ;;  %v3353_v60 = vadd.f32 %v3321_v52, %v3251_v37  ;;  %v2953_v1 = vadd.f32 %v2921_v57, %v2851_v59  ;;  %v2655_v30 = vmul.f32 %v7656_v32, %v2619_v54  ;;  %v5310_v7 = vld [vmem:[%s6545_s8 + $0x5f0] sm:$0xff] }
 0x227   : > { %v3841_v12 = vmul.f32 %v5596_v61, %v7715_v11  ;;  %vm3846_vm12 = vweird.f32 %v5596_v61  ;;  %v3607_v33 = vmul.f32 1.442695, %v3546_v50  ;;  %v2725_v3 = vmul.f32 %v7600_v28, %v5170_v14  ;;  %v5368_v11 = vld [vmem:[%s6545_s8 + $0x7b0] sm:$0xff] }
 0x228   : > { %v3728_v19 = vsel %vm7749_vm11, %v5594_v63, %v3724_v4  ;;  %v3455_v49 = vadd.f32 %v3423_v10, %v3353_v60  ;;  %v3055_v13 = vadd.f32 %v3023_v38, %v2953_v1  ;;  %v2827_v53 = vmul.f32 %v7606_v55, %v5203_v22  ;;  %vm7784_vm13 = vmor %vm3845_vm10, %vm3846_vm12  ;;  %v2627_v1 = vld [vmem:[%s6545_s8 + $0xf0] sm:$0xff] }
 0x229   : > { %v5598_v48 = vpop.eup %5597  ;;  %v3733_v8 = vsel %vm7711_vm8, %v7699_v35, %v3728_v19  ;;  %v3842_v52 = vsub.f32 1.0, %v3841_v12  ;;  %5599 = vpow2.f32 %v3607_v33  ;;  %v2757_v0 = vadd.f32 %v2725_v3, %v2655_v30  ;;  %v5302_v35 = vld [vmem:[%s6545_s8 + $0x5b0] sm:$0xff] }
 0x22a   : > { %v4130_v42 = vmul.f32 %v3733_v8, %v7551_v9  ;;  %v7771_v63 = vadd.f32 1.0, %v5598_v48  ;;  %v7774_v10 = vadd.f32 %v7738_v40, %v3455_v49  ;;  %v3157_v27 = vadd.f32 %v3125_v34, %v3055_v13  ;;  %v5178_v30 = vld [vmem:[%s6545_s8 + $0x1f0] sm:$0xff] }
 0x22b   : > { %v3843_v41 = vmul.f32 %v5596_v61, %v3842_v52  ;;  %v2859_v2 = vadd.f32 %v2827_v53, %v2757_v0  ;;  %v2929_v57 = vmul.f32 %v7619_v6, %v5236_v20  ;;  %v3031_v62 = vmul.f32 %v7625_v23, %v5269_v18  ;;  %v5211_v33 = vld [vmem:[%s6545_s8 + $0x2f0] sm:$0xff] }
 0x22c   : > { %5418 = vmatmul.msk.f32.gmra.mxu0 %vm4162_vm4, %v4130_v42  ;;  %vm7788_vm14 = vcmp.eq.f32.partialorder %v3849_v15, 8.507059e+37  ;;  %v3852_v21 = vor.u32 1.1754944e-38, %v3851_v24  ;;  %5601 = vrcp.f32 %v7771_v63  ;;  %v3431_v26 = vmul.f32 %v7704_v45, %v5393_v31  ;;  %v5244_v18 = vld [vmem:[%s6545_s8 + $0x3f0] sm:$0xff] }
 0x22d   : > { %v3844_v46 = vadd.f32 %v5596_v61, %v3843_v41  ;;  %v3523_v47 = vsub.f32 0.0, %v7774_v10  ;;  %v3259_v5 = vadd.f32 %v3227_v58, %v3157_v27  ;;  %v2961_v54 = vadd.f32 %v2929_v57, %v2859_v2  ;;  %v5401_v58 = vld [vmem:[%s6545_s8 + $0x8b0] sm:$0xff] }
 0x22e   : > { %v3133_v56 = vmul.f32 %v7640_v17, %v5302_v35  ;;  %v3235_v15 = vmul.f32 %v7648_v16, %v5335_v51  ;;  %v3337_v34 = vmul.f32 %v7679_v25, %v5368_v11  ;;  %vm3965_vm15 = vweird.f32 %v7771_v63  ;;  %v5277_v2 = vld [vmem:[%s6545_s8 + $0x4f0] sm:$0xff] }
 0x22f   : > { %v5600_v37 = vpop.eup %5599  ;;  %v3848_v24 = vsel %vm7784_vm13, %v5596_v61, %v3844_v46  ;;  %v3561_v59 = vmul.f32 1.442695, %v3523_v47  ;;  %v3361_v38 = vadd.f32 %v3329_v44, %v3259_v5  ;;  %v3063_v14 = vadd.f32 %v3031_v62, %v2961_v54 }
 0x230   : > { %v3853_v43 = vsel %vm7788_vm14, %v3852_v21, %v3848_v24  ;;  %v7802_v50 = vadd.f32 1.0, %v5600_v37  ;;  %v3969_v44 = vand.u32 2147483647, %v7771_v63  ;;  %v3971_v12 = vand.u32 2147483648, %v7771_v63 }
 0x231   : > { %v4138_v22 = vmul.f32 %v3853_v43, %v7611_v39  ;;  %5603 = vpow2.f32 %v3561_v59  ;;  %v3463_v4 = vadd.f32 %v3431_v26, %v3361_v38  ;;  %v3165_v60 = vadd.f32 %v3133_v56, %v3063_v14  ;;  %v5343_v56 = vld [vmem:[%s6545_s8 + $0x6f0] sm:$0xff] }
 0x232   : > { %v5602_v61 = vpop.eup %5601  ;;  %5605 = vrcp.f32 %v7802_v50  ;;  %v3439_v49 = vmul.f32 %v7704_v45, %v5401_v58  ;;  %v4089_v13 = vand.u32 2147483647, %v7802_v50  ;;  %v2663_v53 = vmul.f32 %v7656_v32, %v2627_v1  ;;  %v5409_v58 = vld [vmem:[%s6545_s8 + $0x8f0] sm:$0xff] }
 0x233   : > { %5426 = vmatmul.msk.f32.gmra.mxu1 %vm4162_vm4, %v4138_v22  ;;  %v3961_v39 = vmul.f32 %v5602_v61, %v7771_v63  ;;  %v7817_v3 = vadd.f32 %v7738_v40, %v3463_v4  ;;  %v3267_v19 = vadd.f32 %v3235_v15, %v3165_v60  ;;  %vm3966_vm0 = vweird.f32 %v5602_v61  ;;  %v2604_v15 = vld [vmem:[%s6545_s8 + $0x38] sm:$0xff] }
 0x234   : > { %v2733_v20 = vmul.f32 %v7600_v28, %v5178_v30  ;;  %v2835_v31 = vmul.f32 %v7606_v55, %v5211_v33  ;;  %vm7826_vm1 = vcmp.eq.f32.partialorder %v3969_v44, 8.507059e+37  ;;  %v3972_v42 = vor.u32 1.1754944e-38, %v3971_v12  ;;  %vm7837_vm2 = vmor %vm3965_vm15, %vm3966_vm0  ;;  %v5155_v22 = vld [vmem:[%s6545_s8 + $0x138] sm:$0xff] }
 0x235   : > { %v3962_v48 = vsub.f32 1.0, %v3961_v39  ;;  %v3531_v8 = vsub.f32 0.0, %v7817_v3  ;;  %v3369_v52 = vadd.f32 %v3337_v34, %v3267_v19  ;;  %v4091_v27 = vand.u32 2147483648, %v7802_v50  ;;  %v5376_v34 = vld [vmem:[%s6545_s8 + $0x7f0] sm:$0xff]  ;;  %v5188_v39 = vld [vmem:[%s6545_s8 + $0x238] sm:$0xff] }
 0x236   : > { %v2765_v41 = vadd.f32 %v2733_v20, %v2663_v53  ;;  %v2937_v9 = vmul.f32 %v7619_v6, %v5244_v18  ;;  %vm4085_vm3 = vweird.f32 %v7802_v50  ;;  %vm7842_vm5 = vcmp.eq.f32.partialorder %v4089_v13, 8.507059e+37  ;;  %v5221_v53 = vld [vmem:[%s6545_s8 + $0x338] sm:$0xff] }
 0x237   : > { %v5604_v57 = vpop.eup %5603  ;;  %v3963_v62 = vmul.f32 %v5602_v61, %v3962_v48  ;;  %v3577_v35 = vmul.f32 1.442695, %v3531_v8  ;;  %v3471_v51 = vadd.f32 %v3439_v49, %v3369_v52  ;;  %v3039_v63 = vmul.f32 %v7625_v23, %v5277_v2  ;;  %v5262_v19 = vld [vmem:[%s6545_s8 + $0x478] sm:$0xff] }
 0x238   : > { %v5606_v21 = vpop.eup %5605  ;;  %v7846_v47 = vadd.f32 1.0, %v5604_v57  ;;  %v2867_v5 = vadd.f32 %v2835_v31, %v2765_v41  ;;  %v4092_v37 = vor.u32 1.1754944e-38, %v4091_v27  ;;  %v3141_v24 = vmul.f32 %v7640_v17, %v5310_v7  ;;  %v5287_v7 = vld [vmem:[%s6545_s8 + $0x538] sm:$0xff] }
 0x239   : > { %v3964_v54 = vadd.f32 %v5602_v61, %v3963_v62  ;;  %v4081_v11 = vmul.f32 %v5606_v21, %v7802_v50  ;;  %5607 = vpow2.f32 %v3577_v35  ;;  %vm4086_vm6 = vweird.f32 %v5606_v21  ;;  %v5254_v62 = vld [vmem:[%s6545_s8 + $0x438] sm:$0xff] }
 0x23a   : > { %5609 = vrcp.f32 %v7846_v47  ;;  %v7857_v14 = vadd.f32 %v7738_v40, %v3471_v51  ;;  %v2969_v43 = vadd.f32 %v2937_v9, %v2867_v5  ;;  %v3744_v60 = vand.u32 2147483647, %v7846_v47  ;;  %vm7873_vm7 = vmor %vm4085_vm3, %vm4086_vm6  ;;  %v2612_v35 = vld [vmem:[%s6545_s8 + $0x78] sm:$0xff] }
 0x23b   : > { %v3968_v59 = vsel %vm7837_vm2, %v5602_v61, %v3964_v54  ;;  %v4082_v38 = vsub.f32 1.0, %v4081_v11  ;;  %v3243_v1 = vmul.f32 %v7648_v16, %v5343_v56  ;;  %v2640_v30 = vmul.f32 %v7656_v32, %v2604_v15  ;;  %v5353_v56 = vld [vmem:[%s6545_s8 + $0x738] sm:$0xff] }
 0x23c   : > { %v3973_v4 = vsel %vm7826_vm1, %v3972_v42, %v3968_v59  ;;  %v3539_v12 = vsub.f32 0.0, %v7857_v14  ;;  %v3071_v33 = vadd.f32 %v3039_v63, %v2969_v43  ;;  %vm3740_vm8 = vweird.f32 %v7846_v47  ;;  %v5320_v63 = vld [vmem:[%s6545_s8 + $0x638] sm:$0xff] }
 0x23d   : > { %v4146_v61 = vmul.f32 %v3973_v4, %v7693_v36  ;;  %v4083_v44 = vmul.f32 %v5606_v21, %v4082_v38  ;;  %v3345_v49 = vmul.f32 %v7679_v25, %v5376_v34  ;;  %v3447_v13 = vmul.f32 %v7704_v45, %v5409_v58  ;;  %v5196_v58 = vld [vmem:[%s6545_s8 + $0x278] sm:$0xff] }
 0x23e   : > { %v2710_v36 = vmul.f32 %v7600_v28, %v5155_v22  ;;  %v3746_v50 = vand.u32 2147483648, %v7846_v47  ;;  %v3593_v48 = vmul.f32 1.442695, %v3539_v12  ;;  %v3173_v8 = vadd.f32 %v3141_v24, %v3071_v33  ;;  %v5386_v24 = vld [vmem:[%s6545_s8 + $0x838] sm:$0xff] }
 0x23f   : > { %v5608_v20 = vpop.eup %5607  ;;  %5434 = vmatmul.msk.f32.gmra.mxu2 %vm4162_vm4, %v4146_v61  ;;  %v4084_v18 = vadd.f32 %v5606_v21, %v4083_v44  ;;  %vm7884_vm9 = vcmp.eq.f32.partialorder %v3744_v60, 8.507059e+37  ;;  %v2812_v27 = vmul.f32 %v7606_v55, %v5188_v39  ;;  %v2914_v57 = vmul.f32 %v7619_v6, %v5221_v53  ;;  %v5336_v12 = vld [vmem:[%s6545_s8 + $0x6b8] sm:$0xff] }
 0x240   : > { %v5610_v52 = vpop.eup %5609  ;;  %v7888_v0 = vadd.f32 1.0, %v5608_v20  ;;  %v2742_v42 = vadd.f32 %v2710_v36, %v2640_v30  ;;  %5611 = vpow2.f32 %v3593_v48  ;;  %v3275_v11 = vadd.f32 %v3243_v1, %v3173_v8  ;;  %v5229_v30 = vld [vmem:[%s6545_s8 + $0x378] sm:$0xff] }
 0x241   : > { %v4088_v41 = vsel %vm7873_vm7, %v5606_v21, %v4084_v18  ;;  %v3736_v2 = vmul.f32 %v5610_v52, %v7846_v47  ;;  %vm3741_vm10 = vweird.f32 %v5610_v52  ;;  %v5163_v21 = vld [vmem:[%s6545_s8 + $0x178] sm:$0xff]  ;;  %v3747_v15 = vor.u32 1.1754944e-38, %v3746_v50 }
 0x242   : > { %v4093_v51 = vsel %vm7842_vm5, %v4092_v37, %v4088_v41  ;;  %5613 = vrcp.f32 %v7888_v0  ;;  %v3864_v9 = vand.u32 2147483647, %v7888_v0  ;;  %v3866_v54 = vand.u32 2147483648, %v7888_v0  ;;  %vm7917_vm11 = vmor %vm3740_vm8, %vm3741_vm10  ;;  %v5361_v41 = vld [vmem:[%s6545_s8 + $0x778] sm:$0xff] }
 0x243   : > { %v4154_v26 = vmul.f32 %v4093_v51, %v7741_v29  ;;  %v3737_v5 = vsub.f32 1.0, %v3736_v2  ;;  %v2844_v46 = vadd.f32 %v2812_v27, %v2742_v42  ;;  %v3016_v37 = vmul.f32 %v7625_v23, %v5254_v62  ;;  %v5328_v27 = vld [vmem:[%s6545_s8 + $0x678] sm:$0xff] }
 0x244   : > { %v2648_v59 = vmul.f32 %v7656_v32, %v2612_v35  ;;  %v3377_v43 = vadd.f32 %v3345_v49, %v3275_v11  ;;  %v3118_v29 = vmul.f32 %v7640_v17, %v5287_v7  ;;  %v2718_v34 = vmul.f32 %v7600_v28, %v5163_v21  ;;  %v5295_v49 = vld [vmem:[%s6545_s8 + $0x578] sm:$0xff] }
 0x245   : > { %5442 = vmatmul.msk.f32.gmra.mxu3 %vm4162_vm4, %v4154_v26  ;;  %v3738_v38 = vmul.f32 %v5610_v52, %v3737_v5  ;;  %vm3860_vm12 = vweird.f32 %v7888_v0  ;;  %v2946_v4 = vadd.f32 %v2914_v57, %v2844_v46  ;;  %v3220_v60 = vmul.f32 %v7648_v16, %v5320_v63  ;;  %v5171_v7 = vld [vmem:[%s6545_s8 + $0x1b8] sm:$0xff] }
 0x246   : > { %v3322_v1 = vmul.f32 %v7679_v25, %v5353_v56  ;;  %v5612_v61 = vpop.eup %5611  ;;  %vm7925_vm13 = vcmp.eq.f32.partialorder %v3864_v9, 8.507059e+37  ;;  %v3867_v47 = vor.u32 1.1754944e-38, %v3866_v54  ;;  %v3479_v33 = vadd.f32 %v3447_v13, %v3377_v43  ;;  %v5204_v21 = vld [vmem:[%s6545_s8 + $0x2b8] sm:$0xff] }
 0x247   : > { %v3739_v44 = vadd.f32 %v5610_v52, %v3738_v38  ;;  %v3424_v39 = vmul.f32 %v7704_v45, %v5386_v24  ;;  %v7932_v53 = vadd.f32 1.0, %v5612_v61  ;;  %v3048_v20 = vadd.f32 %v3016_v37, %v2946_v4  ;;  %v5237_v56 = vld [vmem:[%s6545_s8 + $0x3b8] sm:$0xff] }
 0x248   : > { %v5614_v36 = vpop.eup %5613  ;;  %v2750_v18 = vadd.f32 %v2718_v34, %v2648_v59  ;;  %v2820_v50 = vmul.f32 %v7606_v55, %v5196_v58  ;;  %v7939_v13 = vadd.f32 %v7738_v40, %v3479_v33  ;;  %v2922_v42 = vmul.f32 %v7619_v6, %v5229_v30  ;;  %v5394_v24 = vld [vmem:[%s6545_s8 + $0x878] sm:$0xff] }
 0x249   : > { %v3743_v48 = vsel %vm7917_vm11, %v5610_v52, %v3739_v44  ;;  %v3856_v8 = vmul.f32 %v5614_v36, %v7888_v0  ;;  %5615 = vrcp.f32 %v7932_v53  ;;  %v3024_v57 = vmul.f32 %v7625_v23, %v5262_v19  ;;  %v2620_v52 = vld [vmem:[%s6545_s8 + $0xb8] sm:$0xff] }
 0x24a   : > { %v3748_v2 = vsel %vm7884_vm9, %v3747_v15, %v3743_v48  ;;  %v3126_v62 = vmul.f32 %v7640_v17, %v5295_v49  ;;  %vm3861_vm14 = vweird.f32 %v5614_v36  ;;  %v3547_v9 = vsub.f32 0.0, %v7939_v13  ;;  %v5270_v43 = vld [vmem:[%s6545_s8 + $0x4b8] sm:$0xff] }
 0x24b   : > { %v4131_v35 = vmul.f32 %v3748_v2, %v7774_v10  ;;  %v3857_v51 = vsub.f32 1.0, %v3856_v8  ;;  %v3150_v26 = vadd.f32 %v3118_v29, %v3048_v20  ;;  %v2852_v31 = vadd.f32 %v2820_v50, %v2750_v18  ;;  %vm7962_vm0 = vmor %vm3860_vm12, %vm3861_vm14  ;;  %v2628_v49 = vld [vmem:[%s6545_s8 + $0xf8] sm:$0xff] }
 0x24c   : > { %v3228_v5 = vmul.f32 %v7648_v16, %v5328_v27  ;;  %v3330_v54 = vmul.f32 %v7679_v25, %v5361_v41  ;;  %vm3980_vm15 = vweird.f32 %v7932_v53  ;;  %v3609_v10 = vmul.f32 1.442695, %v3547_v9  ;;  %v5303_v48 = vld [vmem:[%s6545_s8 + $0x5b8] sm:$0xff] }
 0x24d   : > { %5419 = vmatmul.msk.f32.gmra.mxu0 %vm4162_vm4, %v4131_v35  ;;  %v3858_v11 = vmul.f32 %v5614_v36, %v3857_v51  ;;  %v2656_v63 = vmul.f32 %v7656_v32, %v2620_v52  ;;  %v3252_v46 = vadd.f32 %v3220_v60, %v3150_v26  ;;  %v2954_v37 = vadd.f32 %v2922_v42, %v2852_v31  ;;  %v5179_v8 = vld [vmem:[%s6545_s8 + $0x1f8] sm:$0xff] }
 0x24e   : > { %v2726_v59 = vmul.f32 %v7600_v28, %v5171_v7  ;;  %v2828_v38 = vmul.f32 %v7606_v55, %v5204_v21  ;;  %v3984_v34 = vand.u32 2147483647, %v7932_v53  ;;  %v3986_v58 = vand.u32 2147483648, %v7932_v53  ;;  %v5212_v42 = vld [vmem:[%s6545_s8 + $0x2f8] sm:$0xff] }
 0x24f   : > { %v3859_v29 = vadd.f32 %v5614_v36, %v3858_v11  ;;  %5617 = vpow2.f32 %v3609_v10  ;;  %v5616_v0 = vpop.eup %5615  ;;  %v3354_v22 = vadd.f32 %v3322_v1, %v3252_v46  ;;  %v3056_v4 = vadd.f32 %v3024_v57, %v2954_v37  ;;  %v5369_v35 = vld [vmem:[%s6545_s8 + $0x7b8] sm:$0xff] }
 0x250   : > { %v2758_v60 = vadd.f32 %v2726_v59, %v2656_v63  ;;  %v2930_v30 = vmul.f32 %v7619_v6, %v5237_v56  ;;  %v3976_v44 = vmul.f32 %v5616_v0, %v7932_v53  ;;  %v3432_v33 = vmul.f32 %v7704_v45, %v5394_v24  ;;  %v5245_v7 = vld [vmem:[%s6545_s8 + $0x3f8] sm:$0xff] }
 0x251   : > { %v3863_v61 = vsel %vm7962_vm0, %v5614_v36, %v3859_v29  ;;  %v3032_v19 = vmul.f32 %v7625_v23, %v5270_v43  ;;  %v3456_v18 = vadd.f32 %v3424_v39, %v3354_v22  ;;  %v3158_v1 = vadd.f32 %v3126_v62, %v3056_v4  ;;  %v5402_v10 = vld [vmem:[%s6545_s8 + $0x8b8] sm:$0xff] }
 0x252   : > { %v3868_v20 = vsel %vm7925_vm13, %v3867_v47, %v3863_v61  ;;  %v2860_v50 = vadd.f32 %v2828_v38, %v2758_v60  ;;  %v3977_v27 = vsub.f32 1.0, %v3976_v44  ;;  %vm3981_vm1 = vweird.f32 %v5616_v0  ;;  %v5278_v63 = vld [vmem:[%s6545_s8 + $0x4f8] sm:$0xff] }
 0x253   : > { %v4139_v36 = vmul.f32 %v3868_v20, %v7817_v3  ;;  %v3987_v41 = vor.u32 1.1754944e-38, %v3986_v58  ;;  %v7986_v2 = vadd.f32 %v7738_v40, %v3456_v18  ;;  %v3260_v57 = vadd.f32 %v3228_v5, %v3158_v1  ;;  %vm7999_vm2 = vmor %vm3980_vm15, %vm3981_vm1  ;;  %v5311_v24 = vld [vmem:[%s6545_s8 + $0x5f8] sm:$0xff] }
 0x254   : > { %v2962_v52 = vadd.f32 %v2930_v30, %v2860_v50  ;;  %v2664_v47 = vmul.f32 %v7656_v32, %v2628_v49  ;;  %v3978_v62 = vmul.f32 %v5616_v0, %v3977_v27  ;;  %v3134_v3 = vmul.f32 %v7640_v17, %v5303_v48  ;;  %v5344_v22 = vld [vmem:[%s6545_s8 + $0x6f8] sm:$0xff] }
 0x255   : > { %v5618_v39 = vpop.eup %5617  ;;  %5427 = vmatmul.msk.f32.gmra.mxu1 %vm4162_vm4, %v4139_v36  ;;  %v2734_v51 = vmul.f32 %v7600_v28, %v5179_v8  ;;  %v2836_v9 = vmul.f32 %v7606_v55, %v5212_v42  ;;  %v3524_v26 = vsub.f32 0.0, %v7986_v2  ;;  %v3362_v31 = vadd.f32 %v3330_v54, %v3260_v57  ;;  %v5377_v61 = vld [vmem:[%s6545_s8 + $0x7f8] sm:$0xff] }
 0x256   : > { %v3643_v32 = vadd.f32 1.0, %v5618_v39  ;;  %v3064_v5 = vadd.f32 %v3032_v19, %v2962_v52  ;;  %v3979_v11 = vadd.f32 %v5616_v0, %v3978_v62  ;;  %vm3985_vm3 = vcmp.eq.f32.partialorder %v3984_v34, 8.507059e+37  ;;  %v5410_v50 = vld [vmem:[%s6545_s8 + $0x8f8] sm:$0xff] }
 0x257   : > { %v3236_v28 = vmul.f32 %v7648_v16, %v5336_v12  ;;  %v2766_v55 = vadd.f32 %v2734_v51, %v2664_v47  ;;  %v3338_v53 = vmul.f32 %v7679_v25, %v5369_v35  ;;  %v2938_v56 = vmul.f32 %v7619_v6, %v5245_v7 }
 0x258   : > { %5619 = vrcp.f32 %v3643_v32  ;;  %v3983_v15 = vsel %vm7999_vm2, %v5616_v0, %v3979_v11  ;;  %v3563_v46 = vmul.f32 1.442695, %v3524_v26  ;;  %v3464_v37 = vadd.f32 %v3432_v33, %v3362_v31  ;;  %v8041_v26 = vld [vmem:[%s8640_s4] ss:$0 sm:$0xff]  ;;  %v4280_v31 = vpop.f32.mrf.mxu0 }
 0x259   : > { %v3166_v54 = vadd.f32 %v3134_v3, %v3064_v5  ;;  %v3988_v59 = vsel %vm3985_vm3, %v3987_v41, %v3983_v15  ;;  %v3440_v38 = vmul.f32 %v7704_v45, %v5402_v10  ;;  %v2868_v43 = vadd.f32 %v2836_v9, %v2766_v55 }
 0x25a   : > { %v3040_v29 = vmul.f32 %v7625_v23, %v5278_v63  ;;  %v4147_v34 = vmul.f32 %v3988_v59, %v7857_v14  ;;  %5621 = vpow2.f32 %v3563_v46  ;;  %v8016_v58 = vadd.f32 %v7738_v40, %v3464_v37 }
 0x25b   : > { %v3268_v6 = vadd.f32 %v3236_v28, %v3166_v54  ;;  %v2970_v0 = vadd.f32 %v2938_v56, %v2868_v43  ;;  %v3142_v4 = vmul.f32 %v7640_v17, %v5311_v24  ;;  %v3244_v14 = vmul.f32 %v7648_v16, %v5344_v22  ;;  %v4304_v56 = vpop.f32.mrf.mxu1 }
 0x25c   : > { %5435 = vmatmul.msk.f32.gmra.mxu2 %vm4162_vm4, %v4147_v34  ;;  %v3532_v60 = vsub.f32 0.0, %v8016_v58  ;;  %vm4100_vm5 = vweird.f32 %v3643_v32  ;;  %v4104_v20 = vand.u32 2147483647, %v3643_v32  ;;  %v4106_v18 = vand.u32 2147483648, %v3643_v32 }
 0x25d   : > { %v3370_v30 = vadd.f32 %v3338_v53, %v3268_v6  ;;  %v3072_v23 = vadd.f32 %v3040_v29, %v2970_v0  ;;  %v3346_v17 = vmul.f32 %v7679_v25, %v5377_v61  ;;  %v3448_v57 = vmul.f32 %v7704_v45, %v5410_v50  ;;  %v4328_v61 = vpop.f32.mrf.mxu2 }
 0x25e   : > { %v5620_v44 = vpop.eup %5619  ;;  %v3579_v19 = vmul.f32 1.442695, %v3532_v60  ;;  %v4107_v52 = vor.u32 1.1754944e-38, %v4106_v18  ;;  %vm4105_vm8 = vcmp.eq.f32.partialorder %v4104_v20, 8.507059e+37  ;;  %v8044_v10 = vadd.f32 %v8041_v26, %v4280_v31 }
 0x25f   : > { %v4096_v33 = vmul.f32 %v5620_v44, %v3643_v32  ;;  %v3472_v49 = vadd.f32 %v3440_v38, %v3370_v30  ;;  %v3174_v1 = vadd.f32 %v3142_v4, %v3072_v23  ;;  %vm4101_vm6 = vweird.f32 %v5620_v44 }
 0x260   : > { %v5622_v48 = vpop.eup %5621  ;;  %5623 = vpow2.f32 %v3579_v19  ;;  %vm4102_vm7 = vmor %vm4100_vm5, %vm4101_vm6  ;;  %v4376_v53 = vsub.f32 0.0, %v8044_v10  ;;  %v8052_v29 = vadd.f32 %v8041_v26, %v4304_v56 }
 0x261   : > { %v4097_v8 = vsub.f32 1.0, %v4096_v33  ;;  %v8027_v42 = vadd.f32 %v7738_v40, %v3472_v49  ;;  %v3620_v36 = vadd.f32 1.0, %v5622_v48  ;;  %v3276_v27 = vadd.f32 %v3244_v14, %v3174_v1 }
 0x262   : > { %v4408_v59 = vmul.f32 1.442695, %v4376_v53  ;;  %v4384_v0 = vsub.f32 0.0, %v8052_v29  ;;  %v8064_v49 = vadd.f32 %v8041_v26, %v4328_v61 }
 0x263   : > { %v4098_v16 = vmul.f32 %v5620_v44, %v4097_v8  ;;  %v3540_v41 = vsub.f32 0.0, %v8027_v42  ;;  %5625 = vrcp.f32 %v3620_v36  ;;  %v3378_v47 = vadd.f32 %v3346_v17, %v3276_v27 }
 0x264   : > { %vm3755_vm9 = vweird.f32 %v3620_v36  ;;  %v3759_v5 = vand.u32 2147483647, %v3620_v36  ;;  %v3761_v11 = vand.u32 2147483648, %v3620_v36  ;;  %v4424_v19 = vmul.f32 1.442695, %v4384_v0 }
 0x265   : > { %v4099_v25 = vadd.f32 %v5620_v44, %v4098_v16  ;;  %v3595_v12 = vmul.f32 1.442695, %v3540_v41  ;;  %v3480_v3 = vadd.f32 %v3448_v57, %v3378_v47  ;;  %v4392_v8 = vsub.f32 0.0, %v8064_v49 }
 0x266   : > { %v5624_v39 = vpop.eup %5623  ;;  %v3762_v37 = vor.u32 1.1754944e-38, %v3761_v11  ;;  %vm3760_vm12 = vcmp.eq.f32.partialorder %v3759_v5, 8.507059e+37 }
 0x267   : > { %v4103_v62 = vsel %vm4102_vm7, %v5620_v44, %v4099_v25  ;;  %5627 = vpow2.f32 %v3595_v12  ;;  %v3628_v51 = vadd.f32 1.0, %v5624_v39  ;;  %v8034_v7 = vadd.f32 %v7738_v40, %v3480_v3 }
 0x268   : > { %v4108_v35 = vsel %vm4105_vm8, %v4107_v52, %v4103_v62  ;;  %v4440_v52 = vmul.f32 1.442695, %v4392_v8  ;;  %v4283_v62 = vpop.f32.mrf.mxu0  ;;  %v4331_v8 = vpop.f32.mrf.mxu2 }
 0x269   : > { %v4155_v9 = vmul.f32 %v4108_v35, %v7939_v13  ;;  %v5626_v45 = vpop.eup %5625  ;;  %5629 = vrcp.f32 %v3628_v51  ;;  %v3548_v32 = vsub.f32 0.0, %v8034_v7  ;;  %vm3875_vm13 = vweird.f32 %v3628_v51 }
 0x26a   : > { %v3751_v21 = vmul.f32 %v5626_v45, %v3620_v36  ;;  %vm3756_vm10 = vweird.f32 %v5626_v45  ;;  %v3879_v38 = vand.u32 2147483647, %v3628_v51  ;;  %v3881_v43 = vand.u32 2147483648, %v3628_v51  ;;  %v4352_v36 = vpop.f32.mrf.mxu3 }
 0x26b   : > { %5443 = vmatmul.msk.f32.gmra.mxu3 %vm4162_vm4, %v4155_v9  ;;  %v3611_v40 = vmul.f32 1.442695, %v3548_v32  ;;  %vm8047_vm11 = vmor %vm3755_vm9, %vm3756_vm10  ;;  %v8074_v25 = vadd.f32 %v8041_v26, %v4352_v36  ;;  %v8086_v35 = vadd.f32 %v8041_v26, %v4283_v62 }
 0x26c   : > { %v3752_v28 = vsub.f32 1.0, %v3751_v21  ;;  %v3882_v14 = vor.u32 1.1754944e-38, %v3881_v43  ;;  %vm3880_vm0 = vcmp.eq.f32.partialorder %v3879_v38, 8.507059e+37 }
 0x26d   : > { %v5628_v13 = vpop.eup %5627  ;;  %5631 = vpow2.f32 %v3611_v40 }
 0x26e   : > { %v3636_v55 = vadd.f32 1.0, %v5628_v13  ;;  %v3753_v63 = vmul.f32 %v5626_v45, %v3752_v28  ;;  %v4377_v13 = vsub.f32 0.0, %v8086_v35 }
 0x26f   : > { %v5630_v15 = vpop.eup %5629 }
 0x270   : > { %5633 = vrcp.f32 %v3636_v55  ;;  %v3754_v54 = vadd.f32 %v5626_v45, %v3753_v63  ;;  %v3871_v24 = vmul.f32 %v5630_v15, %v3628_v51  ;;  %vm3876_vm14 = vweird.f32 %v5630_v15 }
 0x271   : > { %5635 = vpow2.f32 %v4408_v59  ;;  %vm8059_vm15 = vmor %vm3875_vm13, %vm3876_vm14  ;;  %vm3995_vm1 = vweird.f32 %v3636_v55  ;;  %v4001_v1 = vand.u32 2147483648, %v3636_v55  ;;  %v4410_v46 = vmul.f32 1.442695, %v4377_v13 }
 0x272   : > { %v3758_v34 = vsel %vm8047_vm11, %v5626_v45, %v3754_v54  ;;  %v3872_v6 = vsub.f32 1.0, %v3871_v24 }
 0x273   : > { %v3763_v22 = vsel %vm3760_vm12, %v3762_v37, %v3758_v34  ;;  %v5632_v4 = vpop.eup %5631  ;;  %v4002_v47 = vor.u32 1.1754944e-38, %v4001_v1 }
 0x274   : > { %v4132_v60 = vmul.f32 %v3763_v22, %v7986_v2  ;;  %v3873_v30 = vmul.f32 %v5630_v15, %v3872_v6  ;;  %v3644_v33 = vadd.f32 1.0, %v5632_v4  ;;  %v3999_v2 = vand.u32 2147483647, %v3636_v55 }
 0x276   : > { %v5634_v44 = vpop.eup %5633  ;;  %5420 = vmatmul.msk.f32.gmra.mxu0 %vm4162_vm4, %v4132_v60  ;;  %v3874_v20 = vadd.f32 %v5630_v15, %v3873_v30  ;;  %5637 = vrcp.f32 %v3644_v33  ;;  %vm4000_vm5 = vcmp.eq.f32.partialorder %v3999_v2, 8.507059e+37  ;;  %vm4115_vm6 = vweird.f32 %v3644_v33 }
 0x277   : > { %v3991_v18 = vmul.f32 %v5634_v44, %v3636_v55  ;;  %vm3996_vm2 = vweird.f32 %v5634_v44  ;;  %v5636_v17 = vpop.eup %5635  ;;  %5639 = vpow2.f32 %v4424_v19  ;;  %v4119_v21 = vand.u32 2147483647, %v3644_v33  ;;  %v4307_v55 = vpop.f32.mrf.mxu1 }
 0x278   : > { %v3878_v50 = vsel %vm8059_vm15, %v5630_v15, %v3874_v20  ;;  %v8070_v16 = vadd.f32 1.0, %v5636_v17  ;;  %vm8078_vm3 = vmor %vm3995_vm1, %vm3996_vm2  ;;  %v4121_v5 = vand.u32 2147483648, %v3644_v33  ;;  %v8105_v24 = vadd.f32 %v8041_v26, %v4307_v55 }
 0x279   : > { %v3992_v48 = vsub.f32 1.0, %v3991_v18  ;;  %v3883_v27 = vsel %vm3880_vm0, %v3882_v14, %v3878_v50  ;;  %vm4120_vm9 = vcmp.eq.f32.partialorder %v4119_v21, 8.507059e+37 }
 0x27a   : > { %v4140_v41 = vmul.f32 %v3883_v27, %v8016_v58  ;;  %5641 = vrcp.f32 %v8070_v16  ;;  %v4400_v58 = vsub.f32 0.0, %v8074_v25  ;;  %vm4509_vm10 = vweird.f32 %v8070_v16 }
 0x27b   : > { %v3993_v57 = vmul.f32 %v5634_v44, %v3992_v48  ;;  %5643 = vpow2.f32 %v4440_v52  ;;  %v4513_v43 = vand.u32 2147483647, %v8070_v16  ;;  %v4515_v34 = vand.u32 2147483648, %v8070_v16 }
 0x27c   : > { %5428 = vmatmul.msk.f32.gmra.mxu1 %vm4162_vm4, %v4140_v41  ;;  %v5638_v3 = vpop.eup %5637  ;;  %v4456_v32 = vmul.f32 1.442695, %v4400_v58  ;;  %v4385_v4 = vsub.f32 0.0, %v8105_v24  ;;  %v4334_v41 = vpop.f32.mrf.mxu2 }
 0x27d   : > { %v3994_v39 = vadd.f32 %v5634_v44, %v3993_v57  ;;  %v5640_v51 = vpop.eup %5639  ;;  %v4111_v45 = vmul.f32 %v5638_v3, %v3644_v33  ;;  %vm4116_vm7 = vweird.f32 %v5638_v3  ;;  %v4516_v33 = vor.u32 1.1754944e-38, %v4515_v34 }
 0x27e   : > { %v8090_v11 = vadd.f32 1.0, %v5640_v51  ;;  %5645 = vpow2.f32 %v4456_v32  ;;  %vm8098_vm8 = vmor %vm4115_vm6, %vm4116_vm7  ;;  %vm4514_vm13 = vcmp.eq.f32.partialorder %v4513_v43, 8.507059e+37  ;;  %v4426_v1 = vmul.f32 1.442695, %v4385_v4 }
 0x27f   : > { %v3998_v9 = vsel %vm8078_vm3, %v5634_v44, %v3994_v39  ;;  %v4112_v40 = vsub.f32 1.0, %v4111_v45 }
 0x280   : > { %v4003_v31 = vsel %vm4000_vm5, %v4002_v47, %v3998_v9  ;;  %v5642_v63 = vpop.eup %5641  ;;  %5647 = vrcp.f32 %v8090_v11  ;;  %v4633_v19 = vand.u32 2147483647, %v8090_v11  ;;  %vm4629_vm14 = vweird.f32 %v8090_v11 }
 0x281   : > { %v4148_v28 = vmul.f32 %v4003_v31, %v8027_v42  ;;  %v5644_v53 = vpop.eup %5643  ;;  %v4113_v56 = vmul.f32 %v5638_v3, %v4112_v40  ;;  %v4505_v15 = vmul.f32 %v5642_v63, %v8070_v16  ;;  %v4122_v42 = vor.u32 1.1754944e-38, %v4121_v5 }
 0x282   : > { %v8102_v54 = vadd.f32 1.0, %v5644_v53  ;;  %5649 = vpow2.f32 %v4410_v46  ;;  %vm4510_vm11 = vweird.f32 %v5642_v63  ;;  %v4635_v50 = vand.u32 2147483648, %v8090_v11 }
 0x283   : > { %5436 = vmatmul.msk.f32.gmra.mxu2 %vm4162_vm4, %v4148_v28  ;;  %v4114_v59 = vadd.f32 %v5638_v3, %v4113_v56  ;;  %v4506_v38 = vsub.f32 1.0, %v4505_v15  ;;  %vm4511_vm12 = vmor %vm4509_vm10, %vm4510_vm11  ;;  %v8141_v47 = vadd.f32 %v8041_v26, %v4331_v8 }
 0x284   : > { %5651 = vrcp.f32 %v8102_v54  ;;  %v5646_v6 = vpop.eup %5645  ;;  %v4753_v57 = vand.u32 2147483647, %v8102_v54  ;;  %v4755_v52 = vand.u32 2147483648, %v8102_v54  ;;  %v4636_v58 = vor.u32 1.1754944e-38, %v4635_v50 }
 0x285   : > { %v4118_v22 = vsel %vm8098_vm8, %v5638_v3, %v4114_v59  ;;  %v4507_v0 = vmul.f32 %v5642_v63, %v4506_v38  ;;  %v8114_v61 = vadd.f32 1.0, %v5646_v6  ;;  %vm4749_vm1 = vweird.f32 %v8102_v54 }
 0x286   : > { %v5648_v60 = vpop.eup %5647  ;;  %v4123_v30 = vsel %vm4120_vm9, %v4122_v42, %v4118_v22  ;;  %vm8151_vm3 = vcmp.eq.f32.partialorder %v4753_v57, 8.507059e+37  ;;  %v4756_v31 = vor.u32 1.1754944e-38, %v4755_v52  ;;  %v4393_v5 = vsub.f32 0.0, %v8141_v47  ;;  %v4286_v22 = vpop.f32.mrf.mxu0 }
 0x287   : > { %v4156_v44 = vmul.f32 %v4123_v30, %v8034_v7  ;;  %v4508_v23 = vadd.f32 %v5642_v63, %v4507_v0  ;;  %v4625_v14 = vmul.f32 %v5648_v60, %v8090_v11  ;;  %5653 = vrcp.f32 %v8114_v61  ;;  %v4355_v11 = vpop.f32.mrf.mxu3 }
 0x288   : > { %v5650_v20 = vpop.eup %5649  ;;  %vm4630_vm15 = vweird.f32 %v5648_v60  ;;  %v4873_v62 = vand.u32 2147483647, %v8114_v61  ;;  %v4875_v3 = vand.u32 2147483648, %v8114_v61  ;;  %v8158_v55 = vadd.f32 %v8041_v26, %v4355_v11 }
 0x289   : > { %5444 = vmatmul.msk.f32.gmra.mxu3 %vm4162_vm4, %v4156_v44  ;;  %v4512_v18 = vsel %vm4511_vm12, %v5642_v63, %v4508_v23  ;;  %v4626_v2 = vsub.f32 1.0, %v4625_v14  ;;  %v8126_v48 = vadd.f32 1.0, %v5650_v20  ;;  %vm8130_vm4 = vcmp.eq.f32.partialorder %v4633_v19, 8.507059e+37  ;;  %vm4631_vm0 = vmor %vm4629_vm14, %vm4630_vm15 }
 0x28a   : > { %v5652_v7 = vpop.eup %5651  ;;  %v4517_v17 = vsel %vm4514_vm13, %v4516_v33, %v4512_v18  ;;  %vm4869_vm6 = vweird.f32 %v8114_v61  ;;  %vm8163_vm7 = vcmp.eq.f32.partialorder %v4873_v62, 8.507059e+37  ;;  %v4876_v56 = vor.u32 1.1754944e-38, %v4875_v3  ;;  %v4310_v18 = vpop.f32.mrf.mxu1 }
 0x28b   : > { %v4984_v36 = vmul.f32 %v4517_v17, %v8044_v10  ;;  %v4627_v27 = vmul.f32 %v5648_v60, %v4626_v2  ;;  %v4745_v16 = vmul.f32 %v5652_v7, %v8102_v54  ;;  %5655 = vrcp.f32 %v8126_v48 }
 0x28c   : > { %5657 = vpow2.f32 %v4426_v1  ;;  %vm4750_vm2 = vweird.f32 %v5652_v7  ;;  %v4442_v15 = vmul.f32 1.442695, %v4393_v5  ;;  %v4401_v38 = vsub.f32 0.0, %v8158_v55 }
 0x28d   : > { %5016 = vst [vmem:[%s8137_s6] sm:$0xff] %v4984_v36  ;;  %v4628_v12 = vadd.f32 %v5648_v60, %v4627_v27  ;;  %v4746_v10 = vsub.f32 1.0, %v4745_v16  ;;  %v5654_v39 = vpop.eup %5653  ;;  %vm4751_vm5 = vmor %vm4749_vm1, %vm4750_vm2  ;;  %vm4524_vm9 = vweird.f32 %v8126_v48  ;;  %v4528_v0 = vand.u32 2147483647, %v8126_v48 }
 0x28e   : > { %v4865_v45 = vmul.f32 %v5654_v39, %v8114_v61  ;;  %vm4870_vm8 = vweird.f32 %v5654_v39  ;;  %5659 = vpow2.f32 %v4442_v15  ;;  %v4530_v4 = vand.u32 2147483648, %v8126_v48 }
 0x28f   : > { %v4632_v51 = vsel %vm4631_vm0, %v5648_v60, %v4628_v12  ;;  %v4747_v9 = vmul.f32 %v5652_v7, %v4746_v10  ;;  %vm4871_vm10 = vmor %vm4869_vm6, %vm4870_vm8  ;;  %v4458_v44 = vmul.f32 1.442695, %v4401_v38  ;;  %vm4529_vm13 = vcmp.eq.f32.partialorder %v4528_v0, 8.507059e+37 }
 0x290   : > { %v4637_v21 = vsel %vm8130_vm4, %v4636_v58, %v4632_v51  ;;  %v4866_v40 = vsub.f32 1.0, %v4865_v45  ;;  %v4531_v20 = vor.u32 1.1754944e-38, %v4530_v4  ;;  %v8191_v17 = vadd.f32 %v8041_v26, %v4310_v18 }
 0x291   : > { %v4992_v13 = vmul.f32 %v4637_v21, %v8052_v29  ;;  %v4748_v28 = vadd.f32 %v5652_v7, %v4747_v9  ;;  %v5656_v63 = vpop.eup %5655  ;;  %v8199_v10 = vadd.f32 %v8041_v26, %v4334_v41  ;;  %v4358_v21 = vpop.f32.mrf.mxu3 }
 0x292   : > { %v5658_v46 = vpop.eup %5657  ;;  %v4867_v37 = vmul.f32 %v5654_v39, %v4866_v40  ;;  %v4520_v42 = vmul.f32 %v5656_v63, %v8126_v48  ;;  %vm4525_vm11 = vweird.f32 %v5656_v63  ;;  %v4386_v16 = vsub.f32 0.0, %v8191_v17 }
 0x293   : > { %5024 = vst [vmem:[%s8137_s6 + $0x40] sm:$0xff] %v4992_v13  ;;  %v4752_v29 = vsel %vm4751_vm5, %v5652_v7, %v4748_v28  ;;  %v4481_v59 = vadd.f32 1.0, %v5658_v46  ;;  %vm4526_vm12 = vmor %vm4524_vm9, %vm4525_vm11  ;;  %v4394_v3 = vsub.f32 0.0, %v8199_v10  ;;  %v8206_v11 = vadd.f32 %v8041_v26, %v4358_v21 }
 0x294   : > { %v4757_v54 = vsel %vm8151_vm3, %v4756_v31, %v4752_v29  ;;  %v4868_v34 = vadd.f32 %v5654_v39, %v4867_v37  ;;  %v4521_v6 = vsub.f32 1.0, %v4520_v42  ;;  %v5660_v19 = vpop.eup %5659  ;;  %v4289_v42 = vpop.f32.mrf.mxu0 }
 0x295   : > { %v5000_v43 = vmul.f32 %v4757_v54, %v8064_v49  ;;  %5661 = vrcp.f32 %v4481_v59  ;;  %v8180_v49 = vadd.f32 %v8041_v26, %v4286_v22  ;;  %v4489_v1 = vadd.f32 1.0, %v5660_v19 }
 0x296   : > { %v4872_v60 = vsel %vm4871_vm10, %v5654_v39, %v4868_v34  ;;  %v4522_v30 = vmul.f32 %v5656_v63, %v4521_v6  ;;  %5663 = vpow2.f32 %v4458_v44  ;;  %v4648_v57 = vand.u32 2147483647, %v4481_v59 }
 0x297   : > { %5032 = vst [vmem:[%s8137_s6 + $0x80] sm:$0xff] %v5000_v43  ;;  %v4877_v23 = vsel %vm8163_vm7, %v4876_v56, %v4872_v60  ;;  %v4378_v33 = vsub.f32 0.0, %v8180_v49  ;;  %5665 = vrcp.f32 %v4489_v1  ;;  %v4650_v52 = vand.u32 2147483648, %v4481_v59 }
 0x298   : > { %v5008_v61 = vmul.f32 %v4877_v23, %v8074_v25  ;;  %v4523_v14 = vadd.f32 %v5656_v63, %v4522_v30  ;;  %vm4644_vm14 = vweird.f32 %v4481_v59  ;;  %vm4649_vm0 = vcmp.eq.f32.partialorder %v4648_v57, 8.507059e+37 }
 0x299   : > { %v4412_v7 = vmul.f32 1.442695, %v4378_v33  ;;  %v4651_v9 = vor.u32 1.1754944e-38, %v4650_v52  ;;  %v4444_v5 = vmul.f32 1.442695, %v4394_v3  ;;  %v4770_v53 = vand.u32 2147483648, %v4489_v1 }
 0x29a   : > { %5040 = vst [vmem:[%s8137_s6 + $0xc0] sm:$0xff] %v5008_v61  ;;  %v4527_v2 = vsel %vm4526_vm12, %v5656_v63, %v4523_v14  ;;  %v4768_v63 = vand.u32 2147483647, %v4489_v1  ;;  %v4402_v46 = vsub.f32 0.0, %v8206_v11  ;;  %vm4764_vm2 = vweird.f32 %v4489_v1 }
 0x29b   : > { %v5662_v25 = vpop.eup %5661  ;;  %v4532_v50 = vsel %vm4529_vm13, %v4531_v20, %v4527_v2  ;;  %5667 = vpow2.f32 %v4412_v7  ;;  %v4771_v38 = vor.u32 1.1754944e-38, %v4770_v53  ;;  %v8216_v34 = vadd.f32 %v8041_v26, %v4289_v42 }
 0x29c   : > { %v4985_v8 = vmul.f32 %v4532_v50, %v8086_v35  ;;  %v4640_v36 = vmul.f32 %v5662_v25, %v4481_v59  ;;  %v5664_v48 = vpop.eup %5663  ;;  %vm4645_vm15 = vweird.f32 %v5662_v25  ;;  %v4428_v35 = vmul.f32 1.442695, %v4386_v16 }
 0x29d   : > { %v8196_v12 = vadd.f32 1.0, %v5664_v48  ;;  %v5666_v58 = vpop.eup %5665  ;;  %vm4646_vm4 = vmor %vm4644_vm14, %vm4645_vm15  ;;  %vm4769_vm5 = vcmp.eq.f32.partialorder %v4768_v63, 8.507059e+37  ;;  %v4379_v19 = vsub.f32 0.0, %v8216_v34 }
 0x29e   : > { %5017 = vst [vmem:[%s8137_s6 + $0x8] sm:$0xff] %v4985_v8  ;;  %v4641_v27 = vsub.f32 1.0, %v4640_v36  ;;  %v4760_v45 = vmul.f32 %v5666_v58, %v4489_v1  ;;  %vm4765_vm1 = vweird.f32 %v5666_v58  ;;  %v4313_v36 = vpop.f32.mrf.mxu1 }
 0x29f   : > { %5669 = vrcp.f32 %v8196_v12  ;;  %vm4766_vm3 = vmor %vm4764_vm2, %vm4765_vm1  ;;  %v4888_v22 = vand.u32 2147483647, %v8196_v12  ;;  %v4890_v0 = vand.u32 2147483648, %v8196_v12  ;;  %vm4884_vm7 = vweird.f32 %v8196_v12 }
 0x2a0   : > { %v4642_v39 = vmul.f32 %v5662_v25, %v4641_v27  ;;  %5671 = vpow2.f32 %v4428_v35  ;;  %v4761_v28 = vsub.f32 1.0, %v4760_v45  ;;  %v4414_v8 = vmul.f32 1.442695, %v4379_v19  ;;  %v4337_v45 = vpop.f32.mrf.mxu2 }
 0x2a1   : > { %v5668_v51 = vpop.eup %5667  ;;  %vm4889_vm9 = vcmp.eq.f32.partialorder %v4888_v22, 8.507059e+37  ;;  %v4891_v20 = vor.u32 1.1754944e-38, %v4890_v0  ;;  %v8241_v35 = vadd.f32 %v8041_v26, %v4313_v36 }
 0x2a2   : > { %v4643_v62 = vadd.f32 %v5662_v25, %v4642_v39  ;;  %v8203_v31 = vadd.f32 1.0, %v5668_v51  ;;  %v4762_v15 = vmul.f32 %v5666_v58, %v4761_v28 }
 0x2a4   : > { %v4647_v32 = vsel %vm4646_vm4, %v5662_v25, %v4643_v62  ;;  %5673 = vrcp.f32 %v8203_v31  ;;  %v4763_v54 = vadd.f32 %v5666_v58, %v4762_v15  ;;  %v4543_v2 = vand.u32 2147483647, %v8203_v31 }
 0x2a5   : > { %v4652_v13 = vsel %vm4649_vm0, %v4651_v9, %v4647_v32  ;;  %v5670_v56 = vpop.eup %5669  ;;  %5675 = vpow2.f32 %v4444_v5  ;;  %vm4539_vm10 = vweird.f32 %v8203_v31  ;;  %v4387_v9 = vsub.f32 0.0, %v8241_v35 }
 0x2a6   : > { %v4993_v40 = vmul.f32 %v4652_v13, %v8105_v24  ;;  %v5672_v29 = vpop.eup %5671  ;;  %v4880_v37 = vmul.f32 %v5670_v56, %v8196_v12  ;;  %v4460_v24 = vmul.f32 1.442695, %v4402_v46  ;;  %v4767_v6 = vsel %vm4766_vm3, %v5666_v58, %v4763_v54 }
 0x2a7   : > { %v8213_v59 = vadd.f32 1.0, %v5672_v29  ;;  %v4772_v60 = vsel %vm4769_vm5, %v4771_v38, %v4767_v6  ;;  %vm4885_vm6 = vweird.f32 %v5670_v56  ;;  %vm4544_vm12 = vcmp.eq.f32.partialorder %v4543_v2, 8.507059e+37 }
 0x2a8   : > { %5025 = vst [vmem:[%s8137_s6 + $0x48] sm:$0xff] %v4993_v40  ;;  %v4881_v43 = vsub.f32 1.0, %v4880_v37  ;;  %v5001_v23 = vmul.f32 %v4772_v60, %v8141_v47  ;;  %vm4886_vm8 = vmor %vm4884_vm7, %vm4885_vm6  ;;  %v4545_v47 = vand.u32 2147483648, %v8203_v31  ;;  %v4430_v5 = vmul.f32 1.442695, %v4387_v9 }
 0x2a9   : > { %5677 = vrcp.f32 %v8213_v59  ;;  %v4663_v39 = vand.u32 2147483647, %v8213_v59  ;;  %vm4659_vm14 = vweird.f32 %v8213_v59  ;;  %v8250_v13 = vadd.f32 %v8041_v26, %v4337_v45 }
 0x2aa   : > { %v5674_v4 = vpop.eup %5673  ;;  %v4882_v30 = vmul.f32 %v5670_v56, %v4881_v43  ;;  %5679 = vpow2.f32 %v4460_v24  ;;  %5033 = vst [vmem:[%s8137_s6 + $0x88] sm:$0xff] %v5001_v23  ;;  %v4546_v52 = vor.u32 1.1754944e-38, %v4545_v47  ;;  %v4361_v24 = vpop.f32.mrf.mxu3 }
 0x2ab   : > { %v5676_v44 = vpop.eup %5675  ;;  %v4535_v61 = vmul.f32 %v5674_v4, %v8203_v31  ;;  %vm4540_vm11 = vweird.f32 %v5674_v4  ;;  %vm4664_vm4 = vcmp.eq.f32.partialorder %v4663_v39, 8.507059e+37  ;;  %v4395_v46 = vsub.f32 0.0, %v8250_v13 }
 0x2ac   : > { %v4883_v14 = vadd.f32 %v5670_v56, %v4882_v30  ;;  %v8224_v33 = vadd.f32 1.0, %v5676_v44  ;;  %vm4541_vm13 = vmor %vm4539_vm10, %vm4540_vm11  ;;  %v8266_v0 = vadd.f32 %v8041_v26, %v4361_v24 }
 0x2ad   : > { %v4536_v18 = vsub.f32 1.0, %v4535_v61  ;;  %v4446_v22 = vmul.f32 1.442695, %v4395_v46 }
 0x2ae   : > { %v4887_v1 = vsel %vm4886_vm8, %v5670_v56, %v4883_v14  ;;  %5681 = vrcp.f32 %v8224_v33  ;;  %v4783_v53 = vand.u32 2147483647, %v8224_v33  ;;  %v4785_v56 = vand.u32 2147483648, %v8224_v33  ;;  %v4292_v14 = vpop.f32.mrf.mxu0 }
 0x2af   : > { %v5678_v7 = vpop.eup %5677  ;;  %v4892_v25 = vsel %vm4889_vm9, %v4891_v20, %v4887_v1  ;;  %v4537_v50 = vmul.f32 %v5674_v4, %v4536_v18  ;;  %5683 = vpow2.f32 %v4414_v8  ;;  %vm4779_vm2 = vweird.f32 %v8224_v33 }
 0x2b0   : > { %v5680_v48 = vpop.eup %5679  ;;  %v5009_v27 = vmul.f32 %v4892_v25, %v8158_v55  ;;  %v4655_v16 = vmul.f32 %v5678_v7, %v8213_v59  ;;  %v4665_v55 = vand.u32 2147483648, %v8213_v59  ;;  %vm4660_vm15 = vweird.f32 %v5678_v7 }
 0x2b1   : > { %v4538_v41 = vadd.f32 %v5674_v4, %v4537_v50  ;;  %v8234_v57 = vadd.f32 1.0, %v5680_v48  ;;  %vm4661_vm0 = vmor %vm4659_vm14, %vm4660_vm15  ;;  %vm4784_vm3 = vcmp.eq.f32.partialorder %v4783_v53, 8.507059e+37  ;;  %v4786_v43 = vor.u32 1.1754944e-38, %v4785_v56  ;;  %v4340_v53 = vpop.f32.mrf.mxu2 }
 0x2b2   : > { %5041 = vst [vmem:[%s8137_s6 + $0xc8] sm:$0xff] %v5009_v27  ;;  %v4656_v12 = vsub.f32 1.0, %v4655_v16  ;;  %v4666_v40 = vor.u32 1.1754944e-38, %v4665_v55  ;;  %v4403_v61 = vsub.f32 0.0, %v8266_v0  ;;  %v8275_v20 = vadd.f32 %v8041_v26, %v4292_v14 }
 0x2b3   : > { %v4542_v58 = vsel %vm4541_vm13, %v5674_v4, %v4538_v41  ;;  %5685 = vrcp.f32 %v8234_v57  ;;  %v4905_v60 = vand.u32 2147483648, %v8234_v57  ;;  %vm4899_vm7 = vweird.f32 %v8234_v57  ;;  %v4316_v41 = vpop.f32.mrf.mxu1 }
 0x2b4   : > { %v5682_v62 = vpop.eup %5681  ;;  %v4547_v3 = vsel %vm4544_vm12, %v4546_v52, %v4542_v58  ;;  %v4657_v51 = vmul.f32 %v5678_v7, %v4656_v12  ;;  %5687 = vpow2.f32 %v4430_v5  ;;  %v4462_v1 = vmul.f32 1.442695, %v4403_v61 }
 0x2b5   : > { %v4986_v21 = vmul.f32 %v4547_v3, %v8180_v49  ;;  %v4775_v32 = vmul.f32 %v5682_v62, %v8224_v33  ;;  %v5684_v28 = vpop.eup %5683  ;;  %vm4780_vm1 = vweird.f32 %v5682_v62  ;;  %v4906_v47 = vor.u32 1.1754944e-38, %v4905_v60 }
 0x2b6   : > { %v4658_v31 = vadd.f32 %v5678_v7, %v4657_v51  ;;  %v8257_v15 = vadd.f32 1.0, %v5684_v28  ;;  %vm4781_vm5 = vmor %vm4779_vm2, %vm4780_vm1  ;;  %v4380_v8 = vsub.f32 0.0, %v8275_v20  ;;  %v8290_v39 = vadd.f32 %v8041_v26, %v4316_v41 }
 0x2b7   : > { %5018 = vst [vmem:[%s8137_s6 + $0x10] sm:$0xff] %v4986_v21  ;;  %v4776_v63 = vsub.f32 1.0, %v4775_v32 }
 0x2b8   : > { %v4662_v49 = vsel %vm4661_vm0, %v5678_v7, %v4658_v31  ;;  %5689 = vrcp.f32 %v8257_v15  ;;  %vm4554_vm10 = vweird.f32 %v8257_v15  ;;  %v4558_v27 = vand.u32 2147483647, %v8257_v15 }
 0x2b9   : > { %v5686_v29 = vpop.eup %5685  ;;  %v4667_v37 = vsel %vm4664_vm4, %v4666_v40, %v4662_v49  ;;  %v4777_v42 = vmul.f32 %v5682_v62, %v4776_v63  ;;  %5691 = vpow2.f32 %v4446_v22  ;;  %v4560_v16 = vand.u32 2147483648, %v8257_v15 }
 0x2ba   : > { %v4994_v54 = vmul.f32 %v4667_v37, %v8191_v17  ;;  %v4895_v59 = vmul.f32 %v5686_v29, %v8234_v57  ;;  %vm4900_vm6 = vweird.f32 %v5686_v29  ;;  %v4903_v17 = vand.u32 2147483647, %v8234_v57  ;;  %v5688_v30 = vpop.eup %5687 }
 0x2bb   : > { %v4778_v38 = vadd.f32 %v5682_v62, %v4777_v42  ;;  %v8272_v19 = vadd.f32 1.0, %v5688_v30  ;;  %vm4901_vm8 = vmor %vm4899_vm7, %vm4900_vm6  ;;  %v4416_v12 = vmul.f32 1.442695, %v4380_v8  ;;  %vm4559_vm13 = vcmp.eq.f32.partialorder %v4558_v27, 8.507059e+37 }
 0x2bc   : > { %5026 = vst [vmem:[%s8137_s6 + $0x50] sm:$0xff] %v4994_v54  ;;  %v4896_v6 = vsub.f32 1.0, %v4895_v59  ;;  %vm4904_vm9 = vcmp.eq.f32.partialorder %v4903_v17, 8.507059e+37  ;;  %v4388_v45 = vsub.f32 0.0, %v8290_v39 }
 0x2bd   : > { %v4782_v4 = vsel %vm4781_vm5, %v5682_v62, %v4778_v38  ;;  %5693 = vrcp.f32 %v8272_v19  ;;  %v4680_v31 = vand.u32 2147483648, %v8272_v19  ;;  %vm4674_vm14 = vweird.f32 %v8272_v19 }
 0x2be   : > { %v4787_v44 = vsel %vm4784_vm3, %v4786_v43, %v4782_v4  ;;  %v4897_v23 = vmul.f32 %v5686_v29, %v4896_v6  ;;  %v5690_v18 = vpop.eup %5689  ;;  %5695 = vpow2.f32 %v4462_v1  ;;  %v4678_v40 = vand.u32 2147483647, %v8272_v19  ;;  %v4364_v4 = vpop.f32.mrf.mxu3 }
 0x2bf   : > { %v5002_v33 = vmul.f32 %v4787_v44, %v8199_v10  ;;  %v4550_v7 = vmul.f32 %v5690_v18, %v8257_v15  ;;  %v5692_v36 = vpop.eup %5691  ;;  %vm4555_vm11 = vweird.f32 %v5690_v18  ;;  %v4432_v63 = vmul.f32 1.442695, %v4388_v45 }
 0x2c0   : > { %v4898_v2 = vadd.f32 %v5686_v29, %v4897_v23  ;;  %v8287_v52 = vadd.f32 1.0, %v5692_v36  ;;  %vm4556_vm12 = vmor %vm4554_vm10, %vm4555_vm11  ;;  %v8308_v15 = vadd.f32 %v8041_v26, %v4340_v53  ;;  %vm4679_vm0 = vcmp.eq.f32.partialorder %v4678_v40, 8.507059e+37 }
 0x2c1   : > { %5034 = vst [vmem:[%s8137_s6 + $0x90] sm:$0xff] %v5002_v33  ;;  %v4551_v50 = vsub.f32 1.0, %v4550_v7  ;;  %v8327_v14 = vadd.f32 %v8041_v26, %v4364_v4  ;;  %v4295_v33 = vpop.f32.mrf.mxu0 }
 0x2c2   : > { %v4902_v25 = vsel %vm4901_vm8, %v5686_v29, %v4898_v2  ;;  %5697 = vrcp.f32 %v8287_v52  ;;  %v4798_v49 = vand.u32 2147483647, %v8287_v52  ;;  %v4800_v42 = vand.u32 2147483648, %v8287_v52 }
 0x2c3   : > { %v4907_v10 = vsel %vm4904_vm9, %v4906_v47, %v4902_v25  ;;  %v4552_v57 = vmul.f32 %v5690_v18, %v4551_v50  ;;  %v5694_v58 = vpop.eup %5693  ;;  %5699 = vpow2.f32 %v4416_v12  ;;  %v4396_v59 = vsub.f32 0.0, %v8308_v15 }
 0x2c4   : > { %v5010_v48 = vmul.f32 %v4907_v10, %v8206_v11  ;;  %v5696_v62 = vpop.eup %5695  ;;  %v4561_v11 = vor.u32 1.1754944e-38, %v4560_v16  ;;  %v4670_v3 = vmul.f32 %v5694_v58, %v8272_v19  ;;  %vm4675_vm15 = vweird.f32 %v5694_v58  ;;  %v4319_v19 = vpop.f32.mrf.mxu1 }
 0x2c5   : > { %v4553_v55 = vadd.f32 %v5690_v18, %v4552_v57  ;;  %v8297_v9 = vadd.f32 1.0, %v5696_v62  ;;  %vm4676_vm4 = vmor %vm4674_vm14, %vm4675_vm15  ;;  %vm4794_vm1 = vweird.f32 %v8287_v52  ;;  %vm8318_vm2 = vcmp.eq.f32.partialorder %v4798_v49, 8.507059e+37 }
 0x2c6   : > { %5042 = vst [vmem:[%s8137_s6 + $0xd0] sm:$0xff] %v5010_v48  ;;  %v4671_v32 = vsub.f32 1.0, %v4670_v3  ;;  %v4801_v44 = vor.u32 1.1754944e-38, %v4800_v42  ;;  %v4448_v61 = vmul.f32 1.442695, %v4396_v59  ;;  %v8331_v1 = vadd.f32 %v8041_v26, %v4295_v33 }
 0x2c7   : > { %v4557_v51 = vsel %vm4556_vm12, %v5690_v18, %v4553_v55  ;;  %5701 = vrcp.f32 %v8297_v9  ;;  %v4918_v23 = vand.u32 2147483647, %v8297_v9  ;;  %v4920_v7 = vand.u32 2147483648, %v8297_v9 }
 0x2c8   : > { %v4562_v21 = vsel %vm4559_vm13, %v4561_v11, %v4557_v51  ;;  %v4672_v28 = vmul.f32 %v5694_v58, %v4671_v32  ;;  %v5698_v56 = vpop.eup %5697  ;;  %5703 = vpow2.f32 %v4432_v63  ;;  %v4404_v25 = vsub.f32 0.0, %v8327_v14  ;;  %v4367_v51 = vpop.f32.mrf.mxu3 }
 0x2c9   : > { %v4987_v5 = vmul.f32 %v4562_v21, %v8216_v34  ;;  %v5700_v46 = vpop.eup %5699  ;;  %v4681_v34 = vor.u32 1.1754944e-38, %v4680_v31  ;;  %v4790_v37 = vmul.f32 %v5698_v56, %v8287_v52  ;;  %vm4795_vm3 = vweird.f32 %v5698_v56 }
 0x2ca   : > { %v4673_v29 = vadd.f32 %v5694_v58, %v4672_v28  ;;  %v8314_v54 = vadd.f32 1.0, %v5700_v46  ;;  %vm4796_vm5 = vmor %vm4794_vm1, %vm4795_vm3  ;;  %v4381_v36 = vsub.f32 0.0, %v8331_v1  ;;  %vm4914_vm7 = vweird.f32 %v8297_v9  ;;  %v4298_v40 = vpop.f32.mrf.mxu0 }
 0x2cb   : > { %5019 = vst [vmem:[%s8137_s6 + $0x18] sm:$0xff] %v4987_v5  ;;  %v4791_v38 = vsub.f32 1.0, %v4790_v37  ;;  %v4464_v16 = vmul.f32 1.442695, %v4404_v25  ;;  %vm4919_vm8 = vcmp.eq.f32.partialorder %v4918_v23, 8.507059e+37  ;;  %v8362_v53 = vadd.f32 %v8041_v26, %v4367_v51 }
 0x2cc   : > { %v4677_v24 = vsel %vm4676_vm4, %v5694_v58, %v4673_v29  ;;  %5705 = vrcp.f32 %v8314_v54  ;;  %v4921_v58 = vor.u32 1.1754944e-38, %v4920_v7  ;;  %vm4569_vm10 = vweird.f32 %v8314_v54 }
 0x2cd   : > { %v5702_v43 = vpop.eup %5701  ;;  %v4682_v6 = vsel %vm4679_vm0, %v4681_v34, %v4677_v24  ;;  %v4792_v60 = vmul.f32 %v5698_v56, %v4791_v38  ;;  %5707 = vpow2.f32 %v4448_v61  ;;  %v4573_v55 = vand.u32 2147483647, %v8314_v54 }
 0x2ce   : > { %v4995_v17 = vmul.f32 %v4682_v6, %v8241_v35  ;;  %v4910_v30 = vmul.f32 %v5702_v43, %v8297_v9  ;;  %v8334_v35 = vadd.f32 %v8041_v26, %v4319_v19  ;;  %v5704_v47 = vpop.eup %5703  ;;  %vm4915_vm6 = vweird.f32 %v5702_v43 }
 0x2cf   : > { %v4793_v18 = vadd.f32 %v5698_v56, %v4792_v60  ;;  %v8340_v8 = vadd.f32 1.0, %v5704_v47  ;;  %vm4916_vm9 = vmor %vm4914_vm7, %vm4915_vm6  ;;  %v4418_v3 = vmul.f32 1.442695, %v4381_v36  ;;  %v4575_v21 = vand.u32 2147483648, %v8314_v54 }
 0x2d0   : > { %5027 = vst [vmem:[%s8137_s6 + $0x58] sm:$0xff] %v4995_v17  ;;  %v4911_v2 = vsub.f32 1.0, %v4910_v30  ;;  %v4389_v41 = vsub.f32 0.0, %v8334_v35  ;;  %vm4574_vm13 = vcmp.eq.f32.partialorder %v4573_v55, 8.507059e+37  ;;  %v4405_v6 = vsub.f32 0.0, %v8362_v53 }
 0x2d1   : > { %v4797_v10 = vsel %vm4796_vm5, %v5698_v56, %v4793_v18  ;;  %5709 = vrcp.f32 %v8340_v8  ;;  %v4693_v49 = vand.u32 2147483647, %v8340_v8  ;;  %vm4689_vm14 = vweird.f32 %v8340_v8 }
 0x2d2   : > { %v4912_v50 = vmul.f32 %v5702_v43, %v4911_v2  ;;  %v5706_v48 = vpop.eup %5705  ;;  %v4802_v27 = vsel %vm8318_vm2, %v4801_v44, %v4797_v10  ;;  %5711 = vpow2.f32 %v4464_v16  ;;  %v4434_v32 = vmul.f32 1.442695, %v4389_v41 }
 0x2d3   : > { %v5003_v57 = vmul.f32 %v4802_v27, %v8250_v13  ;;  %v4565_v12 = vmul.f32 %v5706_v48, %v8314_v54  ;;  %v4343_v13 = vpop.f32.mrf.mxu2  ;;  %v5708_v9 = vpop.eup %5707  ;;  %vm4570_vm11 = vweird.f32 %v5706_v48  ;;  %5713 = vpow2.f32 %v4418_v3 }
 0x2d4   : > { %v4913_v52 = vadd.f32 %v5702_v43, %v4912_v50  ;;  %v8356_v28 = vadd.f32 1.0, %v5708_v9  ;;  %5715 = vpow2.f32 %v4434_v32  ;;  %v8359_v63 = vadd.f32 %v8041_v26, %v4343_v13  ;;  %vm4571_vm12 = vmor %vm4569_vm10, %vm4570_vm11  ;;  %v8374_v26 = vld [vmem:[%s8640_s4] ss:$0 sm:$0xff] }
 0x2d5   : > { %5035 = vst [vmem:[%s8137_s6 + $0x98] sm:$0xff] %v5003_v57  ;;  %v4566_v11 = vsub.f32 1.0, %v4565_v12  ;;  %v8377_v34 = vadd.f32 %v8374_v26, %v4298_v40  ;;  %v4695_v54 = vand.u32 2147483648, %v8340_v8  ;;  %vm8386_vm15 = vcmp.eq.f32.partialorder %v4693_v49, 8.507059e+37 }
 0x2d6   : > { %v4917_v62 = vsel %vm4916_vm9, %v5702_v43, %v4913_v52  ;;  %5717 = vrcp.f32 %v8356_v28  ;;  %v4397_v29 = vsub.f32 0.0, %v8359_v63  ;;  %v4813_v30 = vand.u32 2147483647, %v8356_v28 }
 0x2d7   : > { %v4922_v45 = vsel %vm4919_vm8, %v4921_v58, %v4917_v62  ;;  %v4567_v5 = vmul.f32 %v5706_v48, %v4566_v11  ;;  %v5710_v46 = vpop.eup %5709  ;;  %v4815_v23 = vand.u32 2147483648, %v8356_v28  ;;  %v4382_v61 = vsub.f32 0.0, %v8377_v34 }
 0x2d8   : > { %v5011_v31 = vmul.f32 %v4922_v45, %v8266_v0  ;;  %v4576_v0 = vor.u32 1.1754944e-38, %v4575_v21  ;;  %v5712_v37 = vpop.eup %5711  ;;  %v4685_v59 = vmul.f32 %v5710_v46, %v8340_v8  ;;  %v4450_v43 = vmul.f32 1.442695, %v4397_v29  ;;  %v4322_v45 = vpop.f32.mrf.mxu1 }
 0x2d9   : > { %v4568_v56 = vadd.f32 %v5706_v48, %v4567_v5  ;;  %v8382_v38 = vadd.f32 1.0, %v5712_v37  ;;  %v5714_v22 = vpop.eup %5713  ;;  %vm4690_vm4 = vweird.f32 %v5710_v46  ;;  %v4696_v2 = vor.u32 1.1754944e-38, %v4695_v54 }
 0x2da   : > { %5043 = vst [vmem:[%s8137_s6 + $0xd8] sm:$0xff] %v5011_v31  ;;  %v4686_v17 = vsub.f32 1.0, %v4685_v59  ;;  %v5716_v44 = vpop.eup %5715  ;;  %v8395_v18 = vadd.f32 1.0, %v5714_v22  ;;  %vm4809_vm0 = vweird.f32 %v8356_v28  ;;  %v4466_v7 = vmul.f32 1.442695, %v4405_v6  ;;  %vm4691_vm1 = vmor %vm4689_vm14, %vm4690_vm4 }
 0x2db   : > { %v4572_v42 = vsel %vm4571_vm12, %v5706_v48, %v4568_v56  ;;  %5719 = vrcp.f32 %v8382_v38  ;;  %v4933_v10 = vand.u32 2147483647, %v8382_v38  ;;  %v4935_v50 = vand.u32 2147483648, %v8382_v38 }
 0x2dc   : > { %v4577_v24 = vsel %vm4574_vm13, %v4576_v0, %v4572_v42  ;;  %v5718_v33 = vpop.eup %5717  ;;  %v4687_v19 = vmul.f32 %v5710_v46, %v4686_v17  ;;  %5721 = vpow2.f32 %v4450_v43  ;;  %vm8407_vm2 = vcmp.eq.f32.partialorder %v4813_v30, 8.507059e+37 }
 0x2dd   : > { %v4988_v4 = vmul.f32 %v4577_v24, %v8275_v20  ;;  %v8397_v20 = vadd.f32 1.0, %v5716_v44  ;;  %v4805_v47 = vmul.f32 %v5718_v33, %v8356_v28  ;;  %5723 = vrcp.f32 %v8395_v18 }
 0x2de   : > { %v4688_v25 = vadd.f32 %v5710_v46, %v4687_v19  ;;  %v4816_v27 = vor.u32 1.1754944e-38, %v4815_v23  ;;  %vm4810_vm3 = vweird.f32 %v5718_v33  ;;  %vm4929_vm5 = vweird.f32 %v8382_v38 }
 0x2df   : > { %5020 = vst [vmem:[%s8137_s6 + $0x20] sm:$0xff] %v4988_v4  ;;  %v4806_v36 = vsub.f32 1.0, %v4805_v47  ;;  %5725 = vrcp.f32 %v8397_v20  ;;  %v4420_v41 = vmul.f32 1.442695, %v4382_v61  ;;  %v4588_v12 = vand.u32 2147483647, %v8395_v18  ;;  %vm4811_vm8 = vmor %vm4809_vm0, %vm4810_vm3  ;;  %v4346_v29 = vpop.f32.mrf.mxu2 }
 0x2e0   : > { %v4692_v16 = vsel %vm4691_vm1, %v5710_v46, %v4688_v25  ;;  %5727 = vpow2.f32 %v4466_v7  ;;  %vm8418_vm6 = vcmp.eq.f32.partialorder %v4933_v10, 8.507059e+37  ;;  %v4936_v3 = vor.u32 1.1754944e-38, %v4935_v50 }
 0x2e1   : > { %v5720_v57 = vpop.eup %5719  ;;  %v4697_v52 = vsel %vm8386_vm15, %v4696_v2, %v4692_v16  ;;  %v4807_v8 = vmul.f32 %v5718_v33, %v4806_v36  ;;  %vm4584_vm7 = vweird.f32 %v8395_v18  ;;  %v4590_v51 = vand.u32 2147483648, %v8395_v18 }
 0x2e2   : > { %v5722_v58 = vpop.eup %5721  ;;  %v4996_v55 = vmul.f32 %v4697_v52, %v8290_v39  ;;  %v4925_v62 = vmul.f32 %v5720_v57, %v8382_v38  ;;  %vm4704_vm9 = vweird.f32 %v8397_v20  ;;  %v4708_v32 = vand.u32 2147483647, %v8397_v20 }
 0x2e3   : > { %v4808_v13 = vadd.f32 %v5718_v33, %v4807_v8  ;;  %v8424_v9 = vadd.f32 1.0, %v5722_v58  ;;  %v5724_v21 = vpop.eup %5723  ;;  %5729 = vpow2.f32 %v4420_v41  ;;  %vm4930_vm10 = vweird.f32 %v5720_v57 }
 0x2e4   : > { %5028 = vst [vmem:[%s8137_s6 + $0x60] sm:$0xff] %v4996_v55  ;;  %v4926_v39 = vsub.f32 1.0, %v4925_v62  ;;  %v4580_v40 = vmul.f32 %v5724_v21, %v8395_v18  ;;  %vm8433_vm11 = vcmp.eq.f32.partialorder %v4588_v12, 8.507059e+37  ;;  %v8442_v0 = vadd.f32 %v8374_v26, %v4322_v45  ;;  %vm4931_vm13 = vmor %vm4929_vm5, %vm4930_vm10 }
 0x2e5   : > { %v5726_v31 = vpop.eup %5725  ;;  %v4812_v5 = vsel %vm4811_vm8, %v5718_v33, %v4808_v13  ;;  %5731 = vrcp.f32 %v8424_v9  ;;  %v4591_v54 = vor.u32 1.1754944e-38, %v4590_v51  ;;  %v4710_v24 = vand.u32 2147483648, %v8397_v20 }
 0x2e6   : > { %v4817_v28 = vsel %vm8407_vm2, %v4816_v27, %v4812_v5  ;;  %v4927_v49 = vmul.f32 %v5720_v57, %v4926_v39  ;;  %v4700_v46 = vmul.f32 %v5726_v31, %v8397_v20  ;;  %v5728_v37 = vpop.eup %5727  ;;  %v4581_v59 = vsub.f32 1.0, %v4580_v40 }
 0x2e7   : > { %v5004_v42 = vmul.f32 %v4817_v28, %v8308_v15  ;;  %vm8446_vm12 = vcmp.eq.f32.partialorder %v4708_v32, 8.507059e+37  ;;  %v8450_v4 = vadd.f32 1.0, %v5728_v37  ;;  %vm4585_vm14 = vweird.f32 %v5724_v21 }
 0x2e8   : > { %v4928_v43 = vadd.f32 %v5720_v57, %v4927_v49  ;;  %v4701_v6 = vsub.f32 1.0, %v4700_v46  ;;  %v4582_v60 = vmul.f32 %v5724_v21, %v4581_v59  ;;  %vm4705_vm15 = vweird.f32 %v5726_v31  ;;  %vm4586_vm4 = vmor %vm4584_vm7, %vm4585_vm14 }
 0x2e9   : > { %5036 = vst [vmem:[%s8137_s6 + $0xa0] sm:$0xff] %v5004_v42  ;;  %v8457_v15 = vadd.f32 %v8374_v26, %v4346_v29  ;;  %v5730_v30 = vpop.eup %5729  ;;  %5733 = vrcp.f32 %v8450_v4  ;;  %v4390_v61 = vsub.f32 0.0, %v8442_v0  ;;  %v4711_v2 = vor.u32 1.1754944e-38, %v4710_v24  ;;  %vm4706_vm0 = vmor %vm4704_vm9, %vm4705_vm15 }
 0x2ea   : > { %v4932_v44 = vsel %vm4931_vm13, %v5720_v57, %v4928_v43  ;;  %v4702_v23 = vmul.f32 %v5726_v31, %v4701_v6  ;;  %v4583_v38 = vadd.f32 %v5724_v21, %v4582_v60  ;;  %v4828_v50 = vand.u32 2147483647, %v8424_v9 }
 0x2eb   : > { %v5732_v33 = vpop.eup %5731  ;;  %v4937_v19 = vsel %vm8418_vm6, %v4936_v3, %v4932_v44  ;;  %v4830_v48 = vand.u32 2147483648, %v8424_v9  ;;  %v8475_v27 = vadd.f32 1.0, %v5730_v30  ;;  %v4398_v16 = vsub.f32 0.0, %v8457_v15 }
 0x2ec   : > { %v5012_v7 = vmul.f32 %v4937_v19, %v8327_v14  ;;  %v4703_v25 = vadd.f32 %v5726_v31, %v4702_v23  ;;  %v4820_v10 = vmul.f32 %v5732_v33, %v8424_v9  ;;  %v4587_v36 = vsel %vm4586_vm4, %v5724_v21, %v4583_v38 }
 0x2ed   : > { %v4592_v14 = vsel %vm8433_vm11, %v4591_v54, %v4587_v36  ;;  %v4436_v57 = vmul.f32 1.442695, %v4390_v61  ;;  %5735 = vrcp.f32 %v8475_v27  ;;  %vm4824_vm1 = vweird.f32 %v8424_v9 }
 0x2ee   : > { %v4370_v17 = vpop.f32.mrf.mxu3  ;;  %5044 = vst [vmem:[%s8137_s6 + $0xe0] sm:$0xff] %v5012_v7  ;;  %v4707_v18 = vsel %vm4706_vm0, %v5726_v31, %v4703_v25  ;;  %v4821_v41 = vsub.f32 1.0, %v4820_v10  ;;  %v4989_v52 = vmul.f32 %v4592_v14, %v8331_v1  ;;  %vm4825_vm2 = vweird.f32 %v5732_v33 }
 0x2ef   : > { %v8464_v47 = vadd.f32 %v8374_v26, %v4370_v17  ;;  %v4712_v20 = vsel %vm8446_vm12, %v4711_v2, %v4707_v18  ;;  %v5734_v8 = vpop.eup %5733  ;;  %vm8488_vm3 = vcmp.eq.f32.partialorder %v4828_v50, 8.507059e+37  ;;  %v4831_v1 = vor.u32 1.1754944e-38, %v4830_v48  ;;  %vm4826_vm5 = vmor %vm4824_vm1, %vm4825_vm2 }
 0x2f0   : > { %v4997_v12 = vmul.f32 %v4712_v20, %v8334_v35  ;;  %v4822_v58 = vmul.f32 %v5732_v33, %v4821_v41  ;;  %5021 = vst [vmem:[%s8137_s6 + $0x28] sm:$0xff] %v4989_v52  ;;  %v4940_v3 = vmul.f32 %v5734_v8, %v8450_v4  ;;  %5737 = vpow2.f32 %v4436_v57 }
 0x2f1   : > { %v4948_v51 = vand.u32 2147483647, %v8450_v4  ;;  %v4452_v35 = vmul.f32 1.442695, %v4398_v16  ;;  %v4406_v45 = vsub.f32 0.0, %v8464_v47  ;;  %v4950_v21 = vand.u32 2147483648, %v8450_v4 }
 0x2f2   : > { %5029 = vst [vmem:[%s8137_s6 + $0x68] sm:$0xff] %v4997_v12  ;;  %v4823_v13 = vadd.f32 %v5732_v33, %v4822_v58  ;;  %v4941_v9 = vsub.f32 1.0, %v4940_v3  ;;  %vm4945_vm6 = vweird.f32 %v5734_v8  ;;  %vm4944_vm7 = vweird.f32 %v8450_v4 }
 0x2f3   : > { %v4301_v55 = vpop.f32.mrf.mxu0  ;;  %5739 = vpow2.f32 %v4452_v35  ;;  %v4468_v5 = vmul.f32 1.442695, %v4406_v45  ;;  %v5736_v40 = vpop.eup %5735  ;;  %vm4949_vm8 = vcmp.eq.f32.partialorder %v4948_v51, 8.507059e+37  ;;  %v4951_v54 = vor.u32 1.1754944e-38, %v4950_v21  ;;  %vm4946_vm9 = vmor %vm4944_vm7, %vm4945_vm6 }
 0x2f4   : > { %v8498_v39 = vadd.f32 %v8374_v26, %v4301_v55  ;;  %v4827_v31 = vsel %vm4826_vm5, %v5732_v33, %v4823_v13  ;;  %v4942_v28 = vmul.f32 %v5734_v8, %v4941_v9  ;;  %v4595_v37 = vmul.f32 %v5736_v40, %v8475_v27 }
 0x2f5   : > { %v4832_v56 = vsel %vm8488_vm3, %v4831_v1, %v4827_v31  ;;  %5741 = vpow2.f32 %v4468_v5  ;;  %vm4599_vm10 = vweird.f32 %v8475_v27  ;;  %v4603_v4 = vand.u32 2147483647, %v8475_v27 }
 0x2f6   : > { %v4383_v49 = vsub.f32 0.0, %v8498_v39  ;;  %v5005_v29 = vmul.f32 %v4832_v56, %v8359_v63  ;;  %v5738_v42 = vpop.eup %5737  ;;  %v4943_v59 = vadd.f32 %v5734_v8, %v4942_v28  ;;  %v4596_v43 = vsub.f32 1.0, %v4595_v37 }
 0x2f7   : > { %v4486_v6 = vadd.f32 1.0, %v5738_v42  ;;  %v4605_v17 = vand.u32 2147483648, %v8475_v27  ;;  %vm4600_vm11 = vweird.f32 %v5736_v40  ;;  %vm4604_vm13 = vcmp.eq.f32.partialorder %v4603_v4, 8.507059e+37 }
 0x2f8   : > { %v4422_v24 = vmul.f32 1.442695, %v4383_v49  ;;  %5037 = vst [vmem:[%s8137_s6 + $0xa8] sm:$0xff] %v5005_v29  ;;  %v4947_v63 = vsel %vm4946_vm9, %v5734_v8, %v4943_v59  ;;  %v4597_v44 = vmul.f32 %v5736_v40, %v4596_v43  ;;  %vm4601_vm12 = vmor %vm4599_vm10, %vm4600_vm11 }
 0x2f9   : > { %v4325_v62 = vpop.f32.mrf.mxu1  ;;  %v5740_v60 = vpop.eup %5739  ;;  %v4952_v30 = vsel %vm4949_vm8, %v4951_v54, %v4947_v63  ;;  %v4606_v2 = vor.u32 1.1754944e-38, %v4605_v17  ;;  %v4723_v36 = vand.u32 2147483647, %v4486_v6  ;;  %v4725_v14 = vand.u32 2147483648, %v4486_v6 }
 0x2fa   : > { %v8501_v32 = vadd.f32 %v8374_v26, %v4325_v62  ;;  %5743 = vpow2.f32 %v4422_v24  ;;  %v5013_v61 = vmul.f32 %v4952_v30, %v8362_v53  ;;  %v8516_v33 = vadd.f32 1.0, %v5740_v60 }
 0x2fb   : > { %5745 = vrcp.f32 %v4486_v6  ;;  %v5742_v19 = vpop.eup %5741  ;;  %v4598_v38 = vadd.f32 %v5736_v40, %v4597_v44  ;;  %vm4719_vm14 = vweird.f32 %v4486_v6  ;;  %vm8533_vm15 = vcmp.eq.f32.partialorder %v4723_v36, 8.507059e+37 }
 0x2fc   : > { %v4391_v46 = vsub.f32 0.0, %v8501_v32  ;;  %5045 = vst [vmem:[%s8137_s6 + $0xe8] sm:$0xff] %v5013_v61  ;;  %v8525_v10 = vadd.f32 1.0, %v5742_v19  ;;  %v4726_v55 = vor.u32 1.1754944e-38, %v4725_v14  ;;  %v4845_v11 = vand.u32 2147483648, %v8516_v33 }
 0x2fd   : > { %v4602_v25 = vsel %vm4601_vm12, %v5736_v40, %v4598_v38  ;;  %vm4839_vm0 = vweird.f32 %v8516_v33 }
 0x2fe   : > { %v4438_v22 = vmul.f32 1.442695, %v4391_v46  ;;  %v4607_v50 = vsel %vm4604_vm13, %v4606_v2, %v4602_v25  ;;  %v4963_v45 = vand.u32 2147483647, %v8525_v10  ;;  %v4965_v9 = vand.u32 2147483648, %v8525_v10 }
 0x2ff   : > { %v4990_v16 = vmul.f32 %v4607_v50, %v8377_v34  ;;  %v4843_v34 = vand.u32 2147483647, %v8516_v33  ;;  %v4846_v40 = vor.u32 1.1754944e-38, %v4845_v11  ;;  %vm4959_vm5 = vweird.f32 %v8525_v10 }
 0x300   : > { %5747 = vpow2.f32 %v4438_v22  ;;  %v5744_v53 = vpop.eup %5743  ;;  %vm8560_vm6 = vcmp.eq.f32.partialorder %v4963_v45, 8.507059e+37  ;;  %v4966_v59 = vor.u32 1.1754944e-38, %v4965_v9 }
 0x301   : > { %5749 = vrcp.f32 %v8516_v33  ;;  %v5746_v48 = vpop.eup %5745  ;;  %5022 = vst [vmem:[%s8137_s6 + $0x30] sm:$0xff] %v4990_v16  ;;  %v8531_v57 = vadd.f32 1.0, %v5744_v53  ;;  %vm8550_vm1 = vcmp.eq.f32.partialorder %v4843_v34, 8.507059e+37 }
 0x302   : > { %5751 = vrcp.f32 %v8525_v10  ;;  %v4715_v27 = vmul.f32 %v5746_v48, %v4486_v6  ;;  %vm4720_vm4 = vweird.f32 %v5746_v48 }
 0x303   : > { %5753 = vrcp.f32 %v8531_v57  ;;  %vm4721_vm2 = vmor %vm4719_vm14, %vm4720_vm4  ;;  %vm4614_vm9 = vweird.f32 %v8531_v57  ;;  %v4618_v63 = vand.u32 2147483647, %v8531_v57 }
 0x304   : > { %v4716_v8 = vsub.f32 1.0, %v4715_v27 }
 0x306   : > { %v4349_v23 = vpop.f32.mrf.mxu2  ;;  %v5748_v41 = vpop.eup %5747  ;;  %v4717_v1 = vmul.f32 %v5746_v48, %v4716_v8 }
 0x307   : > { %v8523_v7 = vadd.f32 %v8374_v26, %v4349_v23  ;;  %v5750_v20 = vpop.eup %5749  ;;  %v8538_v58 = vadd.f32 1.0, %v5748_v41  ;;  %v4620_v23 = vand.u32 2147483648, %v8531_v57 }
 0x308   : > { %v4835_v62 = vmul.f32 %v5750_v20, %v8516_v33  ;;  %v5752_v51 = vpop.eup %5751  ;;  %v4718_v21 = vadd.f32 %v5746_v48, %v4717_v1  ;;  %vm4840_vm3 = vweird.f32 %v5750_v20 }
 0x309   : > { %v4399_v18 = vsub.f32 0.0, %v8523_v7  ;;  %5755 = vrcp.f32 %v8538_v58  ;;  %v4955_v5 = vmul.f32 %v5752_v51, %v8525_v10  ;;  %v5754_v46 = vpop.eup %5753  ;;  %vm4841_vm7 = vmor %vm4839_vm0, %vm4840_vm3  ;;  %vm4960_vm8 = vweird.f32 %v5752_v51 }
 0x30a   : > { %v4836_v35 = vsub.f32 1.0, %v4835_v62  ;;  %v4722_v56 = vsel %vm4721_vm2, %v5746_v48, %v4718_v21  ;;  %v4610_v43 = vmul.f32 %v5754_v46, %v8531_v57  ;;  %vm4961_vm10 = vmor %vm4959_vm5, %vm4960_vm8  ;;  %vm4734_vm11 = vweird.f32 %v8538_v58 }
 0x30b   : > { %v4454_v3 = vmul.f32 1.442695, %v4399_v18  ;;  %v4956_v28 = vsub.f32 1.0, %v4955_v5  ;;  %v4727_v29 = vsel %vm8533_vm15, %v4726_v55, %v4722_v56  ;;  %vm4615_vm12 = vweird.f32 %v5754_v46 }
 0x30c   : > { %v4373_v52 = vpop.f32.mrf.mxu3  ;;  %v4998_v54 = vmul.f32 %v4727_v29, %v8442_v0  ;;  %v4611_v60 = vsub.f32 1.0, %v4610_v43  ;;  %v4740_v25 = vand.u32 2147483648, %v8538_v58  ;;  %vm4616_vm14 = vmor %vm4614_vm9, %vm4615_vm12  ;;  %v4621_v48 = vor.u32 1.1754944e-38, %v4620_v23 }
 0x30d   : > { %v8544_v13 = vadd.f32 %v8374_v26, %v4373_v52  ;;  %v4837_v26 = vmul.f32 %v5750_v20, %v4836_v35  ;;  %5757 = vpow2.f32 %v4454_v3  ;;  %v4957_v24 = vmul.f32 %v5752_v51, %v4956_v28 }
 0x30e   : > { %5030 = vst [vmem:[%s8137_s6 + $0x70] sm:$0xff] %v4998_v54  ;;  %v4612_v19 = vmul.f32 %v5754_v46, %v4611_v60  ;;  %vm4619_vm15 = vcmp.eq.f32.partialorder %v4618_v63, 8.507059e+37 }
 0x30f   : > { %v4407_v49 = vsub.f32 0.0, %v8544_v13  ;;  %v4838_v37 = vadd.f32 %v5750_v20, %v4837_v26  ;;  %v5756_v6 = vpop.eup %5755  ;;  %v4958_v0 = vadd.f32 %v5752_v51, %v4957_v24 }
 0x310   : > { %v4730_v30 = vmul.f32 %v5756_v6, %v8538_v58  ;;  %v4613_v50 = vadd.f32 %v5754_v46, %v4612_v19  ;;  %vm4735_vm13 = vweird.f32 %v5756_v6 }
 0x311   : > { %v4842_v22 = vsel %vm4841_vm7, %v5750_v20, %v4838_v37  ;;  %v4470_v4 = vmul.f32 1.442695, %v4407_v49  ;;  %v4962_v33 = vsel %vm4961_vm10, %v5752_v51, %v4958_v0  ;;  %vm4736_vm4 = vmor %vm4734_vm11, %vm4735_vm13 }
 0x312   : > { %v4847_v17 = vsel %vm8550_vm1, %v4846_v40, %v4842_v22  ;;  %v4731_v38 = vsub.f32 1.0, %v4730_v30  ;;  %v4967_v2 = vsel %vm8560_vm6, %v4966_v59, %v4962_v33  ;;  %v4617_v16 = vsel %vm4616_vm14, %v5754_v46, %v4613_v50 }
 0x313   : > { %v5006_v44 = vmul.f32 %v4847_v17, %v8457_v15  ;;  %5759 = vpow2.f32 %v4470_v4  ;;  %v5758_v61 = vpop.eup %5757  ;;  %v4738_v15 = vand.u32 2147483647, %v8538_v58  ;;  %v5014_v53 = vmul.f32 %v4967_v2, %v8464_v47 }
 0x314   : > { %v4495_v10 = vadd.f32 1.0, %v5758_v61  ;;  %v4732_v36 = vmul.f32 %v5756_v6, %v4731_v38  ;;  %v4622_v18 = vsel %vm4619_vm15, %v4621_v48, %v4617_v16  ;;  %v4741_v47 = vor.u32 1.1754944e-38, %v4740_v25 }
 0x315   : > { %5038 = vst [vmem:[%s8137_s6 + $0xb0] sm:$0xff] %v5006_v44  ;;  %v4991_v41 = vmul.f32 %v4622_v18, %v8498_v39  ;;  %vm4739_vm0 = vcmp.eq.f32.partialorder %v4738_v15, 8.507059e+37 }
 0x316   : > { %5761 = vrcp.f32 %v4495_v10  ;;  %5046 = vst [vmem:[%s8137_s6 + $0xf0] sm:$0xff] %v5014_v53  ;;  %v4733_v14 = vadd.f32 %v5756_v6, %v4732_v36  ;;  %v4860_v62 = vand.u32 2147483648, %v4495_v10  ;;  %v4858_v1 = vand.u32 2147483647, %v4495_v10 }
 0x317   : > { %5023 = vst [vmem:[%s8137_s6 + $0x38] sm:$0xff] %v4991_v41  ;;  %vm4854_vm2 = vweird.f32 %v4495_v10 }
 0x318   : > { %v4737_v52 = vsel %vm4736_vm4, %v5756_v6, %v4733_v14  ;;  %v4861_v51 = vor.u32 1.1754944e-38, %v4860_v62  ;;  %vm4859_vm5 = vcmp.eq.f32.partialorder %v4858_v1, 8.507059e+37 }
 0x319   : > { %v5760_v27 = vpop.eup %5759  ;;  %v4742_v20 = vsel %vm4739_vm0, %v4741_v47, %v4737_v52 }
 0x31a   : > { %v4503_v57 = vadd.f32 1.0, %v5760_v27  ;;  %v4999_v8 = vmul.f32 %v4742_v20, %v8501_v32 }
 0x31c   : > { %5763 = vrcp.f32 %v4503_v57  ;;  %v5762_v12 = vpop.eup %5761  ;;  %5031 = vst [vmem:[%s8137_s6 + $0x78] sm:$0xff] %v4999_v8  ;;  %v4980_v45 = vand.u32 2147483648, %v4503_v57  ;;  %v4978_v31 = vand.u32 2147483647, %v4503_v57  ;;  %vm4974_vm7 = vweird.f32 %v4503_v57 }
 0x31d   : > { %v4850_v34 = vmul.f32 %v5762_v12, %v4495_v10  ;;  %vm4855_vm1 = vweird.f32 %v5762_v12 }
 0x31e   : > { %vm4856_vm3 = vmor %vm4854_vm2, %vm4855_vm1  ;;  %v4981_v40 = vor.u32 1.1754944e-38, %v4980_v45  ;;  %vm4979_vm9 = vcmp.eq.f32.partialorder %v4978_v31, 8.507059e+37 }
 0x31f   : > { %v4851_v55 = vsub.f32 1.0, %v4850_v34 }
 0x321   : > { %v4852_v58 = vmul.f32 %v5762_v12, %v4851_v55 }
 0x322   : > { %v5764_v11 = vpop.eup %5763 }
 0x323   : > { %v4970_v3 = vmul.f32 %v5764_v11, %v4503_v57  ;;  %v4853_v39 = vadd.f32 %v5762_v12, %v4852_v58  ;;  %vm4975_vm6 = vweird.f32 %v5764_v11 }
 0x324   : > { %vm4976_vm8 = vmor %vm4974_vm7, %vm4975_vm6 }
 0x325   : > { %v4971_v32 = vsub.f32 1.0, %v4970_v3  ;;  %v4857_v35 = vsel %vm4856_vm3, %v5762_v12, %v4853_v39 }
 0x326   : > { %v4862_v9 = vsel %vm4859_vm5, %v4861_v51, %v4857_v35 }
 0x327   : > { %v4972_v21 = vmul.f32 %v5764_v11, %v4971_v32  ;;  %v5007_v5 = vmul.f32 %v4862_v9, %v8523_v7 }
 0x329   : > { %v4973_v26 = vadd.f32 %v5764_v11, %v4972_v21  ;;  %5039 = vst [vmem:[%s8137_s6 + $0xb8] sm:$0xff] %v5007_v5 }
 0x32b   : > { %v4977_v56 = vsel %vm4976_vm8, %v5764_v11, %v4973_v26 }
 0x32c   : > { %v4982_v28 = vsel %vm4979_vm9, %v4981_v40, %v4977_v56 }
 0x32d   : > { %v5015_v49 = vmul.f32 %v4982_v28, %v8544_v13 }
 0x32f   : > { %5047 = vst [vmem:[%s8137_s6 + $0xf8] sm:$0xff] %v5015_v49 }
 0x330   : > { %5813 = shalt.err (!%p5810_p5)
}
 0x331   : > { %s5850_s14 = smov 128   ;;  %s5851_s6 = smov 8  }
 0x332   : > { %5457 = dma.vmem_to_hbm [thread:$0]  (%p5920_p6), %s5062_s22, 4096, %s5064_s15, %s5049_s16, %s5850_s14, %s5850_s14, %s5851_s6  }
 0x333 PF: > { %s5078_s9 = sand.u32 1, %s5836_s18   ;;  %p5460_p7 = pnand %p5143_p9, %p5924_p8 }
 0x334   : > { %s5079_s10 = scalar_lea.sflag [#allocation4], %s5078_s9 }
 0x335   : > { %p5461_p10 = pneg %p5460_p7 }
 0x337   : > { %5831 = dma.done.wait (%p5461_p10), %s5079_s10, 4096  }
 0x338   : > { %5833 = vsyncadd (%p5461_p10), %s5079_s10, 4294963200  ;;  %p15_p11 = scmp.ge.s32.totalorder %s5905_s24, 4   ;;  %s8782_s18 = smov %s5840_s19 }
 0x339   : > { %s8783_s19 = smov %s5844_s20  ;;  %s8784_s20 = smov %s5918_s27 }
 0x33a   : > { %s8785_s21 = smov %s5905_s24  ;;  %17 = sbr.rel (!%p15_p11) target bundleno = 3 (0x3), region = 154 }
 0x33f   :  { %5085 = vsyncpa [#allocation4], 1 }
 0x340   :  { %5087 = vsyncpa [#allocation4 + $0x1], 1 }

</bundles_post_ra>
